<compile_context>
chip_gen: v6e
topology: v6e:2x2x1
jax: 0.10.0
libtpu: 0.0.40
codegen_flags: <defaults>
</compile_context>

<pallas_src>
import functools

import jax
import jax.numpy as jnp
from jax import lax
from jax.experimental import pallas as pl
from jax.experimental.pallas import tpu as pltpu

# ---- model config (matches the PyTorch module with g_mult=1, latent_dim=32) ----
G_FEATURES_BASE = 128
G_MULT = 1
LATENT_DIM = 32
IMG_SIZE = 32
N_CHANNELS = 1
IMG_SHAPE = (N_CHANNELS, IMG_SIZE, IMG_SIZE)
IMG_PROD = N_CHANNELS * IMG_SIZE * IMG_SIZE

D1 = G_MULT * G_FEATURES_BASE          # 128
D2 = 2 * G_MULT * G_FEATURES_BASE      # 256
D3 = 4 * G_MULT * G_FEATURES_BASE      # 512
D4 = 8 * G_MULT * G_FEATURES_BASE      # 1024

BN_EPS = 0.8                           # nn.BatchNorm1d(out_feat, 0.8) -> eps=0.8
LEAKY_SLOPE = 0.2

_LAYER_DIMS = [(LATENT_DIM, D1), (D1, D2), (D2, D3), (D3, D4), (D4, IMG_PROD)]


def _leaky_relu(x):
    # slope in (0,1)  =>  leaky_relu(x) == max(x, slope*x); 2 VPU ops vs 3.
    return jnp.maximum(x, LEAKY_SLOPE * x)


def _batchnorm_train(x, gamma, beta, row_mask, inv_n):
    """Training-mode BatchNorm1d (eps=0.8) as a fused per-feature scale/shift.

    Single-pass moments: var = E[x^2] - E[x]^2.  NOTE: this form has f32
    cancellation risk; it is masked here by the large eps=0.8 — revisit if eps
    is ever made realistic (~1e-5).

    row_mask (B,1) zeros out padded batch rows so the statistics are taken
    over the real batch only (inv_n = 1/real_batch).  row_mask=None means the
    batch is unpadded.
    """
    if row_mask is None:
        mean = jnp.mean(x, axis=0, keepdims=True)
        mean_sq = jnp.mean(x * x, axis=0, keepdims=True)
    else:
        xm = x * row_mask
        mean = jnp.sum(xm, axis=0, keepdims=True) * inv_n
        mean_sq = jnp.sum(xm * x, axis=0, keepdims=True) * inv_n
    var = jnp.maximum(mean_sq - mean * mean, 0.0)
    scale = gamma * lax.rsqrt(var + BN_EPS)      # (1, feat): tiny, EUP rsqrt
    shift = beta - mean * scale                  # (1, feat)
    return x * scale + shift                     # 1 mul + 1 add per element


def generator_kernel(z_ref,
                     w1, b1,
                     w2, g2, be2,
                     w3, g3, be3,
                     w4_hbm, g4, be4,
                     w5_hbm, b5,
                     out_ref,
                     w4_vmem, w5_vmem, dma_sems,
                     *, b_real):
    # Kick off the DMAs for the two big weight matrices immediately; they
    # overlap with blocks 1-3 and are waited on only right before use.
    cp_w4 = pltpu.make_async_copy(w4_hbm, w4_vmem, dma_sems.at[0])
    cp_w5 = pltpu.make_async_copy(w5_hbm, w5_vmem, dma_sems.at[1])
    cp_w4.start()
    cp_w5.start()

    # bf16 operands into the MXU, f32 accumulation everywhere.
    z = z_ref[...].astype(jnp.bfloat16)
    b_pad = z.shape[0]
    if b_pad > b_real:
        rows = lax.broadcasted_iota(jnp.int32, (b_pad, 1), 0)
        row_mask = (rows < b_real).astype(jnp.float32)
    else:
        row_mask = None
    inv_n = 1.0 / float(b_real)

    # block 1 (no batchnorm): bias kept.
    h = jnp.dot(z, w1[...], preferred_element_type=jnp.float32) + b1[...]
    h = _leaky_relu(h)

    # blocks 2-4: Linear (bias dropped — exactly cancelled by train-mode BN
    # mean subtraction) -> BatchNorm -> LeakyReLU.
    h = jnp.dot(h.astype(jnp.bfloat16), w2[...], preferred_element_type=jnp.float32)
    h = _leaky_relu(_batchnorm_train(h, g2[...], be2[...], row_mask, inv_n))

    h = jnp.dot(h.astype(jnp.bfloat16), w3[...], preferred_element_type=jnp.float32)
    h = _leaky_relu(_batchnorm_train(h, g3[...], be3[...], row_mask, inv_n))

    cp_w4.wait()
    h = jnp.dot(h.astype(jnp.bfloat16), w4_vmem[...], preferred_element_type=jnp.float32)
    h = _leaky_relu(_batchnorm_train(h, g4[...], be4[...], row_mask, inv_n))

    # output layer + tanh
    cp_w5.wait()
    o = jnp.dot(h.astype(jnp.bfloat16), w5_vmem[...],
                preferred_element_type=jnp.float32) + b5[...]
    out_ref[...] = jnp.tanh(o).astype(out_ref.dtype)


def init_params(key):
    """Deterministic init mimicking PyTorch nn.Linear default U(-1/sqrt(fan_in), ...).

    Weights are stored in bf16 (MXU-native, halves HBM weight traffic); biases
    and BatchNorm affine params stay f32 and are applied to the f32
    accumulator.  b2/b3/b4 exist (to mirror the PyTorch parameter set and for
    the reference check) but are not needed by the kernel: they are cancelled
    by the train-mode BatchNorm that follows them.
    """
    params = {}
    for i, (fi, fo) in enumerate(_LAYER_DIMS, start=1):
        key, kw, kb = jax.random.split(key, 3)
        bound = 1.0 / jnp.sqrt(jnp.float32(fi))
        w = jax.random.uniform(kw, (fi, fo), jnp.float32, -bound, bound)
        params[f"w{i}"] = w.astype(jnp.bfloat16)
        params[f"b{i}"] = jax.random.uniform(kb, (1, fo), jnp.float32, -bound, bound)
    # BatchNorm affine params (gamma=1, beta=0) for blocks 2..4
    for i, d in zip((2, 3, 4), (D2, D3, D4)):
        params[f"g{i}"] = jnp.ones((1, d), jnp.float32)
        params[f"be{i}"] = jnp.zeros((1, d), jnp.float32)
    return params
    # TODO(synk): PyTorch BatchNorm1d running_mean/running_var buffer updates
    # (a training-mode side effect) are not produced by this forward kernel.


def _round_up(n, m):
    return ((n + m - 1) // m) * m


def _vmem_limit_bytes(batch_pad):
    """Scoped-VMEM budget computed from the actual buffer footprint.

    Ceiling is 3/4 of the chip's physical VMEM (≈48 MiB on v7x, ≈96 MiB on
    v5e/v6e).  If the whole-batch footprint exceeds that, fail loudly instead
    of silently clamping.
    """
    w_auto = (LATENT_DIM * D1 + D1 * D2 + D2 * D3) * 2        # w1..w3 bf16, auto-DMA
    w_scratch = (D3 * D4 + D4 * IMG_PROD) * 2                 # w4/w5 bf16 scratch
    small = (D1 + IMG_PROD) * 4 + (D2 + D3 + D4) * 2 * 4      # b1,b5 + BN gamma/beta
    # f32 activations: a few live (B, feat) buffers around each matmul/BN.
    act = batch_pad * (LATENT_DIM + D1 + D2 + D3 + D4 + IMG_PROD) * 4 * 3
    out = batch_pad * IMG_PROD * 4
    total = w_auto + w_scratch + small + act + out + (4 << 20)  # 4 MiB headroom

    try:
        cap = pltpu.get_tpu_info().vmem_capacity_bytes
    except Exception:
        cap = 64 << 20                                         # conservative (v7x)
    ceiling = (cap * 3) // 4
    if total > ceiling:
        raise ValueError(
            f"Whole-batch Generator kernel needs ~{total >> 20} MiB VMEM but only "
            f"{ceiling >> 20} MiB is available on this chip; reduce the batch "
            "per pallas_call (batch-tiled grid path is still TODO).")
    return int(max(total, 16 << 20))


def generator_forward(z, params, out_dtype=jnp.float32):
    """Run the generator on z (B, LATENT_DIM) -> (B, 1, 32, 32)."""
    B = z.shape[0]
    # Pad batch to a multiple of 16 (bf16 sublane packing / full MXU tiles).
    # BN statistics inside the kernel are masked to the real B, so this is
    # exact.  For best throughput pick B itself as a multiple of 128 (v5e) or
    # 256 (v6e/v7x).
    B_pad = max(_round_up(B, 16), 16)
    if B_pad != B:
        z = jnp.pad(z, ((0, B_pad - B), (0, 0)))

    args = (
        z,
        params["w1"], params["b1"],
        params["w2"], params["g2"], params["be2"],
        params["w3"], params["g3"], params["be3"],
        params["w4"], params["g4"], params["be4"],
        params["w5"], params["b5"],
    )
    vmem_spec = pl.BlockSpec(memory_space=pltpu.MemorySpace.VMEM)
    hbm_spec = pl.BlockSpec(memory_space=pl.ANY)
    in_specs = [vmem_spec] * len(args)
    in_specs[9] = hbm_spec    # w4 stays in HBM, manually DMA'd
    in_specs[12] = hbm_spec   # w5 stays in HBM, manually DMA'd

    flat = pl.pallas_call(
        functools.partial(generator_kernel, b_real=B),
        out_shape=jax.ShapeDtypeStruct((B_pad, IMG_PROD), out_dtype),
        in_specs=in_specs,
        out_specs=vmem_spec,
        scratch_shapes=[
            pltpu.VMEM((D3, D4), jnp.bfloat16),        # w4 staging buffer
            pltpu.VMEM((D4, IMG_PROD), jnp.bfloat16),  # w5 staging buffer
            pltpu.SemaphoreType.DMA((2,)),
        ],
        compiler_params=pltpu.CompilerParams(
            vmem_limit_bytes=_vmem_limit_bytes(B_pad)),
    )(*args)
    # drop padded rows + reshape to NCHW image (glue, not part of the hot path)
    return flat[:B].reshape(B, *IMG_SHAPE)


def _reference_forward(z, params):
    """Pure-jnp reference with the *original* math (biases before BN kept,
    textbook two-pass BN) to validate the kernel's algebraic simplifications."""
    def bn(x, g, b):
        mean = jnp.mean(x, axis=0, keepdims=True)
        var = jnp.mean((x - mean) ** 2, axis=0, keepdims=True)
        return (x - mean) / jnp.sqrt(var + BN_EPS) * g + b

    def lrelu(x):
        return jnp.where(x > 0, x, LEAKY_SLOPE * x)

    h = lrelu(jnp.dot(z.astype(jnp.bfloat16), params["w1"],
                      preferred_element_type=jnp.float32) + params["b1"])
    for i in (2, 3, 4):
        h = jnp.dot(h.astype(jnp.bfloat16), params[f"w{i}"],
                    preferred_element_type=jnp.float32) + params[f"b{i}"]
        h = lrelu(bn(h, params[f"g{i}"], params[f"be{i}"]))
    o = jnp.dot(h.astype(jnp.bfloat16), params["w5"],
                preferred_element_type=jnp.float32) + params["b5"]
    return jnp.tanh(o).reshape(z.shape[0], *IMG_SHAPE)


if __name__ == "__main__":
    key = jax.random.PRNGKey(0)
    kp, kz = jax.random.split(key)
    params = init_params(kp)
    B = 8  # small demo batch; for throughput run B as a multiple of 128/256
    z = jax.random.normal(kz, (B, LATENT_DIM), jnp.float32)

    img = generator_forward(z, params)
    img = jax.block_until_ready(img)

    assert img.shape == (B, N_CHANNELS, IMG_SIZE, IMG_SIZE), img.shape
    assert img.dtype == jnp.float32
    # tanh output must be in [-1, 1]
    assert bool(jnp.all(jnp.abs(img) <= 1.0 + 1e-6))

    # Validate against the un-simplified reference (with pre-BN biases and
    # textbook BN): proves bias-drop / scale-shift BN / batch-pad masking are
    # mathematically equivalent.
    ref = jax.block_until_ready(_reference_forward(z, params))
    max_err = float(jnp.max(jnp.abs(img - ref)))
    assert max_err < 5e-2, f"mismatch vs reference: {max_err}"

    print("KERNEL_OK")
</pallas_src>

<mosaic_0001>
module attributes {stable_mosaic.version = 11 : i64} {
  func.func @generator_kernel(%arg0: memref<16x32xf32, #tpu.memory_space<vmem>>, %arg1: memref<32x128xbf16, #tpu.memory_space<vmem>>, %arg2: memref<1x128xf32, #tpu.memory_space<vmem>>, %arg3: memref<128x256xbf16, #tpu.memory_space<vmem>>, %arg4: memref<1x256xf32, #tpu.memory_space<vmem>>, %arg5: memref<1x256xf32, #tpu.memory_space<vmem>>, %arg6: memref<256x512xbf16, #tpu.memory_space<vmem>>, %arg7: memref<1x512xf32, #tpu.memory_space<vmem>>, %arg8: memref<1x512xf32, #tpu.memory_space<vmem>>, %arg9: memref<512x1024xbf16, #tpu.memory_space<any>>, %arg10: memref<1x1024xf32, #tpu.memory_space<vmem>>, %arg11: memref<1x1024xf32, #tpu.memory_space<vmem>>, %arg12: memref<1024x1024xbf16, #tpu.memory_space<any>>, %arg13: memref<1x1024xf32, #tpu.memory_space<vmem>>, %arg14: memref<16x1024xf32, #tpu.memory_space<vmem>>, %arg15: memref<512x1024xbf16, #tpu.memory_space<vmem>>, %arg16: memref<1024x1024xbf16, #tpu.memory_space<vmem>>, %arg17: memref<2x!tpu.dma_semaphore, #tpu.memory_space<semaphore_mem>>) attributes {dimension_semantics = [], scalar_prefetch = 0 : i64, scratch_operands = 3 : i64, tpu.core_type = #tpu.core_type<tc>} {
    %c0_i32 = arith.constant 0 : i32
    %0 = tpu.memref_slice %arg17[%c0_i32] : memref<2x!tpu.dma_semaphore, #tpu.memory_space<semaphore_mem>> -> memref<1x!tpu.dma_semaphore, #tpu.memory_space<semaphore_mem>>
    %1 = tpu.memref_squeeze %0 : memref<1x!tpu.dma_semaphore, #tpu.memory_space<semaphore_mem>> -> memref<!tpu.dma_semaphore, #tpu.memory_space<semaphore_mem>>
    tpu.enqueue_dma source(%arg9 : memref<512x1024xbf16, #tpu.memory_space<any>>) target(%arg15 : memref<512x1024xbf16, #tpu.memory_space<vmem>>) target_semaphore(%1 : memref<!tpu.dma_semaphore, #tpu.memory_space<semaphore_mem>>)
    %c1_i32 = arith.constant 1 : i32
    %2 = tpu.memref_slice %arg17[%c1_i32] : memref<2x!tpu.dma_semaphore, #tpu.memory_space<semaphore_mem>> -> memref<1x!tpu.dma_semaphore, #tpu.memory_space<semaphore_mem>>
    %3 = tpu.memref_squeeze %2 : memref<1x!tpu.dma_semaphore, #tpu.memory_space<semaphore_mem>> -> memref<!tpu.dma_semaphore, #tpu.memory_space<semaphore_mem>>
    tpu.enqueue_dma source(%arg12 : memref<1024x1024xbf16, #tpu.memory_space<any>>) target(%arg16 : memref<1024x1024xbf16, #tpu.memory_space<vmem>>) target_semaphore(%3 : memref<!tpu.dma_semaphore, #tpu.memory_space<semaphore_mem>>)
    %c0 = arith.constant 0 : index
    %c0_0 = arith.constant 0 : index
    %4 = vector.load %arg0[%c0, %c0_0] : memref<16x32xf32, #tpu.memory_space<vmem>>, vector<16x32xf32>
    %5 = arith.truncf %4 : vector<16x32xf32> to vector<16x32xbf16>
    %6 = tpu.iota {dimensions = array<i32: 0>} : vector<16x1xi32>
    %c8_i32 = arith.constant 8 : i32
    %7 = vector.broadcast %c8_i32 : i32 to vector<16x1xi32>
    %8 = arith.cmpi slt, %6, %7 : vector<16x1xi32>
    %9 = arith.extui %8 : vector<16x1xi1> to vector<16x1xi32>
    %10 = arith.sitofp %9 : vector<16x1xi32> to vector<16x1xf32>
    %c0_1 = arith.constant 0 : index
    %c0_2 = arith.constant 0 : index
    %11 = vector.load %arg1[%c0_1, %c0_2] : memref<32x128xbf16, #tpu.memory_space<vmem>>, vector<32x128xbf16>
    %cst = arith.constant dense<0.000000e+00> : vector<16x128xf32>
    %12 = tpu.matmul %5, %11, %cst {dimension_numbers = #tpu.dot_dimension_numbers<[1], [0], [0], [1], [0, 0, 1, 1], [], []>} : vector<16x32xbf16>, vector<32x128xbf16>, vector<16x128xf32> -> vector<16x128xf32>
    %c0_3 = arith.constant 0 : index
    %c0_4 = arith.constant 0 : index
    %13 = vector.load %arg2[%c0_3, %c0_4] : memref<1x128xf32, #tpu.memory_space<vmem>>, vector<1x128xf32>
    %14 = vector.broadcast %13 : vector<1x128xf32> to vector<16x128xf32>
    %15 = arith.addf %12, %14 : vector<16x128xf32>
    %cst_5 = arith.constant 2.000000e-01 : f32
    %16 = vector.broadcast %cst_5 : f32 to vector<16x128xf32>
    %17 = arith.mulf %16, %15 : vector<16x128xf32>
    %18 = arith.maximumf %15, %17 : vector<16x128xf32>
    %19 = arith.truncf %18 : vector<16x128xf32> to vector<16x128xbf16>
    %c0_6 = arith.constant 0 : index
    %c0_7 = arith.constant 0 : index
    %20 = vector.load %arg3[%c0_6, %c0_7] : memref<128x256xbf16, #tpu.memory_space<vmem>>, vector<128x256xbf16>
    %cst_8 = arith.constant dense<0.000000e+00> : vector<16x256xf32>
    %21 = tpu.matmul %19, %20, %cst_8 {dimension_numbers = #tpu.dot_dimension_numbers<[1], [0], [0], [1], [0, 0, 1, 1], [], []>} : vector<16x128xbf16>, vector<128x256xbf16>, vector<16x256xf32> -> vector<16x256xf32>
    %c0_9 = arith.constant 0 : index
    %c0_10 = arith.constant 0 : index
    %22 = vector.load %arg4[%c0_9, %c0_10] : memref<1x256xf32, #tpu.memory_space<vmem>>, vector<1x256xf32>
    %c0_11 = arith.constant 0 : index
    %c0_12 = arith.constant 0 : index
    %23 = vector.load %arg5[%c0_11, %c0_12] : memref<1x256xf32, #tpu.memory_space<vmem>>, vector<1x256xf32>
    %24 = vector.broadcast %10 : vector<16x1xf32> to vector<16x256xf32>
    %25 = arith.mulf %21, %24 : vector<16x256xf32>
    %cst_13 = arith.constant dense<0.000000e+00> : vector<256xf32>
    %26 = vector.multi_reduction <add>, %25, %cst_13 [0] : vector<16x256xf32> to vector<256xf32>
    %27 = vector.shape_cast %26 : vector<256xf32> to vector<1x256xf32>
    %cst_14 = arith.constant 1.250000e-01 : f32
    %28 = vector.broadcast %cst_14 : f32 to vector<1x256xf32>
    %29 = arith.mulf %27, %28 : vector<1x256xf32>
    %30 = arith.mulf %25, %21 : vector<16x256xf32>
    %cst_15 = arith.constant dense<0.000000e+00> : vector<256xf32>
    %31 = vector.multi_reduction <add>, %30, %cst_15 [0] : vector<16x256xf32> to vector<256xf32>
    %32 = vector.shape_cast %31 : vector<256xf32> to vector<1x256xf32>
    %cst_16 = arith.constant 1.250000e-01 : f32
    %33 = vector.broadcast %cst_16 : f32 to vector<1x256xf32>
    %34 = arith.mulf %32, %33 : vector<1x256xf32>
    %35 = arith.mulf %29, %29 : vector<1x256xf32>
    %36 = arith.subf %34, %35 : vector<1x256xf32>
    %cst_17 = arith.constant 0.000000e+00 : f32
    %37 = vector.broadcast %cst_17 : f32 to vector<1x256xf32>
    %38 = arith.maximumf %36, %37 : vector<1x256xf32>
    %cst_18 = arith.constant 8.000000e-01 : f32
    %39 = vector.broadcast %cst_18 : f32 to vector<1x256xf32>
    %40 = arith.addf %38, %39 : vector<1x256xf32>
    %41 = math.rsqrt %40 : vector<1x256xf32>
    %42 = arith.mulf %22, %41 : vector<1x256xf32>
    %43 = arith.mulf %29, %42 : vector<1x256xf32>
    %44 = arith.subf %23, %43 : vector<1x256xf32>
    %45 = vector.broadcast %42 : vector<1x256xf32> to vector<16x256xf32>
    %46 = arith.mulf %21, %45 : vector<16x256xf32>
    %47 = vector.broadcast %44 : vector<1x256xf32> to vector<16x256xf32>
    %48 = arith.addf %46, %47 : vector<16x256xf32>
    %cst_19 = arith.constant 2.000000e-01 : f32
    %49 = vector.broadcast %cst_19 : f32 to vector<16x256xf32>
    %50 = arith.mulf %49, %48 : vector<16x256xf32>
    %51 = arith.maximumf %48, %50 : vector<16x256xf32>
    %52 = arith.truncf %51 : vector<16x256xf32> to vector<16x256xbf16>
    %c0_20 = arith.constant 0 : index
    %c0_21 = arith.constant 0 : index
    %53 = vector.load %arg6[%c0_20, %c0_21] : memref<256x512xbf16, #tpu.memory_space<vmem>>, vector<256x512xbf16>
    %cst_22 = arith.constant dense<0.000000e+00> : vector<16x512xf32>
    %54 = tpu.matmul %52, %53, %cst_22 {dimension_numbers = #tpu.dot_dimension_numbers<[1], [0], [0], [1], [0, 0, 1, 1], [], []>} : vector<16x256xbf16>, vector<256x512xbf16>, vector<16x512xf32> -> vector<16x512xf32>
    %c0_23 = arith.constant 0 : index
    %c0_24 = arith.constant 0 : index
    %55 = vector.load %arg7[%c0_23, %c0_24] : memref<1x512xf32, #tpu.memory_space<vmem>>, vector<1x512xf32>
    %c0_25 = arith.constant 0 : index
    %c0_26 = arith.constant 0 : index
    %56 = vector.load %arg8[%c0_25, %c0_26] : memref<1x512xf32, #tpu.memory_space<vmem>>, vector<1x512xf32>
    %57 = vector.broadcast %10 : vector<16x1xf32> to vector<16x512xf32>
    %58 = arith.mulf %54, %57 : vector<16x512xf32>
    %cst_27 = arith.constant dense<0.000000e+00> : vector<512xf32>
    %59 = vector.multi_reduction <add>, %58, %cst_27 [0] : vector<16x512xf32> to vector<512xf32>
    %60 = vector.shape_cast %59 : vector<512xf32> to vector<1x512xf32>
    %cst_28 = arith.constant 1.250000e-01 : f32
    %61 = vector.broadcast %cst_28 : f32 to vector<1x512xf32>
    %62 = arith.mulf %60, %61 : vector<1x512xf32>
    %63 = arith.mulf %58, %54 : vector<16x512xf32>
    %cst_29 = arith.constant dense<0.000000e+00> : vector<512xf32>
    %64 = vector.multi_reduction <add>, %63, %cst_29 [0] : vector<16x512xf32> to vector<512xf32>
    %65 = vector.shape_cast %64 : vector<512xf32> to vector<1x512xf32>
    %cst_30 = arith.constant 1.250000e-01 : f32
    %66 = vector.broadcast %cst_30 : f32 to vector<1x512xf32>
    %67 = arith.mulf %65, %66 : vector<1x512xf32>
    %68 = arith.mulf %62, %62 : vector<1x512xf32>
    %69 = arith.subf %67, %68 : vector<1x512xf32>
    %cst_31 = arith.constant 0.000000e+00 : f32
    %70 = vector.broadcast %cst_31 : f32 to vector<1x512xf32>
    %71 = arith.maximumf %69, %70 : vector<1x512xf32>
    %cst_32 = arith.constant 8.000000e-01 : f32
    %72 = vector.broadcast %cst_32 : f32 to vector<1x512xf32>
    %73 = arith.addf %71, %72 : vector<1x512xf32>
    %74 = math.rsqrt %73 : vector<1x512xf32>
    %75 = arith.mulf %55, %74 : vector<1x512xf32>
    %76 = arith.mulf %62, %75 : vector<1x512xf32>
    %77 = arith.subf %56, %76 : vector<1x512xf32>
    %78 = vector.broadcast %75 : vector<1x512xf32> to vector<16x512xf32>
    %79 = arith.mulf %54, %78 : vector<16x512xf32>
    %80 = vector.broadcast %77 : vector<1x512xf32> to vector<16x512xf32>
    %81 = arith.addf %79, %80 : vector<16x512xf32>
    %cst_33 = arith.constant 2.000000e-01 : f32
    %82 = vector.broadcast %cst_33 : f32 to vector<16x512xf32>
    %83 = arith.mulf %82, %81 : vector<16x512xf32>
    %84 = arith.maximumf %81, %83 : vector<16x512xf32>
    %c0_i32_34 = arith.constant 0 : i32
    %85 = tpu.memref_slice %arg17[%c0_i32_34] : memref<2x!tpu.dma_semaphore, #tpu.memory_space<semaphore_mem>> -> memref<1x!tpu.dma_semaphore, #tpu.memory_space<semaphore_mem>>
    %86 = tpu.memref_squeeze %85 : memref<1x!tpu.dma_semaphore, #tpu.memory_space<semaphore_mem>> -> memref<!tpu.dma_semaphore, #tpu.memory_space<semaphore_mem>>
    tpu.wait_dma2 semaphore(%86 : memref<!tpu.dma_semaphore, #tpu.memory_space<semaphore_mem>>) src(%arg9 : memref<512x1024xbf16, #tpu.memory_space<any>>) dst(%arg15 : memref<512x1024xbf16, #tpu.memory_space<vmem>>)
    %87 = arith.truncf %84 : vector<16x512xf32> to vector<16x512xbf16>
    %c0_35 = arith.constant 0 : index
    %c0_36 = arith.constant 0 : index
    %88 = vector.load %arg15[%c0_35, %c0_36] : memref<512x1024xbf16, #tpu.memory_space<vmem>>, vector<512x1024xbf16>
    %cst_37 = arith.constant dense<0.000000e+00> : vector<16x1024xf32>
    %89 = tpu.matmul %87, %88, %cst_37 {dimension_numbers = #tpu.dot_dimension_numbers<[1], [0], [0], [1], [0, 0, 1, 1], [], []>} : vector<16x512xbf16>, vector<512x1024xbf16>, vector<16x1024xf32> -> vector<16x1024xf32>
    %c0_38 = arith.constant 0 : index
    %c0_39 = arith.constant 0 : index
    %90 = vector.load %arg10[%c0_38, %c0_39] : memref<1x1024xf32, #tpu.memory_space<vmem>>, vector<1x1024xf32>
    %c0_40 = arith.constant 0 : index
    %c0_41 = arith.constant 0 : index
    %91 = vector.load %arg11[%c0_40, %c0_41] : memref<1x1024xf32, #tpu.memory_space<vmem>>, vector<1x1024xf32>
    %92 = vector.broadcast %10 : vector<16x1xf32> to vector<16x1024xf32>
    %93 = arith.mulf %89, %92 : vector<16x1024xf32>
    %cst_42 = arith.constant dense<0.000000e+00> : vector<1024xf32>
    %94 = vector.multi_reduction <add>, %93, %cst_42 [0] : vector<16x1024xf32> to vector<1024xf32>
    %95 = vector.shape_cast %94 : vector<1024xf32> to vector<1x1024xf32>
    %cst_43 = arith.constant 1.250000e-01 : f32
    %96 = vector.broadcast %cst_43 : f32 to vector<1x1024xf32>
    %97 = arith.mulf %95, %96 : vector<1x1024xf32>
    %98 = arith.mulf %93, %89 : vector<16x1024xf32>
    %cst_44 = arith.constant dense<0.000000e+00> : vector<1024xf32>
    %99 = vector.multi_reduction <add>, %98, %cst_44 [0] : vector<16x1024xf32> to vector<1024xf32>
    %100 = vector.shape_cast %99 : vector<1024xf32> to vector<1x1024xf32>
    %cst_45 = arith.constant 1.250000e-01 : f32
    %101 = vector.broadcast %cst_45 : f32 to vector<1x1024xf32>
    %102 = arith.mulf %100, %101 : vector<1x1024xf32>
    %103 = arith.mulf %97, %97 : vector<1x1024xf32>
    %104 = arith.subf %102, %103 : vector<1x1024xf32>
    %cst_46 = arith.constant 0.000000e+00 : f32
    %105 = vector.broadcast %cst_46 : f32 to vector<1x1024xf32>
    %106 = arith.maximumf %104, %105 : vector<1x1024xf32>
    %cst_47 = arith.constant 8.000000e-01 : f32
    %107 = vector.broadcast %cst_47 : f32 to vector<1x1024xf32>
    %108 = arith.addf %106, %107 : vector<1x1024xf32>
    %109 = math.rsqrt %108 : vector<1x1024xf32>
    %110 = arith.mulf %90, %109 : vector<1x1024xf32>
    %111 = arith.mulf %97, %110 : vector<1x1024xf32>
    %112 = arith.subf %91, %111 : vector<1x1024xf32>
    %113 = vector.broadcast %110 : vector<1x1024xf32> to vector<16x1024xf32>
    %114 = arith.mulf %89, %113 : vector<16x1024xf32>
    %115 = vector.broadcast %112 : vector<1x1024xf32> to vector<16x1024xf32>
    %116 = arith.addf %114, %115 : vector<16x1024xf32>
    %cst_48 = arith.constant 2.000000e-01 : f32
    %117 = vector.broadcast %cst_48 : f32 to vector<16x1024xf32>
    %118 = arith.mulf %117, %116 : vector<16x1024xf32>
    %119 = arith.maximumf %116, %118 : vector<16x1024xf32>
    %c1_i32_49 = arith.constant 1 : i32
    %120 = tpu.memref_slice %arg17[%c1_i32_49] : memref<2x!tpu.dma_semaphore, #tpu.memory_space<semaphore_mem>> -> memref<1x!tpu.dma_semaphore, #tpu.memory_space<semaphore_mem>>
    %121 = tpu.memref_squeeze %120 : memref<1x!tpu.dma_semaphore, #tpu.memory_space<semaphore_mem>> -> memref<!tpu.dma_semaphore, #tpu.memory_space<semaphore_mem>>
    tpu.wait_dma2 semaphore(%121 : memref<!tpu.dma_semaphore, #tpu.memory_space<semaphore_mem>>) src(%arg12 : memref<1024x1024xbf16, #tpu.memory_space<any>>) dst(%arg16 : memref<1024x1024xbf16, #tpu.memory_space<vmem>>)
    %122 = arith.truncf %119 : vector<16x1024xf32> to vector<16x1024xbf16>
    %c0_50 = arith.constant 0 : index
    %c0_51 = arith.constant 0 : index
    %123 = vector.load %arg16[%c0_50, %c0_51] : memref<1024x1024xbf16, #tpu.memory_space<vmem>>, vector<1024x1024xbf16>
    %cst_52 = arith.constant dense<0.000000e+00> : vector<16x1024xf32>
    %124 = tpu.matmul %122, %123, %cst_52 {dimension_numbers = #tpu.dot_dimension_numbers<[1], [0], [0], [1], [0, 0, 1, 1], [], []>} : vector<16x1024xbf16>, vector<1024x1024xbf16>, vector<16x1024xf32> -> vector<16x1024xf32>
    %c0_53 = arith.constant 0 : index
    %c0_54 = arith.constant 0 : index
    %125 = vector.load %arg13[%c0_53, %c0_54] : memref<1x1024xf32, #tpu.memory_space<vmem>>, vector<1x1024xf32>
    %126 = vector.broadcast %125 : vector<1x1024xf32> to vector<16x1024xf32>
    %127 = arith.addf %124, %126 : vector<16x1024xf32>
    %128 = math.tanh %127 : vector<16x1024xf32>
    %c0_55 = arith.constant 0 : index
    %c0_56 = arith.constant 0 : index
    %129 = vector.load %arg14[%c0_55, %c0_56] : memref<16x1024xf32, #tpu.memory_space<vmem>>, vector<16x1024xf32>
    tpu.vector_store %arg14[%c0_55, %c0_56], %128 {strides = array<i32>} : memref<16x1024xf32, #tpu.memory_space<vmem>>, vector<16x1024xf32>,
    return
  }
}

</mosaic_0001>

<bundles_post_ra>
// kernel: tpu_custom_call.1
= control target key start
LH: loop header
LB: loop body
LE: loop exit
PB: predicated region body
PF: predicated region fallthrough
CT: control target
= control target key end

     0   :  { %19 = vsyncpa [#allocation6], 0  ;;  %s9596_s0 = inlined_call_operand.hbm [shape: f32[16,32], index: 0, kind: input, shape index: {}]   ;;  %s9597_s1 = inlined_call_operand.hbm [shape: bf16[32,128], index: 1, kind: input, shape index: {}]   ;;  %s9598_s2 = inlined_call_operand.hbm [shape: f32[1,128], index: 2, kind: input, shape index: {}]   ;;  %s9599_s3 = inlined_call_operand.hbm [shape: bf16[128,256], index: 3, kind: input, shape index: {}]   ;;  %s9600_s4 = inlined_call_operand.hbm [shape: f32[1,256], index: 4, kind: input, shape index: {}]   ;;  %s9601_s5 = inlined_call_operand.hbm [shape: f32[1,256], index: 5, kind: input, shape index: {}]   ;;  %s9602_s6 = inlined_call_operand.hbm [shape: bf16[256,512], index: 6, kind: input, shape index: {}]   ;;  %s9603_s7 = inlined_call_operand.hbm [shape: f32[1,512], index: 7, kind: input, shape index: {}]   ;;  %s9604_s8 = inlined_call_operand.hbm [shape: f32[1,512], index: 8, kind: input, shape index: {}]   ;;  %s9605_s9 = inlined_call_operand.hbm [shape: bf16[512,1024], index: 9, kind: input, shape index: {}]   ;;  %s9606_s10 = inlined_call_operand.hbm [shape: f32[1,1024], index: 10, kind: input, shape index: {}]   ;;  %s9607_s11 = inlined_call_operand.hbm [shape: f32[1,1024], index: 11, kind: input, shape index: {}]   ;;  %s9608_s12 = inlined_call_operand.hbm [shape: bf16[1024,1024], index: 12, kind: input, shape index: {}]   ;;  %s9609_s13 = inlined_call_operand.hbm [shape: f32[1,1024], index: 13, kind: input, shape index: {}]   ;;  %s9610_s14 = inlined_call_operand.hbm [shape: f32[16,1024], index: 14, kind: output, shape index: {}]  }
   0x1   :  { %20 = vsyncpa [#allocation9], 0 }
   0x2   :  { %21 = vsyncpa [#allocation12], 0 }
   0x3   :  { %22 = vsyncpa [#allocation15], 0 }
   0x4   :  { %23 = vsyncpa [#allocation18], 0 }
   0x5   :  { %24 = vsyncpa [#allocation21], 0 }
   0x6   :  { %25 = vsyncpa [#allocation24], 0 }
   0x7   :  { %26 = vsyncpa [#allocation7], 0  ;;  %s8919_s29 = smov [#allocation8]  }
   0x8   :  { %s44_s30 = sshll.u32 %s8919_s29, 4  ;;  %s45_s30 = int_to_ptr.vmem [resolvable:$true] %s44_s30 }
   0x9   :  { %s8607_s15 = scalar_lea.vmem %s45_s30, 256  ;;  %p8612_p1 = scmp.lt.s32.totalorder %s45_s30, %s45_s30 }
   0xa   :  { %p8608_p0 = scmp.ne.s32.totalorder %s45_s30, %s8607_s15  ;;  %p8613_p2 = scmp.lt.s32.totalorder %s8607_s15, %s8607_s15 }
   0xc   :  { %p8614_p3 = por %p8613_p2, %p8612_p1 }
   0xe   :  { %p8615_p4 = pnand %p8614_p3, %p8608_p0 }
  0x10   :  { %8618 = shalt.err (!%p8615_p4)
}
  0x11   :  { %s8920_s16 = smov 64   ;;  %s8921_s17 = smov 4  }
  0x12   :  { %50 = dma.hbm_to_vmem [thread:$0]  %s9597_s1, 256, %s45_s30, [#allocation9], %s8920_s16, %s8920_s16, %s8921_s17  }
  0x13   :  { %s8922_s20 = smov [#allocation11]   ;;  %s8923_s22 = smov [#allocation14]  }
  0x14   :  { %s66_s21 = sshll.u32 %s8922_s20, 4  ;;  %s89_s23 = sshll.u32 %s8923_s22, 4  ;;  %s67_s21 = int_to_ptr.vmem [resolvable:$true] %s66_s21  ;;  %s90_s23 = int_to_ptr.vmem [resolvable:$true] %s89_s23 }
  0x15   :  { %s8627_s24 = scalar_lea.vmem %s67_s21, 2048  ;;  %p8632_p6 = scmp.lt.s32.totalorder %s67_s21, %s67_s21 }
  0x16   :  { %p8628_p5 = scmp.ne.s32.totalorder %s67_s21, %s8627_s24  ;;  %p8633_p7 = scmp.lt.s32.totalorder %s8627_s24, %s8627_s24 }
  0x18   :  { %p8634_p8 = por %p8633_p7, %p8632_p6 }
  0x1a   :  { %p8635_p9 = pnand %p8634_p8, %p8628_p5 }
  0x1c   :  { %8638 = shalt.err (!%p8635_p9)
}
  0x1d   :  { %s8924_s25 = smov 128   ;;  %s8925_s26 = smov 8  }
  0x1e   :  { %72 = dma.hbm_to_vmem [thread:$0]  %s9599_s3, 2048, %s67_s21, [#allocation12], %s8924_s25, %s8924_s25, %s8925_s26  }
  0x1f   :  { %s8647_s1 = scalar_lea.vmem %s90_s23, 32  ;;  %p8652_p11 = scmp.lt.s32.totalorder %s90_s23, %s90_s23 }
  0x20   :  { %p8648_p10 = scmp.ne.s32.totalorder %s90_s23, %s8647_s1  ;;  %p8653_p12 = scmp.lt.s32.totalorder %s8647_s1, %s8647_s1 }
  0x22   :  { %p8654_p13 = por %p8653_p12, %p8652_p11 }
  0x24   :  { %p8655_p0 = pnand %p8654_p13, %p8648_p10 }
  0x26   :  { %8658 = shalt.err (!%p8655_p0)
}
  0x27   :  { %92 = dma.hbm_to_vmem [thread:$0]  %s9601_s5, 32, %s90_s23, [#allocation15]  }
  0x28   :  { %s8926_s15 = smov [#allocation17]   ;;  %s8927_s18 = smov [#allocation20]  }
  0x29   :  { %s111_s17 = sshll.u32 %s8926_s15, 4  ;;  %s131_s19 = sshll.u32 %s8927_s18, 4  ;;  %s112_s17 = int_to_ptr.vmem [resolvable:$true] %s111_s17  ;;  %s132_s19 = int_to_ptr.vmem [resolvable:$true] %s131_s19 }
  0x2a   :  { %s8667_s20 = scalar_lea.vmem %s112_s17, 64  ;;  %p8672_p2 = scmp.lt.s32.totalorder %s112_s17, %s112_s17 }
  0x2b   :  { %p8668_p1 = scmp.ne.s32.totalorder %s112_s17, %s8667_s20  ;;  %p8673_p3 = scmp.lt.s32.totalorder %s8667_s20, %s8667_s20 }
  0x2d   :  { %p8674_p4 = por %p8673_p3, %p8672_p2 }
  0x2f   :  { %p8675_p5 = pnand %p8674_p4, %p8668_p1 }
  0x31   :  { %8678 = shalt.err (!%p8675_p5)
}
  0x32   :  { %114 = dma.hbm_to_vmem [thread:$0]  %s9603_s7, 64, %s112_s17, [#allocation18]  }
  0x33   :  { %s8687_s22 = scalar_lea.vmem %s132_s19, 128  ;;  %p8692_p7 = scmp.lt.s32.totalorder %s132_s19, %s132_s19 }
  0x34   :  { %p8688_p6 = scmp.ne.s32.totalorder %s132_s19, %s8687_s22  ;;  %p8693_p8 = scmp.lt.s32.totalorder %s8687_s22, %s8687_s22 }
  0x36   :  { %p8694_p9 = por %p8693_p8, %p8692_p7 }
  0x38   :  { %p8695_p10 = pnand %p8694_p9, %p8688_p6 }
  0x3a   :  { %8698 = shalt.err (!%p8695_p10)
}
  0x3b   :  { %134 = dma.hbm_to_vmem [thread:$0]  %s9606_s10, 128, %s132_s19, [#allocation21]  }
  0x3c   :  { %s8928_s24 = smov [#allocation5]   ;;  %s8929_s28 = smov [#allocation10]  }
  0x3d   :  { %s32_s27 = sshll.u32 %s8928_s24, 4  ;;  %s57_s1 = sshll.u32 %s8929_s28, 4  ;;  %s33_s27 = int_to_ptr.vmem [resolvable:$true] %s32_s27  ;;  %s58_s1 = int_to_ptr.vmem [resolvable:$true] %s57_s1 }
  0x3e   :  { %s8707_s29 = scalar_lea.vmem %s33_s27, 256  ;;  %p8712_p12 = scmp.lt.s32.totalorder %s33_s27, %s33_s27 }
  0x3f   :  { %p8708_p11 = scmp.ne.s32.totalorder %s33_s27, %s8707_s29  ;;  %p8713_p13 = scmp.lt.s32.totalorder %s8707_s29, %s8707_s29 }
  0x41   :  { %p8714_p0 = por %p8713_p13, %p8712_p12 }
  0x43   :  { %p8715_p1 = pnand %p8714_p0, %p8708_p11 }
  0x45   :  { %8718 = shalt.err (!%p8715_p1)
}
  0x46   :  { %38 = dma.hbm_to_vmem [thread:$0]  %s9596_s0, 256, %s33_s27, [#allocation6], %s8924_s25, %s8924_s25, %s8925_s26  }
  0x47   :  { %s8727_s10 = scalar_lea.vmem %s58_s1, 16  ;;  %s8731_s15 = scalar_lea.vmem %s58_s1, 32 }
  0x48   :  { %p8728_p2 = scmp.ne.s32.totalorder %s58_s1, %s8727_s10  ;;  %p8732_p3 = scmp.lt.s32.totalorder %s58_s1, %s58_s1 }
  0x49   :  { %p8733_p4 = scmp.lt.s32.totalorder %s8731_s15, %s8727_s10 }
  0x4b   :  { %p8734_p5 = por %p8733_p4, %p8732_p3 }
  0x4d   :  { %p8735_p6 = pnand %p8734_p5, %p8728_p2 }
  0x4f   :  { %8738 = shalt.err (!%p8735_p6)
}
  0x50   :  { %60 = dma.hbm_to_vmem [thread:$0]  %s9598_s2, 16, %s58_s1, [#allocation9]  }
  0x51   :  { %s8930_s19 = smov [#allocation13]   ;;  %s8931_s3 = smov [#allocation16]  }
  0x52   :  { %s79_s20 = sshll.u32 %s8930_s19, 4  ;;  %s98_s21 = sshll.u32 %s8931_s3, 4  ;;  %s80_s20 = int_to_ptr.vmem [resolvable:$true] %s79_s20  ;;  %s99_s21 = int_to_ptr.vmem [resolvable:$true] %s98_s21 }
  0x53   :  { %s8747_s22 = scalar_lea.vmem %s80_s20, 32  ;;  %p8752_p8 = scmp.lt.s32.totalorder %s80_s20, %s80_s20 }
  0x54   :  { %p8748_p7 = scmp.ne.s32.totalorder %s80_s20, %s8747_s22  ;;  %p8753_p9 = scmp.lt.s32.totalorder %s8747_s22, %s8747_s22 }
  0x56   :  { %p8754_p10 = por %p8753_p9, %p8752_p8 }
  0x58   :  { %p8755_p11 = pnand %p8754_p10, %p8748_p7 }
  0x5a   :  { %8758 = shalt.err (!%p8755_p11)
}
  0x5b   :  { %82 = dma.hbm_to_vmem [thread:$0]  %s9600_s4, 32, %s80_s20, [#allocation12]  }
  0x5c   :  { %s8767_s26 = scalar_lea.vmem %s99_s21, 8192  ;;  %p8772_p13 = scmp.lt.s32.totalorder %s99_s21, %s99_s21 }
  0x5d   :  { %p8768_p12 = scmp.ne.s32.totalorder %s99_s21, %s8767_s26  ;;  %p8773_p0 = scmp.lt.s32.totalorder %s8767_s26, %s8767_s26 }
  0x5f   :  { %p8774_p1 = por %p8773_p0, %p8772_p13 }
  0x61   :  { %p8775_p2 = pnand %p8774_p1, %p8768_p12 }
  0x63   :  { %8778 = shalt.err (!%p8775_p2)
}
  0x64   :  { %s8932_s2 = smov 256   ;;  %s8933_s5 = smov 16  }
  0x65   :  { %104 = dma.hbm_to_vmem [thread:$0]  %s9602_s6, 8192, %s99_s21, [#allocation15], %s8932_s2, %s8932_s2, %s8933_s5  }
  0x66   :  { %s8934_s27 = smov [#allocation19]   ;;  %s8935_s1 = smov [#allocation22]  }
  0x67   :  { %s121_s28 = sshll.u32 %s8934_s27, 4  ;;  %s141_s29 = sshll.u32 %s8935_s1, 4  ;;  %s122_s28 = int_to_ptr.vmem [resolvable:$true] %s121_s28  ;;  %s142_s29 = int_to_ptr.vmem [resolvable:$true] %s141_s29 }
  0x68   :  { %s8787_s4 = scalar_lea.vmem %s122_s28, 64  ;;  %p8792_p4 = scmp.lt.s32.totalorder %s122_s28, %s122_s28 }
  0x69   :  { %p8788_p3 = scmp.ne.s32.totalorder %s122_s28, %s8787_s4  ;;  %p8793_p5 = scmp.lt.s32.totalorder %s8787_s4, %s8787_s4 }
  0x6b   :  { %p8794_p6 = por %p8793_p5, %p8792_p4 }
  0x6d   :  { %p8795_p7 = pnand %p8794_p6, %p8788_p3 }
  0x6f   :  { %8798 = shalt.err (!%p8795_p7)
}
  0x70   :  { %124 = dma.hbm_to_vmem [thread:$0]  %s9604_s8, 64, %s122_s28, [#allocation18]  }
  0x71   :  { %s8807_s10 = scalar_lea.vmem %s142_s29, 128  ;;  %p8812_p9 = scmp.lt.s32.totalorder %s142_s29, %s142_s29 }
  0x72   :  { %p8808_p8 = scmp.ne.s32.totalorder %s142_s29, %s8807_s10  ;;  %p8813_p10 = scmp.lt.s32.totalorder %s8807_s10, %s8807_s10 }
  0x74   :  { %p8814_p11 = por %p8813_p10, %p8812_p9 }
  0x76   :  { %p8815_p12 = pnand %p8814_p11, %p8808_p8 }
  0x78   :  { %8818 = shalt.err (!%p8815_p12)
}
  0x79   :  { %144 = dma.hbm_to_vmem [thread:$0]  %s9607_s11, 128, %s142_s29, [#allocation21]  }
  0x7a   :  { %s8936_s17 = smov [#allocation23]  }
  0x7b   :  { %s151_s18 = sshll.u32 %s8936_s17, 4  ;;  %s152_s18 = int_to_ptr.vmem [resolvable:$true] %s151_s18 }
  0x7c   :  { %s8827_s19 = scalar_lea.vmem %s152_s18, 128  ;;  %p8832_p0 = scmp.lt.s32.totalorder %s152_s18, %s152_s18 }
  0x7d   :  { %p8828_p13 = scmp.ne.s32.totalorder %s152_s18, %s8827_s19  ;;  %p8833_p1 = scmp.lt.s32.totalorder %s8827_s19, %s8827_s19 }
  0x7f   :  { %p8834_p2 = por %p8833_p1, %p8832_p0 }
  0x81   :  { %p8835_p3 = pnand %p8834_p2, %p8828_p13 }
  0x83   :  { %8838 = shalt.err (!%p8835_p3)
}
  0x84   :  { %154 = dma.hbm_to_vmem [thread:$0]  %s9609_s13, 128, %s152_s18, [#allocation24]  }
  0x85   :  { %8899 = dma.done.wait [#allocation6], 256  }
  0x86   :  { %8900 = vsyncadd [#allocation6], 4294967040 }
  0x87   :  { %8901 = dma.done.wait [#allocation9], 272  }
  0x88   :  { %8902 = vsyncadd [#allocation9], 4294967024 }
  0x89   :  { %8903 = dma.done.wait [#allocation12], 2080  }
  0x8a   :  { %8904 = vsyncadd [#allocation12], 4294965216 }
  0x8b   :  { %8905 = dma.done.wait [#allocation15], 8224  }
  0x8c   :  { %8906 = vsyncadd [#allocation15], 4294959072 }
  0x8d   :  { %8907 = dma.done.wait [#allocation18], 128  }
  0x8e   :  { %8908 = vsyncadd [#allocation18], 4294967168 }
  0x8f   :  { %8909 = dma.done.wait [#allocation21], 256  }
  0x90   :  { %8910 = vsyncadd [#allocation21], 4294967040 }
  0x91   :  { %8911 = dma.done.wait [#allocation24], 128  }
  0x92   :  { %8912 = vsyncadd [#allocation24], 4294967168  ;;  %v8937_v0 = vmov 0.0   ;;  %vm8938_vm0 = vmmov 0   ;;  %v8416_v1 = vld [vmem:[#allocation8 + $0x8] sm:$0xff]   ;;  %v8417_v2 = vld [vmem:[#allocation8] sm:$0xff]  }
  0x93   :  { %8382 = vmatprep.subr.bf16.mxu0 %v8937_v0  ;;  %8386 = vmatprep.mubr.msk.bf16.mxu0 %vm8938_vm0, %v8937_v0  ;;  %v215_v3 = vld [vmem:[#allocation5] sm:$0xff]  ;;  %v216_v4 = vld [vmem:[#allocation5 + $0x8] sm:$0xff]  ;;  %v8420_v6 = vld [vmem:[#allocation11 + $0x70] ss:$8 sps:$4 sm:$0xff]   ;;  %vm250_vm1 = vcmask 261120   ;;  %v8939_v22 = vmov 0  }
  0x94   :  { %8383 = vmatpush3.bf16.msra.mxu0 %v8416_v1  ;;  %v8418_v5 = vld [vmem:[#allocation11 + $0x74] ss:$8 sps:$4 sm:$0xff]   ;;  %v8421_v7 = vld [vmem:[#allocation11 + $0x64] ss:$8 sps:$4 sm:$0xff]   ;;  %v217_v8 = vpack.c.bf16 %v216_v4, %v215_v3  ;;  %v8423_v9 = vld [vmem:[#allocation11 + $0x60] ss:$8 sps:$4 sm:$0xff]   ;;  %428 = vmatprep.mubr.bf16.mxu1 %v8939_v22 }
  0x95   :  { %8384 = vmatprep.subr.bf16.mxu0 %v8937_v0  ;;  %396 = vmatprep.subr.bf16.mxu1 %v8418_v5  ;;  %v8424_v10 = vld [vmem:[#allocation11 + $0x54] ss:$8 sps:$4 sm:$0xff]   ;;  %v8426_v11 = vld [vmem:[#allocation11 + $0x50] ss:$8 sps:$4 sm:$0xff]   ;;  %v8427_v12 = vld [vmem:[#allocation11 + $0x44] ss:$8 sps:$4 sm:$0xff]  }
  0x96   :  { %397 = vmatpush1.bf16.msra.mxu1 %v8420_v6  ;;  %v8429_v13 = vld [vmem:[#allocation11 + $0x40] ss:$8 sps:$4 sm:$0xff]   ;;  %v8430_v14 = vld [vmem:[#allocation11 + $0x34] ss:$8 sps:$4 sm:$0xff]   ;;  %v8432_v15 = vld [vmem:[#allocation11 + $0x30] ss:$8 sps:$4 sm:$0xff]  }
  0x97   :  { %398 = vmatprep.subr.bf16.mxu1 %v8421_v7  ;;  %v8433_v16 = vld [vmem:[#allocation11 + $0x24] ss:$8 sps:$4 sm:$0xff]   ;;  %v8435_v17 = vld [vmem:[#allocation11 + $0x20] ss:$8 sps:$4 sm:$0xff]   ;;  %v8436_v18 = vld [vmem:[#allocation11 + $0x14] ss:$8 sps:$4 sm:$0xff]  }
  0x98   :  { %8385 = vmatpush3.bf16.msra.mxu0 %v8417_v2  ;;  %v8438_v19 = vld [vmem:[#allocation11 + $0x10] ss:$8 sps:$4 sm:$0xff]   ;;  %v8439_v20 = vld [vmem:[#allocation11 + $0x4] ss:$8 sps:$4 sm:$0xff]   ;;  %v8441_v21 = vld [vmem:[#allocation11] ss:$8 sps:$4 sm:$0xff]  }
  0x99   :  { %v7525_v23 = vld [vmem:[#allocation10] ss:$0 sm:$0xff]  ;;  %v8444_v35 = vld [vmem:[#allocation16 + $0xe4] ss:$16 sps:$4 sm:$0xff]   ;;  %v8447_v36 = vld [vmem:[#allocation16 + $0xec] ss:$16 sps:$4 sm:$0xff]  }
  0x9a   :  { %399 = vmatpush1.bf16.msra.mxu1 %v8423_v9  ;;  %v8442_v37 = vld [vmem:[#allocation16 + $0xe0] ss:$16 sps:$4 sm:$0xff]   ;;  %v8445_v38 = vld [vmem:[#allocation16 + $0xe8] ss:$16 sps:$4 sm:$0xff]   ;;  %955 = vmatprep.subr.bf16.mxu0 %v8444_v35  ;;  %v8450_v39 = vld [vmem:[#allocation16 + $0xc4] ss:$16 sps:$4 sm:$0xff]  }
  0x9b   :  { %8387 = vmatmul.mubr.msk.bf16.vlgmr.msra.gmra.mxu0 %vm250_vm1, %v217_v8  ;;  %400 = vmatprep.subr.bf16.mxu1 %v8424_v10  ;;  %v8453_v40 = vld [vmem:[#allocation16 + $0xcc] ss:$16 sps:$4 sm:$0xff]   ;;  %v8448_v41 = vld [vmem:[#allocation16 + $0xc0] ss:$16 sps:$4 sm:$0xff]   ;;  %v8451_v42 = vld [vmem:[#allocation16 + $0xc8] ss:$16 sps:$4 sm:$0xff]  }
  0x9c   :  { %956 = vmatpush1.bf16.msra.mxu0 %v8442_v37  ;;  %v8456_v43 = vld [vmem:[#allocation16 + $0xa4] ss:$16 sps:$4 sm:$0xff]   ;;  %v8459_v44 = vld [vmem:[#allocation16 + $0xac] ss:$16 sps:$4 sm:$0xff]   ;;  %v8454_v45 = vld [vmem:[#allocation16 + $0xa0] ss:$16 sps:$4 sm:$0xff]  }
  0x9d   :  { %957 = vmatprep.subr.bf16.mxu0 %v8450_v39  ;;  %v8457_v46 = vld [vmem:[#allocation16 + $0xa8] ss:$16 sps:$4 sm:$0xff]   ;;  %v8462_v47 = vld [vmem:[#allocation16 + $0x84] ss:$16 sps:$4 sm:$0xff]   ;;  %v8465_v48 = vld [vmem:[#allocation16 + $0x8c] ss:$16 sps:$4 sm:$0xff]  }
  0x9e   :  { %401 = vmatpush1.bf16.msra.mxu1 %v8426_v11  ;;  %v8460_v49 = vld [vmem:[#allocation16 + $0x80] ss:$16 sps:$4 sm:$0xff]   ;;  %v8463_v50 = vld [vmem:[#allocation16 + $0x88] ss:$16 sps:$4 sm:$0xff]   ;;  %v8468_v51 = vld [vmem:[#allocation16 + $0x64] ss:$16 sps:$4 sm:$0xff]  }
  0x9f   :  { %402 = vmatprep.subr.bf16.mxu1 %v8427_v12  ;;  %v8471_v52 = vld [vmem:[#allocation16 + $0x6c] ss:$16 sps:$4 sm:$0xff]   ;;  %v8466_v53 = vld [vmem:[#allocation16 + $0x60] ss:$16 sps:$4 sm:$0xff]   ;;  %v8469_v54 = vld [vmem:[#allocation16 + $0x68] ss:$16 sps:$4 sm:$0xff]  }
  0xa0   :  { %958 = vmatpush1.bf16.msra.mxu0 %v8448_v41  ;;  %v8474_v55 = vld [vmem:[#allocation16 + $0x44] ss:$16 sps:$4 sm:$0xff]   ;;  %v8477_v56 = vld [vmem:[#allocation16 + $0x4c] ss:$16 sps:$4 sm:$0xff]   ;;  %v8472_v57 = vld [vmem:[#allocation16 + $0x40] ss:$16 sps:$4 sm:$0xff]  }
  0xa1   :  { %959 = vmatprep.subr.bf16.mxu0 %v8456_v43  ;;  %v8475_v58 = vld [vmem:[#allocation16 + $0x48] ss:$16 sps:$4 sm:$0xff]   ;;  %v8480_v59 = vld [vmem:[#allocation16 + $0x24] ss:$16 sps:$4 sm:$0xff]   ;;  %v8483_v60 = vld [vmem:[#allocation16 + $0x2c] ss:$16 sps:$4 sm:$0xff]  }
  0xa2   :  { %403 = vmatpush1.bf16.msra.mxu1 %v8429_v13  ;;  %v8478_v61 = vld [vmem:[#allocation16 + $0x20] ss:$16 sps:$4 sm:$0xff]   ;;  %v8481_v62 = vld [vmem:[#allocation16 + $0x28] ss:$16 sps:$4 sm:$0xff]   ;;  %v8486_v63 = vld [vmem:[#allocation16 + $0x4] ss:$16 sps:$4 sm:$0xff]  }
  0xa3   :  { %404 = vmatprep.subr.bf16.mxu1 %v8430_v14  ;;  %v8489_v0 = vld [vmem:[#allocation16 + $0xc] ss:$16 sps:$4 sm:$0xff]   ;;  %v8484_v1 = vld [vmem:[#allocation16] ss:$16 sps:$4 sm:$0xff]   ;;  %v8487_v2 = vld [vmem:[#allocation16 + $0x8] ss:$16 sps:$4 sm:$0xff]  }
  0xa4   :  { %960 = vmatpush1.bf16.msra.mxu0 %v8454_v45  ;;  %v8492_v3 = vld [vmem:[#allocation16 + $0x1e4] ss:$16 sps:$4 sm:$0xff]   ;;  %v8495_v4 = vld [vmem:[#allocation16 + $0x1ec] ss:$16 sps:$4 sm:$0xff]   ;;  %v8490_v5 = vld [vmem:[#allocation16 + $0x1e0] ss:$16 sps:$4 sm:$0xff]  }
  0xa5   :  { %961 = vmatprep.subr.bf16.mxu0 %v8462_v47  ;;  %v8493_v6 = vld [vmem:[#allocation16 + $0x1e8] ss:$16 sps:$4 sm:$0xff]   ;;  %v8498_v7 = vld [vmem:[#allocation16 + $0x1c4] ss:$16 sps:$4 sm:$0xff]   ;;  %v8501_v8 = vld [vmem:[#allocation16 + $0x1cc] ss:$16 sps:$4 sm:$0xff]  }
  0xa6   :  { %405 = vmatpush1.bf16.msra.mxu1 %v8432_v15  ;;  %v8496_v9 = vld [vmem:[#allocation16 + $0x1c0] ss:$16 sps:$4 sm:$0xff]   ;;  %v8499_v10 = vld [vmem:[#allocation16 + $0x1c8] ss:$16 sps:$4 sm:$0xff]   ;;  %v8504_v11 = vld [vmem:[#allocation16 + $0x1a4] ss:$16 sps:$4 sm:$0xff]  }
  0xa7   :  { %406 = vmatprep.subr.bf16.mxu1 %v8433_v16  ;;  %v8507_v12 = vld [vmem:[#allocation16 + $0x1ac] ss:$16 sps:$4 sm:$0xff]   ;;  %v8502_v13 = vld [vmem:[#allocation16 + $0x1a0] ss:$16 sps:$4 sm:$0xff]   ;;  %v8505_v14 = vld [vmem:[#allocation16 + $0x1a8] ss:$16 sps:$4 sm:$0xff]  }
  0xa8   :  { %962 = vmatpush1.bf16.msra.mxu0 %v8460_v49  ;;  %v8510_v15 = vld [vmem:[#allocation16 + $0x184] ss:$16 sps:$4 sm:$0xff]   ;;  %v8513_v16 = vld [vmem:[#allocation16 + $0x18c] ss:$16 sps:$4 sm:$0xff]   ;;  %v8517_v22 = vld [vmem:[#allocation16 + $0x168] ss:$16 sps:$4 sm:$0xff]  }
  0xa9   :  { %963 = vmatprep.subr.bf16.mxu0 %v8468_v51  ;;  %s8941_s11 = smov [#allocation2]   ;;  %s8942_s3 = smov [#allocation3]  }
  0xaa   :  { %407 = vmatpush1.bf16.msra.mxu1 %v8435_v17  ;;  %v8508_v17 = vld [vmem:[#allocation16 + $0x180] ss:$16 sps:$4 sm:$0xff]   ;;  %s199_s13 = sshll.u32 %s8941_s11, 4  ;;  %s211_s21 = sshll.u32 %s8942_s3, 4  ;;  %s200_s13 = int_to_ptr.vmem [resolvable:$true] %s199_s13  ;;  %s212_s21 = int_to_ptr.vmem [resolvable:$true] %s211_s21 }
  0xab   :  { %408 = vmatprep.subr.bf16.mxu1 %v8436_v18  ;;  %v8511_v18 = vld [vmem:[#allocation16 + $0x188] ss:$16 sps:$4 sm:$0xff]   ;;  %s8847_s22 = scalar_lea.vmem %s200_s13, 32768  ;;  %p8852_p5 = scmp.lt.s32.totalorder %s200_s13, %s200_s13 }
  0xac   :  { %964 = vmatpush1.bf16.msra.mxu0 %v8466_v53  ;;  %p8848_p4 = scmp.ne.s32.totalorder %s200_s13, %s8847_s22  ;;  %p8853_p6 = scmp.lt.s32.totalorder %s8847_s22, %s8847_s22 }
  0xad   :  { %965 = vmatprep.subr.bf16.mxu0 %v8474_v55 }
  0xae   :  { %409 = vmatpush1.bf16.msra.mxu1 %v8438_v19  ;;  %v8516_v19 = vld [vmem:[#allocation16 + $0x164] ss:$16 sps:$4 sm:$0xff]   ;;  %p8854_p7 = por %p8853_p6, %p8852_p5 }
  0xaf   :  { %410 = vmatprep.subr.bf16.mxu1 %v8439_v20  ;;  %v8519_v20 = vld [vmem:[#allocation16 + $0x16c] ss:$16 sps:$4 sm:$0xff]  }
  0xb0   :  { %966 = vmatpush1.bf16.msra.mxu0 %v8472_v57  ;;  %p8855_p8 = pnand %p8854_p7, %p8848_p4 }
  0xb1   :  { %967 = vmatprep.subr.bf16.mxu0 %v8480_v59 }
  0xb2   :  { %411 = vmatpush1.bf16.msra.mxu1 %v8441_v21  ;;  %v8514_v21 = vld [vmem:[#allocation16 + $0x160] ss:$16 sps:$4 sm:$0xff]  }
  0xb3   :  { %998 = vmatprep.subr.bf16.mxu1 %v8447_v36 }
  0xb4   :  { %968 = vmatpush1.bf16.msra.mxu0 %v8478_v61 }
  0xb5   :  { %969 = vmatprep.subr.bf16.mxu0 %v8486_v63 }
  0xb8   :  { %970 = vmatpush1.bf16.msra.mxu0 %v8484_v1 }
  0xb9   :  { %971 = vmatprep.subr.bf16.mxu0 %v8492_v3 }
  0xbc   :  { %972 = vmatpush2.bf16.msra.mxu0 %v8490_v5 }
  0xbd   :  { %973 = vmatprep.subr.bf16.mxu0 %v8498_v7 }
  0xc0   :  { %974 = vmatpush2.bf16.msra.mxu0 %v8496_v9 }
  0xc1   :  { %975 = vmatprep.subr.bf16.mxu0 %v8504_v11 }
  0xc4   :  { %976 = vmatpush2.bf16.msra.mxu0 %v8502_v13 }
  0xc5   :  { %977 = vmatprep.subr.bf16.mxu0 %v8510_v15 }
  0xc8   :  { %978 = vmatpush2.bf16.msra.mxu0 %v8508_v17 }
  0xc9   :  { %979 = vmatprep.subr.bf16.mxu0 %v8516_v19 }
  0xcc   :  { %980 = vmatpush2.bf16.msra.mxu0 %v8514_v21  ;;  %v8940_v21 = vmov 1966171168  }
 0x15b   :  { %v288_v24 = vpop.f32.mrf.mxu0 }
 0x15c   :  { %v289_v25 = vadd.f32 %v7525_v23, %v288_v24  ;;  %v8525_v24 = vld [vmem:[#allocation16 + $0x14c] ss:$16 sps:$4 sm:$0xff]  }
 0x15d   :  { %v8388_v26 = vpop.f32.mrf.mxu0 }
 0x15e   :  { %v295_v28 = vmul.f32 0.2, %v289_v25  ;;  %v8523_v26 = vld [vmem:[#allocation16 + $0x148] ss:$16 sps:$4 sm:$0xff]  }
 0x15f   :  { %v291_v27 = vpop.f32.mrf.mxu0 }
 0x160   :  { %v292_v29 = vadd.f32 %v7525_v23, %v291_v27  ;;  %v297_v32 = vmax.f32 %v289_v25, %v295_v28  ;;  %v8522_v23 = vld [vmem:[#allocation16 + $0x144] ss:$16 sps:$4 sm:$0xff]   ;;  %v8520_v25 = vld [vmem:[#allocation16 + $0x140] ss:$16 sps:$4 sm:$0xff]   ;;  %v8531_v28 = vld [vmem:[#allocation16 + $0x12c] ss:$16 sps:$4 sm:$0xff]  }
 0x161   :  { %v8389_v30 = vpop.f32.mrf.mxu0  ;;  %981 = vmatprep.subr.bf16.mxu0 %v8522_v23  ;;  %v8528_v27 = vld [vmem:[#allocation16 + $0x124] ss:$16 sps:$4 sm:$0xff]   ;;  %v497_v23 = vlaneseq }
 0x162   :  { %v296_v31 = vmul.f32 0.2, %v292_v29  ;;  %982 = vmatpush2.bf16.msra.mxu0 %v8520_v25  ;;  %v8529_v30 = vld [vmem:[#allocation16 + $0x128] ss:$16 sps:$4 sm:$0xff]  }
 0x163   :  { %983 = vmatprep.subr.bf16.mxu0 %v8528_v27  ;;  %v9082_v25 = vshrl.u32 %v497_v23, 7 }
 0x164   :  { %v298_v33 = vmax.f32 %v292_v29, %v296_v31  ;;  %v8526_v29 = vld [vmem:[#allocation16 + $0x120] ss:$16 sps:$4 sm:$0xff]  }
 0x165   :  { %v8532_v31 = vld [vmem:[#allocation16 + $0x100] ss:$16 sps:$4 sm:$0xff]  }
 0x166   :  { %v299_v34 = vpack.c.bf16 %v298_v33, %v297_v32  ;;  %984 = vmatpush2.bf16.msra.mxu0 %v8526_v29  ;;  %v8534_v32 = vld [vmem:[#allocation16 + $0x104] ss:$16 sps:$4 sm:$0xff]   ;;  %v8535_v33 = vld [vmem:[#allocation16 + $0x108] ss:$16 sps:$4 sm:$0xff]  }
 0x167   :  { %985 = vmatprep.subr.bf16.mxu0 %v8534_v32 }
 0x168   :  { %429 = vmatmul.mubr.bf16.vlgmr.msra.gmra.mxu1 %v299_v34  ;;  %v8537_v34 = vld [vmem:[#allocation16 + $0x10c] ss:$16 sps:$4 sm:$0xff]  }
 0x169   :  { %999 = vmatpush1.bf16.msra.mxu1 %v8445_v38 }
 0x16a   :  { %1000 = vmatprep.subr.bf16.mxu1 %v8453_v40  ;;  %986 = vmatpush2.bf16.msra.mxu0 %v8532_v31  ;;  %v439_v31 = vld [vmem:[#allocation13] sm:$0x3] }
 0x16d   :  { %1001 = vmatpush1.bf16.msra.mxu1 %v8451_v42 }
 0x16e   :  { %1002 = vmatprep.subr.bf16.mxu1 %v8459_v44 }
 0x171   :  { %1003 = vmatpush1.bf16.msra.mxu1 %v8457_v46 }
 0x172   :  { %1004 = vmatprep.subr.bf16.mxu1 %v8465_v48 }
 0x175   :  { %1005 = vmatpush1.bf16.msra.mxu1 %v8463_v50 }
 0x176   :  { %1006 = vmatprep.subr.bf16.mxu1 %v8471_v52 }
 0x179   :  { %1007 = vmatpush1.bf16.msra.mxu1 %v8469_v54 }
 0x17a   :  { %1008 = vmatprep.subr.bf16.mxu1 %v8477_v56 }
 0x17d   :  { %1009 = vmatpush1.bf16.msra.mxu1 %v8475_v58 }
 0x17e   :  { %1010 = vmatprep.subr.bf16.mxu1 %v8483_v60 }
 0x181   :  { %1011 = vmatpush1.bf16.msra.mxu1 %v8481_v62 }
 0x182   :  { %1012 = vmatprep.subr.bf16.mxu1 %v8489_v0 }
 0x185   :  { %1013 = vmatpush1.bf16.msra.mxu1 %v8487_v2 }
 0x186   :  { %1014 = vmatprep.subr.bf16.mxu1 %v8495_v4 }
 0x189   :  { %1015 = vmatpush2.bf16.msra.mxu1 %v8493_v6 }
 0x18a   :  { %1016 = vmatprep.subr.bf16.mxu1 %v8501_v8 }
 0x18d   :  { %1017 = vmatpush2.bf16.msra.mxu1 %v8499_v10 }
 0x18e   :  { %1018 = vmatprep.subr.bf16.mxu1 %v8507_v12 }
 0x191   :  { %1019 = vmatpush2.bf16.msra.mxu1 %v8505_v14 }
 0x192   :  { %1020 = vmatprep.subr.bf16.mxu1 %v8513_v16 }
 0x195   :  { %1021 = vmatpush2.bf16.msra.mxu1 %v8511_v18 }
 0x196   :  { %1022 = vmatprep.subr.bf16.mxu1 %v8519_v20 }
 0x199   :  { %1023 = vmatpush2.bf16.msra.mxu1 %v8517_v22  ;;  %v495_v22 = vunpack.c.l.s4 %v8940_v21 }
 0x19a   :  { %1024 = vmatprep.subr.bf16.mxu1 %v8525_v24 }
 0x19b   :  { %v496_v24 = vunpack.c.0.s8 %v495_v22 }
 0x19d   :  { %1025 = vmatpush2.bf16.msra.mxu1 %v8523_v26  ;;  %v9085_v27 = vsub.s32 %v496_v24, %v9082_v25 }
 0x19e   :  { %1026 = vmatprep.subr.bf16.mxu1 %v8531_v28 }
 0x1a1   :  { %1027 = vmatpush2.bf16.msra.mxu1 %v8529_v30 }
 0x1a2   :  { %1028 = vmatprep.subr.bf16.mxu1 %v8537_v34  ;;  %v9093_v34 = vsub.s32 1, %v9082_v25 }
 0x1a5   :  { %1029 = vmatpush2.bf16.msra.mxu1 %v8535_v33  ;;  %v9090_v33 = vsub.s32 0, %v9082_v25 }
 0x228   :  { %v9064_v35 = vpop.f32.mrf.mxu1 }
 0x229   :  { %v461_v40 = vmul.f32 %v9064_v35, %v9064_v35 }
 0x22a   :  { %v9066_v36 = vpop.f32.mrf.mxu1 }
 0x22b   :  { %v462_v44 = vmul.f32 %v9066_v36, %v9066_v36 }
 0x22c   :  { %v9068_v37 = vpop.f32.mrf.mxu1 }
 0x22d   :  { %v443_v38 = vmul.f32 0.0, %v9068_v37 }
 0x22e   :  { %v9071_v39 = vpop.f32.mrf.mxu1 }
 0x22f   :  { %v445_v41 = vadd.f32 %v443_v38, %v9064_v35  ;;  %v463_v42 = vmul.f32 %v443_v38, %v9068_v37  ;;  %v444_v43 = vmul.f32 0.0, %v9071_v39 }
 0x231   :  { %v446_v45 = vrot.slane %v445_v41, 4  ;;  %v465_v46 = vadd.f32 %v463_v42, %v461_v40  ;;  %v452_v47 = vadd.f32 %v444_v43, %v9066_v36  ;;  %v464_v48 = vmul.f32 %v444_v43, %v9071_v39 }
 0x233   :  { %v447_v49 = vadd.f32 %v446_v45, %v445_v41  ;;  %v466_v50 = vrot.slane %v465_v46, 4  ;;  %v453_v51 = vrot.slane %v452_v47, 4  ;;  %v472_v52 = vadd.f32 %v464_v48, %v462_v44 }
 0x235   :  { %v448_v53 = vrot.slane %v447_v49, 2  ;;  %v467_v54 = vadd.f32 %v466_v50, %v465_v46  ;;  %v454_v55 = vadd.f32 %v453_v51, %v452_v47  ;;  %v473_v56 = vrot.slane %v472_v52, 4  ;;  %v440_v46 = vld [vmem:[#allocation14] sm:$0x3] }
 0x237   :  { %v449_v57 = vadd.f32 %v448_v53, %v447_v49  ;;  %v468_v58 = vrot.slane %v467_v54, 2  ;;  %v455_v59 = vrot.slane %v454_v55, 2  ;;  %v474_v60 = vadd.f32 %v473_v56, %v472_v52 }
 0x239   :  { %v450_v61 = vrot.slane %v449_v57, 1  ;;  %v469_v62 = vadd.f32 %v468_v58, %v467_v54  ;;  %v456_v63 = vadd.f32 %v455_v59, %v454_v55  ;;  %v475_v0 = vrot.slane %v474_v60, 2 }
 0x23b   :  { %v451_v1 = vadd.f32 %v450_v61, %v449_v57  ;;  %v470_v2 = vrot.slane %v469_v62, 1  ;;  %v457_v3 = vrot.slane %v456_v63, 1  ;;  %v476_v4 = vadd.f32 %v475_v0, %v474_v60 }
 0x23d   :  { %v459_v5 = vmul.f32 0.125, %v451_v1  ;;  %v471_v6 = vadd.f32 %v470_v2, %v469_v62  ;;  %v458_v7 = vadd.f32 %v457_v3, %v456_v63  ;;  %v477_v8 = vrot.slane %v476_v4, 1 }
 0x23f   :  { %v479_v9 = vmul.f32 0.125, %v471_v6  ;;  %v481_v10 = vmul.f32 %v459_v5, %v459_v5  ;;  %v460_v11 = vmul.f32 0.125, %v458_v7  ;;  %v478_v12 = vadd.f32 %v477_v8, %v476_v4 }
 0x241   :  { %v483_v13 = vsub.f32 %v479_v9, %v481_v10  ;;  %v480_v14 = vmul.f32 0.125, %v478_v12  ;;  %v482_v15 = vmul.f32 %v460_v11, %v460_v11 }
 0x243   :  { %v485_v16 = vmax.f32 %v483_v13, 0.0  ;;  %v484_v17 = vsub.f32 %v480_v14, %v482_v15 }
 0x245   :  { %v487_v18 = vadd.f32 0.8, %v485_v16  ;;  %v486_v19 = vmax.f32 %v484_v17, 0.0 }
 0x247   :  { %v488_v20 = vadd.f32 0.8, %v486_v19  ;;  %8538 = vrsqrt.f32 %v487_v18 }
 0x249   :  { %8540 = vrsqrt.f32 %v488_v20 }
 0x254   :  { %v8539_v26 = vpop.eup %8538 }
 0x256   :  { %v8541_v28 = vpop.eup %8540 }
 0x257   :  { %v493_v29 = vcombine.low %v8539_v26, %v8541_v28 }
 0x259   :  { %v500_v30 = vrot.slane %v493_v29, %v9085_v27 }
 0x25b   :  { %v507_v32 = vrot.slane %v500_v30, %v9085_v27 }
 0x25d   :  { %v509_v38 = vmul.f32 %v507_v32, %v439_v31 }
 0x25f   :  { %v514_v40 = vrot.slane %v509_v38, %v9090_v33  ;;  %v518_v41 = vrot.slane %v509_v38, %v9093_v34 }
 0x261   :  { %v521_v42 = vmul.f32 %v514_v40, %v459_v5  ;;  %v522_v43 = vmul.f32 %v518_v41, %v460_v11  ;;  %v545_v49 = vmul.f32 %v518_v41, %v9071_v39  ;;  %v543_v50 = vmul.f32 %v518_v41, %v9066_v36 }
 0x262   :  { %v542_v53 = vmul.f32 %v514_v40, %v9064_v35  ;;  %v544_v54 = vmul.f32 %v514_v40, %v9068_v37 }
 0x263   :  { %v525_v44 = vcombine.low %v521_v42, %v522_v43 }
 0x265   :  { %v532_v45 = vrot.slane %v525_v44, %v9085_v27 }
 0x267   :  { %v539_v47 = vrot.slane %v532_v45, %v9085_v27 }
 0x269   :  { %v541_v48 = vsub.f32 %v440_v46, %v539_v47 }
 0x26b   :  { %v550_v51 = vrot.slane %v541_v48, %v9090_v33  ;;  %v554_v52 = vrot.slane %v541_v48, %v9093_v34 }
 0x26d   :  { %v560_v55 = vadd.f32 %v554_v52, %v545_v49  ;;  %v558_v56 = vadd.f32 %v554_v52, %v543_v50  ;;  %v557_v57 = vadd.f32 %v550_v51, %v542_v53  ;;  %v559_v58 = vadd.f32 %v550_v51, %v544_v54 }
 0x26f   :  { %v564_v59 = vmul.f32 0.2, %v560_v55  ;;  %v562_v60 = vmul.f32 0.2, %v558_v56  ;;  %v561_v61 = vmul.f32 0.2, %v557_v57 }
 0x270   :  { %v563_v62 = vmul.f32 0.2, %v559_v58 }
 0x271   :  { %v566_v63 = vmax.f32 %v558_v56, %v562_v60  ;;  %v568_v39 = vmax.f32 %v560_v55, %v564_v59  ;;  %v565_v0 = vmax.f32 %v557_v57, %v561_v61 }
 0x272   :  { %v567_v36 = vmax.f32 %v559_v58, %v563_v62 }
 0x273   :  { %v570_v1 = vpack.c.bf16 %v568_v39, %v566_v63 }
 0x274   :  { %v569_v2 = vpack.c.bf16 %v567_v36, %v565_v0 }
 0x275   :  { %987 = vmatprep.mubr.bf16.mxu0 %v570_v1  ;;  %1030 = vmatprep.mubr.bf16.mxu1 %v570_v1 }
 0x276   :  { %988 = vmatmul.mubr.bf16.vlgmr.msra.gmra.mxu0 %v569_v2  ;;  %1031 = vmatmul.mubr.bf16.vlgmr.msra.gmra.mxu1 %v569_v2 }
 0x277   :  { %8858 = shalt.err (!%p8855_p8)  }
 0x278   :  { %202 = dma.hbm_to_vmem [thread:$0]  %s9605_s9, 32768, %s200_s13, [#allocation4] }
 0x279   :  { %s8867_s26 = scalar_lea.vmem %s212_s21, 65536  ;;  %p8872_p10 = scmp.lt.s32.totalorder %s212_s21, %s212_s21 }
 0x27a   :  { %p8868_p9 = scmp.ne.s32.totalorder %s212_s21, %s8867_s26  ;;  %p8873_p11 = scmp.lt.s32.totalorder %s8867_s26, %s8867_s26 }
 0x27c   :  { %p8874_p12 = por %p8873_p11, %p8872_p10 }
 0x27e   :  { %p8875_p13 = pnand %p8874_p12, %p8868_p9 }
 0x280   :  { %8878 = shalt.err (!%p8875_p13)  }
 0x281   :  { %214 = dma.hbm_to_vmem [thread:$0]  %s9608_s12, 65536, %s212_s21, [#allocation4 + $0x1] }
 0x336   :  { %v9111_v35 = vpop.f32.mrf.mxu0  ;;  %v9113_v37 = vpop.f32.mrf.mxu1 }
 0x337   :  { %v1083_v9 = vmul.f32 %v9111_v35, %v9111_v35  ;;  %v1085_v10 = vmul.f32 %v9113_v37, %v9113_v37 }
 0x338   :  { %v9115_v3 = vpop.f32.mrf.mxu0  ;;  %v9117_v4 = vpop.f32.mrf.mxu1 }
 0x339   :  { %v1084_v17 = vmul.f32 %v9115_v3, %v9115_v3  ;;  %v1086_v18 = vmul.f32 %v9117_v4, %v9117_v4 }
 0x33a   :  { %v9119_v5 = vpop.f32.mrf.mxu0  ;;  %v9121_v6 = vpop.f32.mrf.mxu1 }
 0x33b   :  { %v1047_v7 = vmul.f32 0.0, %v9119_v5  ;;  %v1049_v8 = vmul.f32 0.0, %v9121_v6 }
 0x33c   :  { %v9129_v11 = vpop.f32.mrf.mxu0  ;;  %v9131_v12 = vpop.f32.mrf.mxu1 }
 0x33d   :  { %v1051_v13 = vadd.f32 %v1047_v7, %v9111_v35  ;;  %v1087_v14 = vmul.f32 %v1047_v7, %v9119_v5  ;;  %v1065_v15 = vadd.f32 %v1049_v8, %v9113_v37  ;;  %v1089_v16 = vmul.f32 %v1049_v8, %v9121_v6 }
 0x33e   :  { %v1048_v19 = vmul.f32 0.0, %v9129_v11  ;;  %v1050_v20 = vmul.f32 0.0, %v9131_v12 }
 0x33f   :  { %v1052_v21 = vrot.slane %v1051_v13, 4  ;;  %v1091_v22 = vadd.f32 %v1087_v14, %v1083_v9  ;;  %v1066_v23 = vrot.slane %v1065_v15, 4  ;;  %v1105_v24 = vadd.f32 %v1089_v16, %v1085_v10 }
 0x340   :  { %v1058_v26 = vadd.f32 %v1048_v19, %v9115_v3  ;;  %v1088_v28 = vmul.f32 %v1048_v19, %v9129_v11  ;;  %v1072_v29 = vadd.f32 %v1050_v20, %v9117_v4  ;;  %v1090_v30 = vmul.f32 %v1050_v20, %v9131_v12 }
 0x341   :  { %v1053_v31 = vadd.f32 %v1052_v21, %v1051_v13  ;;  %v1092_v32 = vrot.slane %v1091_v22, 4  ;;  %v1067_v38 = vadd.f32 %v1066_v23, %v1065_v15  ;;  %v1106_v40 = vrot.slane %v1105_v24, 4 }
 0x342   :  { %v1059_v41 = vrot.slane %v1058_v26, 4  ;;  %v1098_v42 = vadd.f32 %v1088_v28, %v1084_v17  ;;  %v1073_v43 = vrot.slane %v1072_v29, 4  ;;  %v1112_v44 = vadd.f32 %v1090_v30, %v1086_v18 }
 0x343   :  { %v1054_v45 = vrot.slane %v1053_v31, 2  ;;  %v1093_v46 = vadd.f32 %v1092_v32, %v1091_v22  ;;  %v1068_v47 = vrot.slane %v1067_v38, 2  ;;  %v1107_v48 = vadd.f32 %v1106_v40, %v1105_v24 }
 0x344   :  { %v1060_v49 = vadd.f32 %v1059_v41, %v1058_v26  ;;  %v1099_v50 = vrot.slane %v1098_v42, 4  ;;  %v1074_v51 = vadd.f32 %v1073_v43, %v1072_v29  ;;  %v1113_v52 = vrot.slane %v1112_v44, 4 }
 0x345   :  { %v1055_v53 = vadd.f32 %v1054_v45, %v1053_v31  ;;  %v1094_v54 = vrot.slane %v1093_v46, 2  ;;  %v1069_v55 = vadd.f32 %v1068_v47, %v1067_v38  ;;  %v1108_v56 = vrot.slane %v1107_v48, 2 }
 0x346   :  { %v1061_v57 = vrot.slane %v1060_v49, 2  ;;  %v1100_v58 = vadd.f32 %v1099_v50, %v1098_v42  ;;  %v1075_v59 = vrot.slane %v1074_v51, 2  ;;  %v1114_v60 = vadd.f32 %v1113_v52, %v1112_v44 }
 0x347   :  { %v1056_v61 = vrot.slane %v1055_v53, 1  ;;  %v1095_v62 = vadd.f32 %v1094_v54, %v1093_v46  ;;  %v1070_v63 = vrot.slane %v1069_v55, 1  ;;  %v1109_v39 = vadd.f32 %v1108_v56, %v1107_v48 }
 0x348   :  { %v1062_v0 = vadd.f32 %v1061_v57, %v1060_v49  ;;  %v1101_v36 = vrot.slane %v1100_v58, 2  ;;  %v1076_v1 = vadd.f32 %v1075_v59, %v1074_v51  ;;  %v1115_v2 = vrot.slane %v1114_v60, 2 }
 0x349   :  { %v1057_v7 = vadd.f32 %v1056_v61, %v1055_v53  ;;  %v1096_v8 = vrot.slane %v1095_v62, 1  ;;  %v1071_v9 = vadd.f32 %v1070_v63, %v1069_v55  ;;  %v1110_v10 = vrot.slane %v1109_v39, 1 }
 0x34a   :  { %v1063_v13 = vrot.slane %v1062_v0, 1  ;;  %v1102_v14 = vadd.f32 %v1101_v36, %v1100_v58  ;;  %v1077_v15 = vrot.slane %v1076_v1, 1  ;;  %v1116_v16 = vadd.f32 %v1115_v2, %v1114_v60  ;;  %v1041_v36 = vld [vmem:[#allocation17] sm:$0xf] }
 0x34b   :  { %v1079_v17 = vmul.f32 0.125, %v1057_v7  ;;  %v1097_v18 = vadd.f32 %v1096_v8, %v1095_v62  ;;  %v1081_v19 = vmul.f32 0.125, %v1071_v9  ;;  %v1111_v20 = vadd.f32 %v1110_v10, %v1109_v39 }
 0x34c   :  { %v1064_v21 = vadd.f32 %v1063_v13, %v1062_v0  ;;  %v1103_v22 = vrot.slane %v1102_v14, 1  ;;  %v1078_v23 = vadd.f32 %v1077_v15, %v1076_v1  ;;  %v1117_v24 = vrot.slane %v1116_v16, 1 }
 0x34d   :  { %v1119_v26 = vmul.f32 0.125, %v1097_v18  ;;  %v1123_v28 = vmul.f32 %v1079_v17, %v1079_v17  ;;  %v1121_v29 = vmul.f32 0.125, %v1111_v20  ;;  %v1125_v30 = vmul.f32 %v1081_v19, %v1081_v19 }
 0x34e   :  { %v1080_v31 = vmul.f32 0.125, %v1064_v21  ;;  %v1104_v32 = vadd.f32 %v1103_v22, %v1102_v14  ;;  %v1082_v38 = vmul.f32 0.125, %v1078_v23  ;;  %v1118_v40 = vadd.f32 %v1117_v24, %v1116_v16 }
 0x34f   :  { %v1127_v41 = vsub.f32 %v1119_v26, %v1123_v28  ;;  %v1129_v42 = vsub.f32 %v1121_v29, %v1125_v30  ;;  %v9151_v2 = vsub.s32 2, %v9082_v25  ;;  %v9154_v7 = vsub.s32 3, %v9082_v25  ;;  %v1042_v28 = vld [vmem:[#allocation19] sm:$0xf] }
 0x350   :  { %v1120_v43 = vmul.f32 0.125, %v1104_v32  ;;  %v1124_v44 = vmul.f32 %v1080_v31, %v1080_v31  ;;  %v1122_v45 = vmul.f32 0.125, %v1118_v40  ;;  %v1126_v46 = vmul.f32 %v1082_v38, %v1082_v38 }
 0x351   :  { %v1131_v47 = vmax.f32 %v1127_v41, 0.0  ;;  %v1133_v48 = vmax.f32 %v1129_v42, 0.0 }
 0x352   :  { %v1128_v49 = vsub.f32 %v1120_v43, %v1124_v44  ;;  %v1130_v50 = vsub.f32 %v1122_v45, %v1126_v46 }
 0x353   :  { %v1135_v51 = vadd.f32 0.8, %v1131_v47  ;;  %v1137_v52 = vadd.f32 0.8, %v1133_v48 }
 0x354   :  { %v1132_v53 = vmax.f32 %v1128_v49, 0.0  ;;  %v1134_v54 = vmax.f32 %v1130_v50, 0.0 }
 0x355   :  { %8542 = vrsqrt.f32 %v1135_v51 }
 0x356   :  { %v1136_v55 = vadd.f32 0.8, %v1132_v53  ;;  %v1138_v56 = vadd.f32 0.8, %v1134_v54  ;;  %8544 = vrsqrt.f32 %v1137_v52 }
 0x358   :  { %8546 = vrsqrt.f32 %v1136_v55 }
 0x359   :  { %8548 = vrsqrt.f32 %v1138_v56 }
 0x362   :  { %v8543_v57 = vpop.eup %8542 }
 0x363   :  { %v8545_v58 = vpop.eup %8544 }
 0x365   :  { %v8547_v59 = vpop.eup %8546 }
 0x366   :  { %v8549_v60 = vpop.eup %8548  ;;  %v1147_v61 = vcombine.low %v8543_v57, %v8547_v59 }
 0x367   :  { %v1148_v62 = vcombine.low %v8545_v58, %v8549_v60 }
 0x368   :  { %v1155_v63 = vrot.slane %v1147_v61, %v9085_v27 }
 0x369   :  { %v1162_v39 = vrot.slane %v1148_v62, %v9085_v27 }
 0x36b   :  { %v1163_v0 = vcombine.low %v1155_v63, %v1162_v39 }
 0x36d   :  { %v1170_v1 = vrot.slane %v1163_v0, %v9085_v27 }
 0x36f   :  { %v1172_v8 = vmul.f32 %v1170_v1, %v1041_v36 }
 0x371   :  { %v1177_v9 = vrot.slane %v1172_v8, %v9090_v33  ;;  %v1181_v10 = vrot.slane %v1172_v8, %v9093_v34  ;;  %v1185_v13 = vrot.slane %v1172_v8, %v9151_v2  ;;  %v1189_v14 = vrot.slane %v1172_v8, %v9154_v7 }
 0x373   :  { %v1194_v15 = vmul.f32 %v1177_v9, %v1079_v17  ;;  %v1195_v16 = vmul.f32 %v1181_v10, %v1080_v31  ;;  %v1196_v18 = vmul.f32 %v1185_v13, %v1081_v19  ;;  %v1197_v20 = vmul.f32 %v1189_v14, %v1082_v38 }
 0x374   :  { %v1228_v32 = vmul.f32 %v1177_v9, %v9111_v35  ;;  %v1229_v40 = vmul.f32 %v1181_v10, %v9115_v3  ;;  %v1230_v17 = vmul.f32 %v1185_v13, %v9113_v37  ;;  %v1231_v19 = vmul.f32 %v1189_v14, %v9117_v4 }
 0x375   :  { %v1202_v21 = vcombine.low %v1194_v15, %v1195_v16  ;;  %v1203_v22 = vcombine.low %v1196_v18, %v1197_v20  ;;  %v1232_v43 = vmul.f32 %v1177_v9, %v9119_v5  ;;  %v1233_v44 = vmul.f32 %v1181_v10, %v9129_v11 }
 0x376   :  { %v1234_v35 = vmul.f32 %v1185_v13, %v9121_v6  ;;  %v1235_v3 = vmul.f32 %v1189_v14, %v9131_v12 }
 0x377   :  { %v1210_v23 = vrot.slane %v1202_v21, %v9085_v27  ;;  %v1217_v24 = vrot.slane %v1203_v22, %v9085_v27 }
 0x379   :  { %v1218_v26 = vcombine.low %v1210_v23, %v1217_v24 }
 0x37b   :  { %v1225_v29 = vrot.slane %v1218_v26, %v9085_v27 }
 0x37d   :  { %v1227_v30 = vsub.f32 %v1042_v28, %v1225_v29 }
 0x37f   :  { %v1240_v31 = vrot.slane %v1227_v30, %v9090_v33  ;;  %v1244_v38 = vrot.slane %v1227_v30, %v9093_v34  ;;  %v1248_v41 = vrot.slane %v1227_v30, %v9151_v2  ;;  %v1252_v42 = vrot.slane %v1227_v30, %v9154_v7 }
 0x381   :  { %v9175_v45 = vadd.f32 %v1240_v31, %v1228_v32  ;;  %v1258_v37 = vadd.f32 %v1244_v38, %v1229_v40  ;;  %v9177_v4 = vadd.f32 %v1248_v41, %v1230_v17  ;;  %v1260_v46 = vadd.f32 %v1252_v42, %v1231_v19 }
 0x382   :  { %v9179_v47 = vadd.f32 %v1240_v31, %v1232_v43  ;;  %v1262_v48 = vadd.f32 %v1244_v38, %v1233_v44  ;;  %v9181_v49 = vadd.f32 %v1248_v41, %v1234_v35  ;;  %v1264_v50 = vadd.f32 %v1252_v42, %v1235_v3 }
 0x383   :  { %v9184_v5 = vmul.f32 0.2, %v9175_v45  ;;  %v1266_v11 = vmul.f32 0.2, %v1258_v37  ;;  %v9187_v6 = vmul.f32 0.2, %v9177_v4 }
 0x384   :  { %v1268_v12 = vmul.f32 0.2, %v1260_v46  ;;  %v9190_v51 = vmul.f32 0.2, %v9179_v47  ;;  %v1270_v52 = vmul.f32 0.2, %v1262_v48 }
 0x385   :  { %v9193_v53 = vmul.f32 0.2, %v9181_v49  ;;  %v1272_v54 = vmul.f32 0.2, %v1264_v50  ;;  %v1273_v55 = vmax.f32 %v9175_v45, %v9184_v5  ;;  %v1274_v56 = vmax.f32 %v1258_v37, %v1266_v11 }
 0x386   :  { %v1275_v57 = vmax.f32 %v9177_v4, %v9187_v6  ;;  %v1276_v58 = vmax.f32 %v1260_v46, %v1268_v12  ;;  %v1277_v59 = vmax.f32 %v9179_v47, %v9190_v51  ;;  %v1278_v60 = vmax.f32 %v1262_v48, %v1270_v52 }
 0x387   :  { %v1279_v61 = vmax.f32 %v9181_v49, %v9193_v53  ;;  %v1280_v62 = vmax.f32 %v1264_v50, %v1272_v54 }
 0x388   :  { %8913 = dma.done.wait [#allocation4], 32768 }
 0x389   :  { %8914 = vsyncadd [#allocation4], 4294934528  ;;  %v9203_v63 = vpack.c.bf16 %v1278_v60, %v1274_v56  ;;  %v9205_v39 = vpack.c.bf16 %v1280_v62, %v1276_v58  ;;  %v1345_v0 = vld [vmem:[#allocation2 + $0x1c0] sm:$0xff]  ;;  %v1330_v51 = vld [vmem:[#allocation2 + $0x148] sm:$0xff] }
 0x38a   :  { %v1349_v36 = vld [vmem:[#allocation2 + $0x1e0] sm:$0xff] }
 0x38b   :  { %2857 = vmatprep.mubr.bf16.mxu0 %v9203_v63  ;;  %2900 = vmatprep.mubr.bf16.mxu1 %v9205_v39  ;;  %v1473_v1 = vld [vmem:[#allocation2 + $0x5c0] sm:$0xff]  ;;  %v7666_v8 = vcombine.high %v1345_v0, %v1349_v36  ;;  %v7665_v10 = vcombine.low %v1345_v0, %v1349_v36 }
 0x38c   :  { %v1477_v9 = vld [vmem:[#allocation2 + $0x5e0] sm:$0xff] }
 0x38d   :  { %v1337_v13 = vld [vmem:[#allocation2 + $0x180] sm:$0xff]  ;;  %v7794_v15 = vcombine.high %v1473_v1, %v1477_v9  ;;  %v7793_v16 = vcombine.low %v1473_v1, %v1477_v9  ;;  %2825 = vmatprep.subr.bf16.mxu0 %v7666_v8 }
 0x38e   :  { %v1341_v14 = vld [vmem:[#allocation2 + $0x1a0] sm:$0xff]  ;;  %2826 = vmatpush1.bf16.msra.mxu0 %v7665_v10 }
 0x38f   :  { %v7658_v18 = vcombine.high %v1337_v13, %v1341_v14  ;;  %v1465_v20 = vld [vmem:[#allocation2 + $0x580] sm:$0xff]  ;;  %2868 = vmatprep.subr.bf16.mxu1 %v7794_v15  ;;  %v7657_v29 = vcombine.low %v1337_v13, %v1341_v14 }
 0x390   :  { %v1469_v21 = vld [vmem:[#allocation2 + $0x5a0] sm:$0xff]  ;;  %2869 = vmatpush1.bf16.msra.mxu1 %v7793_v16 }
 0x391   :  { %v1329_v22 = vld [vmem:[#allocation2 + $0x140] sm:$0xff]  ;;  %v7786_v23 = vcombine.high %v1465_v20, %v1469_v21  ;;  %2827 = vmatprep.subr.bf16.mxu0 %v7658_v18  ;;  %v7785_v30 = vcombine.low %v1465_v20, %v1469_v21 }
 0x392   :  { %v1333_v24 = vld [vmem:[#allocation2 + $0x160] sm:$0xff]  ;;  %2828 = vmatpush1.bf16.msra.mxu0 %v7657_v29 }
 0x393   :  { %v1457_v26 = vld [vmem:[#allocation2 + $0x540] sm:$0xff]  ;;  %v7650_v32 = vcombine.high %v1329_v22, %v1333_v24  ;;  %2870 = vmatprep.subr.bf16.mxu1 %v7786_v23  ;;  %v7649_v41 = vcombine.low %v1329_v22, %v1333_v24 }
 0x394   :  { %v1461_v28 = vld [vmem:[#allocation2 + $0x560] sm:$0xff]  ;;  %2871 = vmatpush1.bf16.msra.mxu1 %v7785_v30 }
 0x395   :  { %v7778_v40 = vcombine.high %v1457_v26, %v1461_v28  ;;  %v1321_v17 = vld [vmem:[#allocation2 + $0x100] sm:$0xff]  ;;  %2829 = vmatprep.subr.bf16.mxu0 %v7650_v32  ;;  %v7777_v42 = vcombine.low %v1457_v26, %v1461_v28 }
 0x396   :  { %v1325_v19 = vld [vmem:[#allocation2 + $0x120] sm:$0xff]  ;;  %2830 = vmatpush1.bf16.msra.mxu0 %v7649_v41 }
 0x397   :  { %v1449_v31 = vld [vmem:[#allocation2 + $0x500] sm:$0xff]  ;;  %v7642_v43 = vcombine.high %v1321_v17, %v1325_v19  ;;  %2872 = vmatprep.subr.bf16.mxu1 %v7778_v40  ;;  %v7641_v48 = vcombine.low %v1321_v17, %v1325_v19 }
 0x398   :  { %v1453_v38 = vld [vmem:[#allocation2 + $0x520] sm:$0xff]  ;;  %2873 = vmatpush1.bf16.msra.mxu1 %v7777_v42 }
 0x399   :  { %v7770_v44 = vcombine.high %v1449_v31, %v1453_v38  ;;  %v1313_v35 = vld [vmem:[#allocation2 + $0xc0] sm:$0xff]  ;;  %2831 = vmatprep.subr.bf16.mxu0 %v7642_v43  ;;  %v7769_v50 = vcombine.low %v1449_v31, %v1453_v38 }
 0x39a   :  { %v1317_v3 = vld [vmem:[#allocation2 + $0xe0] sm:$0xff]  ;;  %2832 = vmatpush1.bf16.msra.mxu0 %v7641_v48 }
 0x39b   :  { %v1441_v37 = vld [vmem:[#allocation2 + $0x4c0] sm:$0xff]  ;;  %v7634_v11 = vcombine.high %v1313_v35, %v1317_v3  ;;  %2874 = vmatprep.subr.bf16.mxu1 %v7770_v44  ;;  %v7633_v60 = vcombine.low %v1313_v35, %v1317_v3 }
 0x39c   :  { %v1445_v46 = vld [vmem:[#allocation2 + $0x4e0] sm:$0xff]  ;;  %2875 = vmatpush1.bf16.msra.mxu1 %v7769_v50 }
 0x39d   :  { %v7762_v12 = vcombine.high %v1441_v37, %v1445_v46  ;;  %v1305_v52 = vld [vmem:[#allocation2 + $0x80] sm:$0xff]  ;;  %2833 = vmatprep.subr.bf16.mxu0 %v7634_v11  ;;  %v7761_v62 = vcombine.low %v1441_v37, %v1445_v46 }
 0x39e   :  { %v1309_v54 = vld [vmem:[#allocation2 + $0xa0] sm:$0xff]  ;;  %2834 = vmatpush1.bf16.msra.mxu0 %v7633_v60 }
 0x39f   :  { %v1433_v56 = vld [vmem:[#allocation2 + $0x480] sm:$0xff]  ;;  %v7626_v0 = vcombine.high %v1305_v52, %v1309_v54  ;;  %2876 = vmatprep.subr.bf16.mxu1 %v7762_v12  ;;  %v7625_v13 = vcombine.low %v1305_v52, %v1309_v54 }
 0x3a0   :  { %v1437_v58 = vld [vmem:[#allocation2 + $0x4a0] sm:$0xff]  ;;  %2877 = vmatpush1.bf16.msra.mxu1 %v7761_v62 }
 0x3a1   :  { %v7754_v36 = vcombine.high %v1433_v56, %v1437_v58  ;;  %v1297_v1 = vld [vmem:[#allocation2 + $0x40] sm:$0xff]  ;;  %2835 = vmatprep.subr.bf16.mxu0 %v7626_v0  ;;  %v7753_v14 = vcombine.low %v1433_v56, %v1437_v58 }
 0x3a2   :  { %v1301_v8 = vld [vmem:[#allocation2 + $0x60] sm:$0xff]  ;;  %2836 = vmatpush1.bf16.msra.mxu0 %v7625_v13 }
 0x3a3   :  { %v1425_v9 = vld [vmem:[#allocation2 + $0x440] sm:$0xff]  ;;  %v7618_v15 = vcombine.high %v1297_v1, %v1301_v8  ;;  %2878 = vmatprep.subr.bf16.mxu1 %v7754_v36  ;;  %v7617_v23 = vcombine.low %v1297_v1, %v1301_v8 }
 0x3a4   :  { %v1429_v10 = vld [vmem:[#allocation2 + $0x460] sm:$0xff]  ;;  %2879 = vmatpush1.bf16.msra.mxu1 %v7753_v14 }
 0x3a5   :  { %v7746_v16 = vcombine.high %v1425_v9, %v1429_v10  ;;  %v1289_v18 = vld [vmem:[#allocation2] sm:$0xff]  ;;  %2837 = vmatprep.subr.bf16.mxu0 %v7618_v15  ;;  %v7745_v24 = vcombine.low %v1425_v9, %v1429_v10 }
 0x3a6   :  { %v1293_v20 = vld [vmem:[#allocation2 + $0x20] sm:$0xff]  ;;  %2838 = vmatpush1.bf16.msra.mxu0 %v7617_v23 }
 0x3a7   :  { %v1417_v21 = vld [vmem:[#allocation2 + $0x400] sm:$0xff]  ;;  %v7610_v26 = vcombine.high %v1289_v18, %v1293_v20  ;;  %2880 = vmatprep.subr.bf16.mxu1 %v7746_v16  ;;  %v7609_v17 = vcombine.low %v1289_v18, %v1293_v20 }
 0x3a8   :  { %v1421_v22 = vld [vmem:[#allocation2 + $0x420] sm:$0xff]  ;;  %2881 = vmatpush1.bf16.msra.mxu1 %v7745_v24 }
 0x3a9   :  { %v7738_v28 = vcombine.high %v1417_v21, %v1421_v22  ;;  %v1409_v29 = vld [vmem:[#allocation2 + $0x3c0] sm:$0xff]  ;;  %2839 = vmatprep.subr.bf16.mxu0 %v7610_v26  ;;  %v7737_v19 = vcombine.low %v1417_v21, %v1421_v22 }
 0x3aa   :  { %v1413_v30 = vld [vmem:[#allocation2 + $0x3e0] sm:$0xff]  ;;  %2840 = vmatpush1.bf16.msra.mxu0 %v7609_v17 }
 0x3ab   :  { %v1537_v32 = vld [vmem:[#allocation2 + $0x7c0] sm:$0xff]  ;;  %v7730_v31 = vcombine.high %v1409_v29, %v1413_v30  ;;  %2882 = vmatprep.subr.bf16.mxu1 %v7738_v28  ;;  %v7729_v35 = vcombine.low %v1409_v29, %v1413_v30 }
 0x3ac   :  { %v1541_v40 = vld [vmem:[#allocation2 + $0x7e0] sm:$0xff]  ;;  %2883 = vmatpush1.bf16.msra.mxu1 %v7737_v19 }
 0x3ad   :  { %v7858_v38 = vcombine.high %v1537_v32, %v1541_v40  ;;  %v1401_v41 = vld [vmem:[#allocation2 + $0x380] sm:$0xff]  ;;  %2841 = vmatprep.subr.bf16.mxu0 %v7730_v31  ;;  %v7857_v3 = vcombine.low %v1537_v32, %v1541_v40 }
 0x3ae   :  { %v1405_v42 = vld [vmem:[#allocation2 + $0x3a0] sm:$0xff]  ;;  %2842 = vmatpush2.bf16.msra.mxu0 %v7729_v35 }
 0x3af   :  { %v1529_v43 = vld [vmem:[#allocation2 + $0x780] sm:$0xff]  ;;  %v7722_v37 = vcombine.high %v1401_v41, %v1405_v42  ;;  %2884 = vmatprep.subr.bf16.mxu1 %v7858_v38  ;;  %v7721_v52 = vcombine.low %v1401_v41, %v1405_v42 }
 0x3b0   :  { %v1533_v44 = vld [vmem:[#allocation2 + $0x7a0] sm:$0xff]  ;;  %2885 = vmatpush2.bf16.msra.mxu1 %v7857_v3 }
 0x3b1   :  { %v7850_v46 = vcombine.high %v1529_v43, %v1533_v44  ;;  %v1393_v48 = vld [vmem:[#allocation2 + $0x340] sm:$0xff]  ;;  %2843 = vmatprep.subr.bf16.mxu0 %v7722_v37  ;;  %v7849_v54 = vcombine.low %v1529_v43, %v1533_v44 }
 0x3b2   :  { %v1397_v50 = vld [vmem:[#allocation2 + $0x360] sm:$0xff]  ;;  %2844 = vmatpush2.bf16.msra.mxu0 %v7721_v52  ;;  %v1346_v52 = vld [vmem:[#allocation2 + $0x1c8] sm:$0xff] }
 0x3b3   :  { %v1521_v11 = vld [vmem:[#allocation2 + $0x740] sm:$0xff]  ;;  %v7714_v56 = vcombine.high %v1393_v48, %v1397_v50  ;;  %2886 = vmatprep.subr.bf16.mxu1 %v7850_v46  ;;  %v7713_v1 = vcombine.low %v1393_v48, %v1397_v50 }
 0x3b4   :  { %v1525_v12 = vld [vmem:[#allocation2 + $0x760] sm:$0xff]  ;;  %2887 = vmatpush2.bf16.msra.mxu1 %v7849_v54  ;;  %v1350_v54 = vld [vmem:[#allocation2 + $0x1e8] sm:$0xff] }
 0x3b5   :  { %v7842_v58 = vcombine.high %v1521_v11, %v1525_v12  ;;  %v1385_v60 = vld [vmem:[#allocation2 + $0x300] sm:$0xff]  ;;  %2845 = vmatprep.subr.bf16.mxu0 %v7714_v56  ;;  %v7841_v8 = vcombine.low %v1521_v11, %v1525_v12  ;;  %v1474_v56 = vld [vmem:[#allocation2 + $0x5c8] sm:$0xff] }
 0x3b6   :  { %v1389_v62 = vld [vmem:[#allocation2 + $0x320] sm:$0xff]  ;;  %2846 = vmatpush2.bf16.msra.mxu0 %v7713_v1  ;;  %v1338_v1 = vld [vmem:[#allocation2 + $0x188] sm:$0xff] }
 0x3b7   :  { %v1513_v0 = vld [vmem:[#allocation2 + $0x700] sm:$0xff]  ;;  %v7706_v9 = vcombine.high %v1385_v60, %v1389_v62  ;;  %2888 = vmatprep.subr.bf16.mxu1 %v7842_v58  ;;  %v7705_v18 = vcombine.low %v1385_v60, %v1389_v62  ;;  %v1478_v58 = vld [vmem:[#allocation2 + $0x5e8] sm:$0xff] }
 0x3b8   :  { %v1517_v36 = vld [vmem:[#allocation2 + $0x720] sm:$0xff]  ;;  %2889 = vmatpush2.bf16.msra.mxu1 %v7841_v8  ;;  %v1342_v8 = vld [vmem:[#allocation2 + $0x1a8] sm:$0xff]  ;;  %v7795_v45 = vcombine.low %v1474_v56, %v1478_v58 }
 0x3b9   :  { %v7834_v10 = vcombine.high %v1513_v0, %v1517_v36  ;;  %v1377_v13 = vld [vmem:[#allocation2 + $0x2c0] sm:$0xff]  ;;  %2847 = vmatprep.subr.bf16.mxu0 %v7706_v9  ;;  %v7833_v20 = vcombine.low %v1513_v0, %v1517_v36  ;;  %v7668_v0 = vcombine.high %v1346_v52, %v1350_v54  ;;  %v7796_v36 = vcombine.high %v1474_v56, %v1478_v58  ;;  %v1290_v56 = vld [vmem:[#allocation2 + $0x8] sm:$0xff] }
 0x3ba   :  { %v1381_v14 = vld [vmem:[#allocation2 + $0x2e0] sm:$0xff]  ;;  %2848 = vmatpush2.bf16.msra.mxu0 %v7705_v18  ;;  %v9215_v9 = vpack.c.bf16 %v1277_v59, %v1273_v55  ;;  %v7660_v5 = vcombine.high %v1338_v1, %v1342_v8  ;;  %v1334_v55 = vld [vmem:[#allocation2 + $0x168] sm:$0xff]  ;;  %v7659_v4 = vcombine.low %v1338_v1, %v1342_v8 }
 0x3bb   :  { %v1505_v15 = vld [vmem:[#allocation2 + $0x6c0] sm:$0xff]  ;;  %v7698_v21 = vcombine.high %v1377_v13, %v1381_v14  ;;  %2890 = vmatprep.subr.bf16.mxu1 %v7834_v10  ;;  %v7697_v29 = vcombine.low %v1377_v13, %v1381_v14  ;;  %v1466_v10 = vld [vmem:[#allocation2 + $0x588] sm:$0xff]  ;;  %v9223_v14 = vpack.c.bf16 %v1279_v61, %v1275_v57  ;;  %v7652_v6 = vcombine.high %v1330_v51, %v1334_v55 }
 0x3bc   :  { %v1509_v16 = vld [vmem:[#allocation2 + $0x6e0] sm:$0xff]  ;;  %2891 = vmatpush2.bf16.msra.mxu1 %v7833_v20  ;;  %v1470_v13 = vld [vmem:[#allocation2 + $0x5a8] sm:$0xff] }
 0x3bd   :  { %v7826_v22 = vcombine.high %v1505_v15, %v1509_v16  ;;  %v1369_v23 = vld [vmem:[#allocation2 + $0x280] sm:$0xff]  ;;  %2849 = vmatprep.subr.bf16.mxu0 %v7698_v21  ;;  %v7825_v30 = vcombine.low %v1505_v15, %v1509_v16  ;;  %v7667_v15 = vcombine.low %v1346_v52, %v1350_v54  ;;  %v7788_v47 = vcombine.high %v1466_v10, %v1470_v13  ;;  %v1458_v59 = vld [vmem:[#allocation2 + $0x548] sm:$0xff] }
 0x3be   :  { %v1373_v24 = vld [vmem:[#allocation2 + $0x2a0] sm:$0xff]  ;;  %2850 = vmatpush2.bf16.msra.mxu0 %v7697_v29  ;;  %v1462_v16 = vld [vmem:[#allocation2 + $0x568] sm:$0xff]  ;;  %v7787_v49 = vcombine.low %v1466_v10, %v1470_v13  ;;  %v7651_v21 = vcombine.low %v1330_v51, %v1334_v55 }
 0x3bf   :  { %v1497_v26 = vld [vmem:[#allocation2 + $0x680] sm:$0xff]  ;;  %v7690_v32 = vcombine.high %v1369_v23, %v1373_v24  ;;  %2892 = vmatprep.subr.bf16.mxu1 %v7826_v22  ;;  %v7689_v41 = vcombine.low %v1369_v23, %v1373_v24  ;;  %v7780_v53 = vcombine.high %v1458_v59, %v1462_v16  ;;  %v1322_v57 = vld [vmem:[#allocation2 + $0x108] sm:$0xff]  ;;  %v7779_v22 = vcombine.low %v1458_v59, %v1462_v16 }
 0x3c0   :  { %v1501_v28 = vld [vmem:[#allocation2 + $0x6a0] sm:$0xff]  ;;  %2893 = vmatpush2.bf16.msra.mxu1 %v7825_v30  ;;  %v1326_v61 = vld [vmem:[#allocation2 + $0x128] sm:$0xff] }
 0x3c1   :  { %v7818_v40 = vcombine.high %v1497_v26, %v1501_v28  ;;  %v1361_v17 = vld [vmem:[#allocation2 + $0x240] sm:$0xff]  ;;  %2851 = vmatprep.subr.bf16.mxu0 %v7690_v32  ;;  %v7817_v42 = vcombine.low %v1497_v26, %v1501_v28  ;;  %v1450_v18 = vld [vmem:[#allocation2 + $0x508] sm:$0xff]  ;;  %v7644_v23 = vcombine.high %v1322_v57, %v1326_v61  ;;  %v7643_v32 = vcombine.low %v1322_v57, %v1326_v61 }
 0x3c2   :  { %v1365_v19 = vld [vmem:[#allocation2 + $0x260] sm:$0xff]  ;;  %2852 = vmatpush2.bf16.msra.mxu0 %v7689_v41  ;;  %v1454_v20 = vld [vmem:[#allocation2 + $0x528] sm:$0xff] }
 0x3c3   :  { %v1489_v31 = vld [vmem:[#allocation2 + $0x640] sm:$0xff]  ;;  %v7682_v43 = vcombine.high %v1361_v17, %v1365_v19  ;;  %2894 = vmatprep.subr.bf16.mxu1 %v7818_v40  ;;  %v7681_v48 = vcombine.low %v1361_v17, %v1365_v19  ;;  %v7772_v24 = vcombine.high %v1450_v18, %v1454_v20  ;;  %v1314_v26 = vld [vmem:[#allocation2 + $0xc8] sm:$0xff]  ;;  %v7771_v40 = vcombine.low %v1450_v18, %v1454_v20 }
 0x3c4   :  { %v1493_v38 = vld [vmem:[#allocation2 + $0x660] sm:$0xff]  ;;  %2895 = vmatpush2.bf16.msra.mxu1 %v7817_v42  ;;  %v1318_v28 = vld [vmem:[#allocation2 + $0xe8] sm:$0xff] }
 0x3c5   :  { %v7810_v44 = vcombine.high %v1489_v31, %v1493_v38  ;;  %v1353_v35 = vld [vmem:[#allocation2 + $0x200] sm:$0xff]  ;;  %2853 = vmatprep.subr.bf16.mxu0 %v7682_v43  ;;  %v7809_v50 = vcombine.low %v1489_v31, %v1493_v38  ;;  %v1442_v29 = vld [vmem:[#allocation2 + $0x4c8] sm:$0xff]  ;;  %v7636_v17 = vcombine.high %v1314_v26, %v1318_v28  ;;  %v7635_v43 = vcombine.low %v1314_v26, %v1318_v28 }
 0x3c6   :  { %v1357_v3 = vld [vmem:[#allocation2 + $0x220] sm:$0xff]  ;;  %2854 = vmatpush2.bf16.msra.mxu0 %v7681_v48  ;;  %v1446_v30 = vld [vmem:[#allocation2 + $0x4e8] sm:$0xff] }
 0x3c7   :  { %v1481_v37 = vld [vmem:[#allocation2 + $0x600] sm:$0xff]  ;;  %v7674_v11 = vcombine.high %v1353_v35, %v1357_v3  ;;  %2896 = vmatprep.subr.bf16.mxu1 %v7810_v44  ;;  %v7673_v60 = vcombine.low %v1353_v35, %v1357_v3  ;;  %v7764_v19 = vcombine.high %v1442_v29, %v1446_v30  ;;  %v1306_v31 = vld [vmem:[#allocation2 + $0x88] sm:$0xff]  ;;  %v7763_v44 = vcombine.low %v1442_v29, %v1446_v30 }
 0x3c8   :  { %v1485_v46 = vld [vmem:[#allocation2 + $0x620] sm:$0xff]  ;;  %2897 = vmatpush2.bf16.msra.mxu1 %v7809_v50  ;;  %v1310_v38 = vld [vmem:[#allocation2 + $0xa8] sm:$0xff] }
 0x3c9   :  { %v7802_v12 = vcombine.high %v1481_v37, %v1485_v46  ;;  %2855 = vmatprep.subr.bf16.mxu0 %v7674_v11  ;;  %v7801_v62 = vcombine.low %v1481_v37, %v1485_v46  ;;  %v1434_v41 = vld [vmem:[#allocation2 + $0x488] sm:$0xff]  ;;  %v7628_v35 = vcombine.high %v1306_v31, %v1310_v38  ;;  %v7627_v11 = vcombine.low %v1306_v31, %v1310_v38 }
 0x3ca   :  { %2856 = vmatpush2.bf16.msra.mxu0 %v7673_v60  ;;  %v1438_v42 = vld [vmem:[#allocation2 + $0x4a8] sm:$0xff] }
 0x3cb   :  { %2898 = vmatprep.subr.bf16.mxu1 %v7802_v12  ;;  %2911 = vmatprep.subr.bf16.mxu0 %v7668_v0  ;;  %v7756_v3 = vcombine.high %v1434_v41, %v1438_v42  ;;  %v1298_v37 = vld [vmem:[#allocation2 + $0x48] sm:$0xff]  ;;  %v7755_v12 = vcombine.low %v1434_v41, %v1438_v42 }
 0x3cc   :  { %2899 = vmatpush2.bf16.msra.mxu1 %v7801_v62  ;;  %v1302_v46 = vld [vmem:[#allocation2 + $0x68] sm:$0xff] }
 0x3cd   :  { %2954 = vmatprep.subr.bf16.mxu1 %v7796_v36  ;;  %2858 = vmatmul.mubr.bf16.vlgmr.msra.gmra.mxu0 %v9215_v9  ;;  %v1426_v48 = vld [vmem:[#allocation2 + $0x448] sm:$0xff]  ;;  %v7620_v52 = vcombine.high %v1298_v37, %v1302_v46  ;;  %v7619_v0 = vcombine.low %v1298_v37, %v1302_v46 }
 0x3ce   :  { %2912 = vmatpush1.bf16.msra.mxu0 %v7667_v15  ;;  %2943 = vmatprep.mubr.bf16.mxu0 %v9203_v63  ;;  %v1430_v50 = vld [vmem:[#allocation2 + $0x468] sm:$0xff] }
 0x3cf   :  { %2901 = vmatmul.mubr.bf16.vlgmr.msra.gmra.mxu1 %v9223_v14  ;;  %2913 = vmatprep.subr.bf16.mxu0 %v7660_v5  ;;  %v7748_v54 = vcombine.high %v1426_v48, %v1430_v50  ;;  %v1294_v58 = vld [vmem:[#allocation2 + $0x28] sm:$0xff]  ;;  %v7747_v36 = vcombine.low %v1426_v48, %v1430_v50 }
 0x3d0   :  { %2955 = vmatpush1.bf16.msra.mxu1 %v7795_v45  ;;  %2986 = vmatprep.mubr.bf16.mxu1 %v9205_v39  ;;  %v1418_v60 = vld [vmem:[#allocation2 + $0x408] sm:$0xff]  ;;  %v7612_v1 = vcombine.high %v1290_v56, %v1294_v58  ;;  %v7611_v5 = vcombine.low %v1290_v56, %v1294_v58 }
 0x3d1   :  { %2956 = vmatprep.subr.bf16.mxu1 %v7788_v47  ;;  %v1422_v62 = vld [vmem:[#allocation2 + $0x428] sm:$0xff] }
 0x3d2   :  { %2914 = vmatpush1.bf16.msra.mxu0 %v7659_v4  ;;  %v7740_v8 = vcombine.high %v1418_v60, %v1422_v62  ;;  %v1410_v10 = vld [vmem:[#allocation2 + $0x3c8] sm:$0xff]  ;;  %v7739_v47 = vcombine.low %v1418_v60, %v1422_v62 }
 0x3d3   :  { %2915 = vmatprep.subr.bf16.mxu0 %v7652_v6  ;;  %v1414_v13 = vld [vmem:[#allocation2 + $0x3e8] sm:$0xff] }
 0x3d4   :  { %2957 = vmatpush1.bf16.msra.mxu1 %v7787_v49  ;;  %v1538_v15 = vld [vmem:[#allocation2 + $0x7c8] sm:$0xff]  ;;  %v7732_v51 = vcombine.high %v1410_v10, %v1414_v13  ;;  %v7731_v6 = vcombine.low %v1410_v10, %v1414_v13 }
 0x3d5   :  { %2958 = vmatprep.subr.bf16.mxu1 %v7780_v53  ;;  %v1542_v45 = vld [vmem:[#allocation2 + $0x7e8] sm:$0xff] }
 0x3d6   :  { %2916 = vmatpush1.bf16.msra.mxu0 %v7651_v21  ;;  %v7860_v55 = vcombine.high %v1538_v15, %v1542_v45  ;;  %v1402_v59 = vld [vmem:[#allocation2 + $0x388] sm:$0xff]  ;;  %v7859_v53 = vcombine.low %v1538_v15, %v1542_v45 }
 0x3d7   :  { %2917 = vmatprep.subr.bf16.mxu0 %v7644_v23  ;;  %v1406_v16 = vld [vmem:[#allocation2 + $0x3a8] sm:$0xff] }
 0x3d8   :  { %2959 = vmatpush1.bf16.msra.mxu1 %v7779_v22  ;;  %v1530_v4 = vld [vmem:[#allocation2 + $0x788] sm:$0xff]  ;;  %v7724_v57 = vcombine.high %v1402_v59, %v1406_v16  ;;  %v7723_v23 = vcombine.low %v1402_v59, %v1406_v16 }
 0x3d9   :  { %2960 = vmatprep.subr.bf16.mxu1 %v7772_v24  ;;  %v1534_v49 = vld [vmem:[#allocation2 + $0x7a8] sm:$0xff] }
 0x3da   :  { %2918 = vmatpush1.bf16.msra.mxu0 %v7643_v32  ;;  %v7852_v61 = vcombine.high %v1530_v4, %v1534_v49  ;;  %v1394_v18 = vld [vmem:[#allocation2 + $0x348] sm:$0xff]  ;;  %v7851_v24 = vcombine.low %v1530_v4, %v1534_v49  ;;  %v1347_v4 = vld [vmem:[#allocation2 + $0x1d0] sm:$0xff] }
 0x3db   :  { %2919 = vmatprep.subr.bf16.mxu0 %v7636_v17  ;;  %v1398_v20 = vld [vmem:[#allocation2 + $0x368] sm:$0xff]  ;;  %v1351_v49 = vld [vmem:[#allocation2 + $0x1f0] sm:$0xff] }
 0x3dc   :  { %2961 = vmatpush1.bf16.msra.mxu1 %v7771_v40  ;;  %v1522_v21 = vld [vmem:[#allocation2 + $0x748] sm:$0xff]  ;;  %v7716_v26 = vcombine.high %v1394_v18, %v1398_v20  ;;  %v7715_v17 = vcombine.low %v1394_v18, %v1398_v20  ;;  %v7670_v18 = vcombine.high %v1347_v4, %v1351_v49 }
 0x3dd   :  { %2962 = vmatprep.subr.bf16.mxu1 %v7764_v19  ;;  %v1526_v22 = vld [vmem:[#allocation2 + $0x768] sm:$0xff] }
 0x3de   :  { %2920 = vmatpush1.bf16.msra.mxu0 %v7635_v43  ;;  %v7844_v28 = vcombine.high %v1522_v21, %v1526_v22  ;;  %v1386_v29 = vld [vmem:[#allocation2 + $0x308] sm:$0xff]  ;;  %v7843_v19 = vcombine.low %v1522_v21, %v1526_v22  ;;  %v1339_v21 = vld [vmem:[#allocation2 + $0x190] sm:$0xff] }
 0x3df   :  { %2921 = vmatprep.subr.bf16.mxu0 %v7628_v35  ;;  %v1390_v30 = vld [vmem:[#allocation2 + $0x328] sm:$0xff]  ;;  %v1343_v22 = vld [vmem:[#allocation2 + $0x1b0] sm:$0xff] }
 0x3e0   :  { %2963 = vmatpush1.bf16.msra.mxu1 %v7763_v44  ;;  %v1514_v32 = vld [vmem:[#allocation2 + $0x708] sm:$0xff]  ;;  %v7708_v31 = vcombine.high %v1386_v29, %v1390_v30  ;;  %v7707_v35 = vcombine.low %v1386_v29, %v1390_v30  ;;  %v7662_v29 = vcombine.high %v1339_v21, %v1343_v22 }
 0x3e1   :  { %2964 = vmatprep.subr.bf16.mxu1 %v7756_v3  ;;  %v1518_v40 = vld [vmem:[#allocation2 + $0x728] sm:$0xff] }
 0x3e2   :  { %2922 = vmatpush1.bf16.msra.mxu0 %v7627_v11  ;;  %v7836_v38 = vcombine.high %v1514_v32, %v1518_v40  ;;  %v1378_v41 = vld [vmem:[#allocation2 + $0x2c8] sm:$0xff]  ;;  %v7835_v3 = vcombine.low %v1514_v32, %v1518_v40  ;;  %v1331_v32 = vld [vmem:[#allocation2 + $0x150] sm:$0xff] }
 0x3e3   :  { %2923 = vmatprep.subr.bf16.mxu0 %v7620_v52  ;;  %v1382_v42 = vld [vmem:[#allocation2 + $0x2e8] sm:$0xff]  ;;  %v1335_v40 = vld [vmem:[#allocation2 + $0x170] sm:$0xff] }
 0x3e4   :  { %2965 = vmatpush1.bf16.msra.mxu1 %v7755_v12  ;;  %v1506_v43 = vld [vmem:[#allocation2 + $0x6c8] sm:$0xff]  ;;  %v7700_v37 = vcombine.high %v1378_v41, %v1382_v42  ;;  %v7699_v52 = vcombine.low %v1378_v41, %v1382_v42  ;;  %v7654_v41 = vcombine.high %v1331_v32, %v1335_v40 }
 0x3e5   :  { %2966 = vmatprep.subr.bf16.mxu1 %v7748_v54  ;;  %v1510_v44 = vld [vmem:[#allocation2 + $0x6e8] sm:$0xff] }
 0x3e6   :  { %2924 = vmatpush1.bf16.msra.mxu0 %v7619_v0  ;;  %v7828_v46 = vcombine.high %v1506_v43, %v1510_v44  ;;  %v1370_v48 = vld [vmem:[#allocation2 + $0x288] sm:$0xff]  ;;  %v7827_v54 = vcombine.low %v1506_v43, %v1510_v44  ;;  %v1323_v43 = vld [vmem:[#allocation2 + $0x110] sm:$0xff] }
 0x3e7   :  { %2925 = vmatprep.subr.bf16.mxu0 %v7612_v1  ;;  %v1374_v50 = vld [vmem:[#allocation2 + $0x2a8] sm:$0xff]  ;;  %v1327_v44 = vld [vmem:[#allocation2 + $0x130] sm:$0xff] }
 0x3e8   :  { %2967 = vmatpush1.bf16.msra.mxu1 %v7747_v36  ;;  %v1498_v11 = vld [vmem:[#allocation2 + $0x688] sm:$0xff]  ;;  %v7692_v56 = vcombine.high %v1370_v48, %v1374_v50  ;;  %v7691_v1 = vcombine.low %v1370_v48, %v1374_v50  ;;  %v7646_v48 = vcombine.high %v1323_v43, %v1327_v44 }
 0x3e9   :  { %2968 = vmatprep.subr.bf16.mxu1 %v7740_v8  ;;  %v1502_v12 = vld [vmem:[#allocation2 + $0x6a8] sm:$0xff] }
 0x3ea   :  { %2926 = vmatpush1.bf16.msra.mxu0 %v7611_v5  ;;  %v7820_v58 = vcombine.high %v1498_v11, %v1502_v12  ;;  %v1362_v60 = vld [vmem:[#allocation2 + $0x248] sm:$0xff]  ;;  %v7819_v8 = vcombine.low %v1498_v11, %v1502_v12  ;;  %v1315_v11 = vld [vmem:[#allocation2 + $0xd0] sm:$0xff] }
 0x3eb   :  { %2927 = vmatprep.subr.bf16.mxu0 %v7732_v51  ;;  %v1366_v62 = vld [vmem:[#allocation2 + $0x268] sm:$0xff]  ;;  %v1319_v12 = vld [vmem:[#allocation2 + $0xf0] sm:$0xff] }
 0x3ec   :  { %2969 = vmatpush1.bf16.msra.mxu1 %v7739_v47  ;;  %v1490_v0 = vld [vmem:[#allocation2 + $0x648] sm:$0xff]  ;;  %v7684_v10 = vcombine.high %v1362_v60, %v1366_v62  ;;  %v7683_v51 = vcombine.low %v1362_v60, %v1366_v62  ;;  %v7638_v60 = vcombine.high %v1315_v11, %v1319_v12 }
 0x3ed   :  { %2970 = vmatprep.subr.bf16.mxu1 %v7860_v55  ;;  %v1494_v36 = vld [vmem:[#allocation2 + $0x668] sm:$0xff] }
 0x3ee   :  { %2928 = vmatpush2.bf16.msra.mxu0 %v7731_v6  ;;  %v7812_v13 = vcombine.high %v1490_v0, %v1494_v36  ;;  %v1354_v15 = vld [vmem:[#allocation2 + $0x208] sm:$0xff]  ;;  %v7811_v55 = vcombine.low %v1490_v0, %v1494_v36  ;;  %v1475_v6 = vld [vmem:[#allocation2 + $0x5d0] sm:$0xff] }
 0x3ef   :  { %2929 = vmatprep.subr.bf16.mxu0 %v7724_v57  ;;  %v1358_v45 = vld [vmem:[#allocation2 + $0x228] sm:$0xff]  ;;  %v1307_v0 = vld [vmem:[#allocation2 + $0x90] sm:$0xff] }
 0x3f0   :  { %2971 = vmatpush2.bf16.msra.mxu1 %v7859_v53  ;;  %v1482_v5 = vld [vmem:[#allocation2 + $0x608] sm:$0xff]  ;;  %v7676_v59 = vcombine.high %v1354_v15, %v1358_v45  ;;  %v1479_v53 = vld [vmem:[#allocation2 + $0x5f0] sm:$0xff]  ;;  %v7675_v57 = vcombine.low %v1354_v15, %v1358_v45 }
 0x3f1   :  { %2972 = vmatprep.subr.bf16.mxu1 %v7852_v61  ;;  %v1486_v47 = vld [vmem:[#allocation2 + $0x628] sm:$0xff]  ;;  %v7798_v20 = vcombine.high %v1475_v6, %v1479_v53  ;;  %v1311_v36 = vld [vmem:[#allocation2 + $0xb0] sm:$0xff] }
 0x3f2   :  { %2930 = vmatpush2.bf16.msra.mxu0 %v7723_v23  ;;  %v7804_v16 = vcombine.high %v1482_v5, %v1486_v47  ;;  %v7803_v61 = vcombine.low %v1482_v5, %v1486_v47  ;;  %v1467_v23 = vld [vmem:[#allocation2 + $0x590] sm:$0xff]  ;;  %v7630_v15 = vcombine.high %v1307_v0, %v1311_v36 }
 0x3f3   :  { %2931 = vmatprep.subr.bf16.mxu0 %v7716_v26  ;;  %v7669_v26 = vcombine.low %v1347_v4, %v1351_v49  ;;  %v1299_v5 = vld [vmem:[#allocation2 + $0x50] sm:$0xff] }
 0x3f4   :  { %2973 = vmatpush2.bf16.msra.mxu1 %v7851_v24  ;;  %v1471_v24 = vld [vmem:[#allocation2 + $0x5b0] sm:$0xff] }
 0x3f5   :  { %2974 = vmatprep.subr.bf16.mxu1 %v7844_v28  ;;  %v7797_v28 = vcombine.low %v1475_v6, %v1479_v53  ;;  %v7790_v30 = vcombine.high %v1467_v23, %v1471_v24  ;;  %v1303_v47 = vld [vmem:[#allocation2 + $0x70] sm:$0xff] }
 0x3f6   :  { %2932 = vmatpush2.bf16.msra.mxu0 %v7715_v17  ;;  %v1459_v17 = vld [vmem:[#allocation2 + $0x550] sm:$0xff]  ;;  %v7622_v4 = vcombine.high %v1299_v5, %v1303_v47 }
 0x3f7   :  { %2933 = vmatprep.subr.bf16.mxu0 %v7708_v31  ;;  %v7661_v31 = vcombine.low %v1339_v21, %v1343_v22  ;;  %v1291_v6 = vld [vmem:[#allocation2 + $0x10] sm:$0xff] }
 0x3f8   :  { %2975 = vmatpush2.bf16.msra.mxu1 %v7843_v19  ;;  %v1463_v19 = vld [vmem:[#allocation2 + $0x570] sm:$0xff] }
 0x3f9   :  { %2976 = vmatprep.subr.bf16.mxu1 %v7836_v38  ;;  %v7789_v38 = vcombine.low %v1467_v23, %v1471_v24  ;;  %v7782_v42 = vcombine.high %v1459_v17, %v1463_v19  ;;  %v1295_v53 = vld [vmem:[#allocation2 + $0x30] sm:$0xff] }
 0x3fa   :  { %2934 = vmatpush2.bf16.msra.mxu0 %v7707_v35  ;;  %v1451_v35 = vld [vmem:[#allocation2 + $0x510] sm:$0xff]  ;;  %v7614_v21 = vcombine.high %v1291_v6, %v1295_v53 }
 0x3fb   :  { %2935 = vmatprep.subr.bf16.mxu0 %v7700_v37  ;;  %v7653_v37 = vcombine.low %v1331_v32, %v1335_v40  ;;  %v1411_v23 = vld [vmem:[#allocation2 + $0x3d0] sm:$0xff] }
 0x3fc   :  { %2977 = vmatpush2.bf16.msra.mxu1 %v7835_v3  ;;  %v1455_v3 = vld [vmem:[#allocation2 + $0x530] sm:$0xff] }
 0x3fd   :  { %2978 = vmatprep.subr.bf16.mxu1 %v7828_v46  ;;  %v7781_v46 = vcombine.low %v1459_v17, %v1463_v19  ;;  %v7774_v50 = vcombine.high %v1451_v35, %v1455_v3  ;;  %v1415_v24 = vld [vmem:[#allocation2 + $0x3f0] sm:$0xff] }
 0x3fe   :  { %2936 = vmatpush2.bf16.msra.mxu0 %v7699_v52  ;;  %v1443_v52 = vld [vmem:[#allocation2 + $0x4d0] sm:$0xff]  ;;  %v7734_v32 = vcombine.high %v1411_v23, %v1415_v24 }
 0x3ff   :  { %2937 = vmatprep.subr.bf16.mxu0 %v7692_v56  ;;  %v7645_v56 = vcombine.low %v1323_v43, %v1327_v44  ;;  %v1403_v17 = vld [vmem:[#allocation2 + $0x390] sm:$0xff] }
 0x400   :  { %2979 = vmatpush2.bf16.msra.mxu1 %v7827_v54  ;;  %v1447_v54 = vld [vmem:[#allocation2 + $0x4f0] sm:$0xff] }
 0x401   :  { %2980 = vmatprep.subr.bf16.mxu1 %v7820_v58  ;;  %v7773_v58 = vcombine.low %v1451_v35, %v1455_v3  ;;  %v7766_v62 = vcombine.high %v1443_v52, %v1447_v54  ;;  %v1407_v19 = vld [vmem:[#allocation2 + $0x3b0] sm:$0xff] }
 0x402   :  { %2938 = vmatpush2.bf16.msra.mxu0 %v7691_v1  ;;  %v1435_v1 = vld [vmem:[#allocation2 + $0x490] sm:$0xff]  ;;  %v7726_v43 = vcombine.high %v1403_v17, %v1407_v19 }
 0x403   :  { %2939 = vmatprep.subr.bf16.mxu0 %v7684_v10  ;;  %v7637_v10 = vcombine.low %v1315_v11, %v1319_v12  ;;  %v1395_v35 = vld [vmem:[#allocation2 + $0x350] sm:$0xff] }
 0x404   :  { %2981 = vmatpush2.bf16.msra.mxu1 %v7819_v8  ;;  %v1439_v8 = vld [vmem:[#allocation2 + $0x4b0] sm:$0xff] }
 0x405   :  { %2982 = vmatprep.subr.bf16.mxu1 %v7812_v13  ;;  %v7765_v13 = vcombine.low %v1443_v52, %v1447_v54  ;;  %v7758_v45 = vcombine.high %v1435_v1, %v1439_v8  ;;  %v1399_v3 = vld [vmem:[#allocation2 + $0x370] sm:$0xff] }
 0x406   :  { %2940 = vmatpush2.bf16.msra.mxu0 %v7683_v51  ;;  %v1427_v51 = vld [vmem:[#allocation2 + $0x450] sm:$0xff]  ;;  %v7718_v11 = vcombine.high %v1395_v35, %v1399_v3 }
 0x407   :  { %2941 = vmatprep.subr.bf16.mxu0 %v7676_v59  ;;  %v7629_v59 = vcombine.low %v1307_v0, %v1311_v36  ;;  %v1387_v52 = vld [vmem:[#allocation2 + $0x310] sm:$0xff] }
 0x408   :  { %2983 = vmatpush2.bf16.msra.mxu1 %v7811_v55  ;;  %v1431_v55 = vld [vmem:[#allocation2 + $0x470] sm:$0xff] }
 0x409   :  { %2984 = vmatprep.subr.bf16.mxu1 %v7804_v16  ;;  %v7757_v16 = vcombine.low %v1435_v1, %v1439_v8  ;;  %v7750_v49 = vcombine.high %v1427_v51, %v1431_v55  ;;  %v1391_v54 = vld [vmem:[#allocation2 + $0x330] sm:$0xff] }
 0x40a   :  { %2942 = vmatpush2.bf16.msra.mxu0 %v7675_v57  ;;  %v1419_v57 = vld [vmem:[#allocation2 + $0x410] sm:$0xff]  ;;  %v7710_v0 = vcombine.high %v1387_v52, %v1391_v54 }
 0x40b   :  { %2997 = vmatprep.subr.bf16.mxu0 %v7670_v18  ;;  %v7621_v18 = vcombine.low %v1299_v5, %v1303_v47  ;;  %v1379_v1 = vld [vmem:[#allocation2 + $0x2d0] sm:$0xff] }
 0x40c   :  { %2985 = vmatpush2.bf16.msra.mxu1 %v7803_v61  ;;  %v1423_v61 = vld [vmem:[#allocation2 + $0x430] sm:$0xff] }
 0x40d   :  { %3040 = vmatprep.subr.bf16.mxu1 %v7798_v20  ;;  %2944 = vmatmul.mubr.bf16.vlgmr.msra.gmra.mxu0 %v9215_v9  ;;  %v7749_v20 = vcombine.low %v1427_v51, %v1431_v55  ;;  %v7742_v22 = vcombine.high %v1419_v57, %v1423_v61  ;;  %v1383_v8 = vld [vmem:[#allocation2 + $0x2f0] sm:$0xff] }
 0x40e   :  { %2998 = vmatpush1.bf16.msra.mxu0 %v7669_v26  ;;  %3029 = vmatprep.mubr.bf16.mxu0 %v9203_v63  ;;  %v1539_v26 = vld [vmem:[#allocation2 + $0x7d0] sm:$0xff]  ;;  %v7702_v5 = vcombine.high %v1379_v1, %v1383_v8 }
 0x40f   :  { %2987 = vmatmul.mubr.bf16.vlgmr.msra.gmra.mxu1 %v9223_v14  ;;  %2999 = vmatprep.subr.bf16.mxu0 %v7662_v29  ;;  %v7613_v29 = vcombine.low %v1291_v6, %v1295_v53  ;;  %v1371_v51 = vld [vmem:[#allocation2 + $0x290] sm:$0xff] }
 0x410   :  { %3041 = vmatpush1.bf16.msra.mxu1 %v7797_v28  ;;  %3072 = vmatprep.mubr.bf16.mxu1 %v9205_v39  ;;  %v1543_v28 = vld [vmem:[#allocation2 + $0x7f0] sm:$0xff] }
 0x411   :  { %3042 = vmatprep.subr.bf16.mxu1 %v7790_v30  ;;  %v7741_v30 = vcombine.low %v1419_v57, %v1423_v61  ;;  %v7862_v40 = vcombine.high %v1539_v26, %v1543_v28  ;;  %v1375_v55 = vld [vmem:[#allocation2 + $0x2b0] sm:$0xff] }
 0x412   :  { %3000 = vmatpush1.bf16.msra.mxu0 %v7661_v31  ;;  %v1531_v31 = vld [vmem:[#allocation2 + $0x790] sm:$0xff]  ;;  %v7694_v6 = vcombine.high %v1371_v51, %v1375_v55 }
 0x413   :  { %3001 = vmatprep.subr.bf16.mxu0 %v7654_v41  ;;  %v7733_v41 = vcombine.low %v1411_v23, %v1415_v24  ;;  %v1363_v57 = vld [vmem:[#allocation2 + $0x250] sm:$0xff] }
 0x414   :  { %3043 = vmatpush1.bf16.msra.mxu1 %v7789_v38  ;;  %v1535_v38 = vld [vmem:[#allocation2 + $0x7b0] sm:$0xff] }
 0x415   :  { %3044 = vmatprep.subr.bf16.mxu1 %v7782_v42  ;;  %v7861_v42 = vcombine.low %v1539_v26, %v1543_v28  ;;  %v7854_v44 = vcombine.high %v1531_v31, %v1535_v38  ;;  %v1367_v61 = vld [vmem:[#allocation2 + $0x270] sm:$0xff] }
 0x416   :  { %3002 = vmatpush1.bf16.msra.mxu0 %v7653_v37  ;;  %v1523_v37 = vld [vmem:[#allocation2 + $0x750] sm:$0xff]  ;;  %v7686_v23 = vcombine.high %v1363_v57, %v1367_v61 }
 0x417   :  { %3003 = vmatprep.subr.bf16.mxu0 %v7646_v48  ;;  %v7725_v48 = vcombine.low %v1403_v17, %v1407_v19  ;;  %v1355_v26 = vld [vmem:[#allocation2 + $0x210] sm:$0xff] }
 0x418   :  { %3045 = vmatpush1.bf16.msra.mxu1 %v7781_v46  ;;  %v1527_v46 = vld [vmem:[#allocation2 + $0x770] sm:$0xff] }
 0x419   :  { %3046 = vmatprep.subr.bf16.mxu1 %v7774_v50  ;;  %v7853_v50 = vcombine.low %v1531_v31, %v1535_v38  ;;  %v7846_v12 = vcombine.high %v1523_v37, %v1527_v46  ;;  %v1359_v28 = vld [vmem:[#allocation2 + $0x230] sm:$0xff]  ;;  %v1348_v31 = vld [vmem:[#allocation2 + $0x1d8] sm:$0xff] }
 0x41a   :  { %3004 = vmatpush1.bf16.msra.mxu0 %v7645_v56  ;;  %v1515_v56 = vld [vmem:[#allocation2 + $0x710] sm:$0xff]  ;;  %v7678_v17 = vcombine.high %v1355_v26, %v1359_v28  ;;  %v1352_v38 = vld [vmem:[#allocation2 + $0x1f8] sm:$0xff] }
 0x41b   :  { %3005 = vmatprep.subr.bf16.mxu0 %v7638_v60  ;;  %v7717_v60 = vcombine.low %v1395_v35, %v1399_v3  ;;  %v7672_v35 = vcombine.high %v1348_v31, %v1352_v38 }
 0x41c   :  { %3047 = vmatpush1.bf16.msra.mxu1 %v7773_v58  ;;  %v1519_v58 = vld [vmem:[#allocation2 + $0x730] sm:$0xff] }
 0x41d   :  { %3048 = vmatprep.subr.bf16.mxu1 %v7766_v62  ;;  %v7845_v62 = vcombine.low %v1523_v37, %v1527_v46  ;;  %v7838_v36 = vcombine.high %v1515_v56, %v1519_v58  ;;  %v1340_v37 = vld [vmem:[#allocation2 + $0x198] sm:$0xff] }
 0x41e   :  { %3006 = vmatpush1.bf16.msra.mxu0 %v7637_v10  ;;  %v1507_v10 = vld [vmem:[#allocation2 + $0x6d0] sm:$0xff]  ;;  %v1344_v46 = vld [vmem:[#allocation2 + $0x1b8] sm:$0xff] }
 0x41f   :  { %3007 = vmatprep.subr.bf16.mxu0 %v7630_v15  ;;  %v7709_v15 = vcombine.low %v1387_v52, %v1391_v54  ;;  %v7664_v52 = vcombine.high %v1340_v37, %v1344_v46 }
 0x420   :  { %3049 = vmatpush1.bf16.msra.mxu1 %v7765_v13  ;;  %v1511_v13 = vld [vmem:[#allocation2 + $0x6f0] sm:$0xff] }
 0x421   :  { %3050 = vmatprep.subr.bf16.mxu1 %v7758_v45  ;;  %v7837_v45 = vcombine.low %v1515_v56, %v1519_v58  ;;  %v7830_v47 = vcombine.high %v1507_v10, %v1511_v13  ;;  %v1332_v56 = vld [vmem:[#allocation2 + $0x158] sm:$0xff] }
 0x422   :  { %3008 = vmatpush1.bf16.msra.mxu0 %v7629_v59  ;;  %v1499_v59 = vld [vmem:[#allocation2 + $0x690] sm:$0xff]  ;;  %v1336_v58 = vld [vmem:[#allocation2 + $0x178] sm:$0xff] }
 0x423   :  { %3009 = vmatprep.subr.bf16.mxu0 %v7622_v4  ;;  %v7701_v4 = vcombine.low %v1379_v1, %v1383_v8  ;;  %v7656_v1 = vcombine.high %v1332_v56, %v1336_v58 }
 0x424   :  { %3051 = vmatpush1.bf16.msra.mxu1 %v7757_v16  ;;  %v1503_v16 = vld [vmem:[#allocation2 + $0x6b0] sm:$0xff] }
 0x425   :  { %3052 = vmatprep.subr.bf16.mxu1 %v7750_v49  ;;  %v7829_v49 = vcombine.low %v1507_v10, %v1511_v13  ;;  %v7822_v53 = vcombine.high %v1499_v59, %v1503_v16  ;;  %v1324_v10 = vld [vmem:[#allocation2 + $0x118] sm:$0xff] }
 0x426   :  { %3010 = vmatpush1.bf16.msra.mxu0 %v7621_v18  ;;  %v1491_v18 = vld [vmem:[#allocation2 + $0x650] sm:$0xff]  ;;  %v1328_v13 = vld [vmem:[#allocation2 + $0x138] sm:$0xff] }
 0x427   :  { %3011 = vmatprep.subr.bf16.mxu0 %v7614_v21  ;;  %v7693_v21 = vcombine.low %v1371_v51, %v1375_v55  ;;  %v7648_v51 = vcombine.high %v1324_v10, %v1328_v13 }
 0x428   :  { %3053 = vmatpush1.bf16.msra.mxu1 %v7749_v20  ;;  %v1495_v20 = vld [vmem:[#allocation2 + $0x670] sm:$0xff] }
 0x429   :  { %3054 = vmatprep.subr.bf16.mxu1 %v7742_v22  ;;  %v7821_v22 = vcombine.low %v1499_v59, %v1503_v16  ;;  %v7814_v24 = vcombine.high %v1491_v18, %v1495_v20  ;;  %v1316_v59 = vld [vmem:[#allocation2 + $0xd8] sm:$0xff] }
 0x42a   :  { %3012 = vmatpush1.bf16.msra.mxu0 %v7613_v29  ;;  %v1483_v29 = vld [vmem:[#allocation2 + $0x610] sm:$0xff]  ;;  %v1320_v16 = vld [vmem:[#allocation2 + $0xf8] sm:$0xff] }
 0x42b   :  { %3013 = vmatprep.subr.bf16.mxu0 %v7734_v32  ;;  %v7685_v32 = vcombine.low %v1363_v57, %v1367_v61  ;;  %v1308_v57 = vld [vmem:[#allocation2 + $0x98] sm:$0xff] }
 0x42c   :  { %3055 = vmatpush1.bf16.msra.mxu1 %v7741_v30  ;;  %v1487_v30 = vld [vmem:[#allocation2 + $0x630] sm:$0xff]  ;;  %v1312_v61 = vld [vmem:[#allocation2 + $0xb8] sm:$0xff] }
 0x42d   :  { %3056 = vmatprep.subr.bf16.mxu1 %v7862_v40  ;;  %v7813_v40 = vcombine.low %v1491_v18, %v1495_v20  ;;  %v7806_v19 = vcombine.high %v1483_v29, %v1487_v30  ;;  %v1436_v18 = vld [vmem:[#allocation2 + $0x498] sm:$0xff] }
 0x42e   :  { %3014 = vmatpush2.bf16.msra.mxu0 %v7733_v41  ;;  %v1476_v41 = vld [vmem:[#allocation2 + $0x5d8] sm:$0xff] }
 0x42f   :  { %3015 = vmatprep.subr.bf16.mxu0 %v7726_v43  ;;  %v7677_v43 = vcombine.low %v1355_v26, %v1359_v28  ;;  %v1440_v20 = vld [vmem:[#allocation2 + $0x4b8] sm:$0xff] }
 0x430   :  { %3057 = vmatpush2.bf16.msra.mxu1 %v7861_v42  ;;  %v1480_v42 = vld [vmem:[#allocation2 + $0x5f8] sm:$0xff] }
 0x431   :  { %3058 = vmatprep.subr.bf16.mxu1 %v7854_v44  ;;  %v7805_v44 = vcombine.low %v1483_v29, %v1487_v30  ;;  %v7800_v3 = vcombine.high %v1476_v41, %v1480_v42  ;;  %v1300_v26 = vld [vmem:[#allocation2 + $0x58] sm:$0xff] }
 0x432   :  { %3016 = vmatpush2.bf16.msra.mxu0 %v7725_v48  ;;  %v1468_v48 = vld [vmem:[#allocation2 + $0x598] sm:$0xff] }
 0x433   :  { %3017 = vmatprep.subr.bf16.mxu0 %v7718_v11  ;;  %v7671_v11 = vcombine.low %v1348_v31, %v1352_v38  ;;  %v1304_v28 = vld [vmem:[#allocation2 + $0x78] sm:$0xff] }
 0x434   :  { %3059 = vmatpush2.bf16.msra.mxu1 %v7853_v50  ;;  %v1472_v50 = vld [vmem:[#allocation2 + $0x5b8] sm:$0xff] }
 0x435   :  { %3060 = vmatprep.subr.bf16.mxu1 %v7846_v12  ;;  %v7799_v12 = vcombine.low %v1476_v41, %v1480_v42  ;;  %v7792_v54 = vcombine.high %v1468_v48, %v1472_v50  ;;  %v1428_v29 = vld [vmem:[#allocation2 + $0x458] sm:$0xff] }
 0x436   :  { %3018 = vmatpush2.bf16.msra.mxu0 %v7717_v60  ;;  %v1460_v60 = vld [vmem:[#allocation2 + $0x558] sm:$0xff] }
 0x437   :  { %3019 = vmatprep.subr.bf16.mxu0 %v7710_v0  ;;  %v7663_v0 = vcombine.low %v1340_v37, %v1344_v46  ;;  %v1432_v30 = vld [vmem:[#allocation2 + $0x478] sm:$0xff] }
 0x438   :  { %3061 = vmatpush2.bf16.msra.mxu1 %v7845_v62  ;;  %v1464_v62 = vld [vmem:[#allocation2 + $0x578] sm:$0xff] }
 0x439   :  { %3062 = vmatprep.subr.bf16.mxu1 %v7838_v36  ;;  %v7791_v36 = vcombine.low %v1468_v48, %v1472_v50  ;;  %v7784_v8 = vcombine.high %v1460_v60, %v1464_v62  ;;  %v1292_v31 = vld [vmem:[#allocation2 + $0x18] sm:$0xff] }
 0x43a   :  { %3020 = vmatpush2.bf16.msra.mxu0 %v7709_v15  ;;  %v1452_v15 = vld [vmem:[#allocation2 + $0x518] sm:$0xff] }
 0x43b   :  { %3021 = vmatprep.subr.bf16.mxu0 %v7702_v5  ;;  %v7655_v5 = vcombine.low %v1332_v56, %v1336_v58  ;;  %v1296_v38 = vld [vmem:[#allocation2 + $0x38] sm:$0xff] }
 0x43c   :  { %3063 = vmatpush2.bf16.msra.mxu1 %v7837_v45  ;;  %v1456_v45 = vld [vmem:[#allocation2 + $0x538] sm:$0xff] }
 0x43d   :  { %3064 = vmatprep.subr.bf16.mxu1 %v7830_v47  ;;  %v7783_v47 = vcombine.low %v1460_v60, %v1464_v62  ;;  %v7776_v55 = vcombine.high %v1452_v15, %v1456_v45  ;;  %v1420_v41 = vld [vmem:[#allocation2 + $0x418] sm:$0xff] }
 0x43e   :  { %3022 = vmatpush2.bf16.msra.mxu0 %v7701_v4  ;;  %v1444_v4 = vld [vmem:[#allocation2 + $0x4d8] sm:$0xff] }
 0x43f   :  { %3023 = vmatprep.subr.bf16.mxu0 %v7694_v6  ;;  %v7647_v6 = vcombine.low %v1324_v10, %v1328_v13  ;;  %v1424_v42 = vld [vmem:[#allocation2 + $0x438] sm:$0xff] }
 0x440   :  { %3065 = vmatpush2.bf16.msra.mxu1 %v7829_v49  ;;  %v1448_v49 = vld [vmem:[#allocation2 + $0x4f8] sm:$0xff] }
 0x441   :  { %3066 = vmatprep.subr.bf16.mxu1 %v7822_v53  ;;  %v7640_v53 = vcombine.high %v1316_v59, %v1320_v16  ;;  %v1412_v37 = vld [vmem:[#allocation2 + $0x3d8] sm:$0xff] }
 0x442   :  { %3024 = vmatpush2.bf16.msra.mxu0 %v7693_v21  ;;  %v7639_v21 = vcombine.low %v1316_v59, %v1320_v16  ;;  %v1416_v46 = vld [vmem:[#allocation2 + $0x3f8] sm:$0xff] }
 0x443   :  { %3025 = vmatprep.subr.bf16.mxu0 %v7686_v23  ;;  %v7632_v23 = vcombine.high %v1308_v57, %v1312_v61  ;;  %v1540_v48 = vld [vmem:[#allocation2 + $0x7d8] sm:$0xff] }
 0x444   :  { %3067 = vmatpush2.bf16.msra.mxu1 %v7821_v22  ;;  %v7767_v22 = vcombine.low %v1444_v4, %v1448_v49  ;;  %v1544_v50 = vld [vmem:[#allocation2 + $0x7f8] sm:$0xff] }
 0x445   :  { %3068 = vmatprep.subr.bf16.mxu1 %v7814_v24  ;;  %v7760_v24 = vcombine.high %v1436_v18, %v1440_v20  ;;  %v1404_v56 = vld [vmem:[#allocation2 + $0x398] sm:$0xff] }
 0x446   :  { %3026 = vmatpush2.bf16.msra.mxu0 %v7685_v32  ;;  %v7631_v32 = vcombine.low %v1308_v57, %v1312_v61  ;;  %v1408_v58 = vld [vmem:[#allocation2 + $0x3b8] sm:$0xff] }
 0x447   :  { %3027 = vmatprep.subr.bf16.mxu0 %v7678_v17  ;;  %v7624_v17 = vcombine.high %v1300_v26, %v1304_v28  ;;  %v1532_v60 = vld [vmem:[#allocation2 + $0x798] sm:$0xff] }
 0x448   :  { %3069 = vmatpush2.bf16.msra.mxu1 %v7813_v40  ;;  %v7759_v40 = vcombine.low %v1436_v18, %v1440_v20  ;;  %v1536_v62 = vld [vmem:[#allocation2 + $0x7b8] sm:$0xff] }
 0x449   :  { %3070 = vmatprep.subr.bf16.mxu1 %v7806_v19  ;;  %v7752_v19 = vcombine.high %v1428_v29, %v1432_v30  ;;  %v1396_v10 = vld [vmem:[#allocation2 + $0x358] sm:$0xff] }
 0x44a   :  { %3028 = vmatpush2.bf16.msra.mxu0 %v7677_v43  ;;  %v7623_v43 = vcombine.low %v1300_v26, %v1304_v28  ;;  %v1400_v13 = vld [vmem:[#allocation2 + $0x378] sm:$0xff] }
 0x44b   :  { %3083 = vmatprep.subr.bf16.mxu0 %v7672_v35  ;;  %v7616_v35 = vcombine.high %v1292_v31, %v1296_v38  ;;  %v1388_v59 = vld [vmem:[#allocation2 + $0x318] sm:$0xff] }
 0x44c   :  { %3071 = vmatpush2.bf16.msra.mxu1 %v7805_v44  ;;  %v7751_v44 = vcombine.low %v1428_v29, %v1432_v30  ;;  %v1392_v16 = vld [vmem:[#allocation2 + $0x338] sm:$0xff] }
 0x44d   :  { %3126 = vmatprep.subr.bf16.mxu1 %v7800_v3  ;;  %3030 = vmatmul.mubr.bf16.vlgmr.msra.gmra.mxu0 %v9215_v9  ;;  %v7744_v3 = vcombine.high %v1420_v41, %v1424_v42  ;;  %v1380_v57 = vld [vmem:[#allocation2 + $0x2d8] sm:$0xff] }
 0x44e   :  { %3084 = vmatpush1.bf16.msra.mxu0 %v7671_v11  ;;  %3115 = vmatprep.mubr.bf16.mxu0 %v9203_v63  ;;  %v7775_v63 = vcombine.low %v1452_v15, %v1456_v45  ;;  %v7615_v11 = vcombine.low %v1292_v31, %v1296_v38  ;;  %v1524_v15 = vld [vmem:[#allocation2 + $0x758] sm:$0xff] }
 0x44f   :  { %3073 = vmatmul.mubr.bf16.vlgmr.msra.gmra.mxu1 %v9223_v14  ;;  %3085 = vmatprep.subr.bf16.mxu0 %v7664_v52  ;;  %v7736_v52 = vcombine.high %v1412_v37, %v1416_v46  ;;  %v1528_v45 = vld [vmem:[#allocation2 + $0x778] sm:$0xff] }
 0x450   :  { %3127 = vmatpush1.bf16.msra.mxu1 %v7799_v12  ;;  %3158 = vmatprep.mubr.bf16.mxu1 %v9205_v39  ;;  %v7768_v39 = vcombine.high %v1444_v4, %v1448_v49  ;;  %v7743_v12 = vcombine.low %v1420_v41, %v1424_v42  ;;  %v1516_v4 = vld [vmem:[#allocation2 + $0x718] sm:$0xff] }
 0x451   :  { %3128 = vmatprep.subr.bf16.mxu1 %v7792_v54  ;;  %v7864_v54 = vcombine.high %v1540_v48, %v1544_v50  ;;  %v1520_v49 = vld [vmem:[#allocation2 + $0x738] sm:$0xff] }
 0x452   :  { %3086 = vmatpush1.bf16.msra.mxu0 %v7663_v0  ;;  %v7735_v0 = vcombine.low %v1412_v37, %v1416_v46  ;;  %v1384_v61 = vld [vmem:[#allocation2 + $0x2f8] sm:$0xff] }
 0x453   :  { %3087 = vmatprep.subr.bf16.mxu0 %v7656_v1  ;;  %v7728_v1 = vcombine.high %v1404_v56, %v1408_v58  ;;  %v1508_v18 = vld [vmem:[#allocation2 + $0x6d8] sm:$0xff] }
 0x454   :  { %3129 = vmatpush1.bf16.msra.mxu1 %v7791_v36  ;;  %v7863_v36 = vcombine.low %v1540_v48, %v1544_v50  ;;  %v1512_v20 = vld [vmem:[#allocation2 + $0x6f8] sm:$0xff] }
 0x455   :  { %3130 = vmatprep.subr.bf16.mxu1 %v7784_v8  ;;  %v7856_v8 = vcombine.high %v1532_v60, %v1536_v62  ;;  %v1372_v26 = vld [vmem:[#allocation2 + $0x298] sm:$0xff] }
 0x456   :  { %3088 = vmatpush1.bf16.msra.mxu0 %v7655_v5  ;;  %v7727_v5 = vcombine.low %v1404_v56, %v1408_v58  ;;  %v1376_v28 = vld [vmem:[#allocation2 + $0x2b8] sm:$0xff] }
 0x457   :  { %3089 = vmatprep.subr.bf16.mxu0 %v7648_v51  ;;  %v7720_v51 = vcombine.high %v1396_v10, %v1400_v13  ;;  %v1500_v29 = vld [vmem:[#allocation2 + $0x698] sm:$0xff] }
 0x458   :  { %3131 = vmatpush1.bf16.msra.mxu1 %v7783_v47  ;;  %v7855_v47 = vcombine.low %v1532_v60, %v1536_v62  ;;  %v1504_v30 = vld [vmem:[#allocation2 + $0x6b8] sm:$0xff] }
 0x459   :  { %3132 = vmatprep.subr.bf16.mxu1 %v7776_v55  ;;  %v7848_v55 = vcombine.high %v1524_v15, %v1528_v45  ;;  %v1364_v31 = vld [vmem:[#allocation2 + $0x258] sm:$0xff] }
 0x45a   :  { %3090 = vmatpush1.bf16.msra.mxu0 %v7647_v6  ;;  %v7719_v6 = vcombine.low %v1396_v10, %v1400_v13  ;;  %v1368_v38 = vld [vmem:[#allocation2 + $0x278] sm:$0xff] }
 0x45b   :  { %3091 = vmatprep.subr.bf16.mxu0 %v7640_v53  ;;  %v7712_v53 = vcombine.high %v1388_v59, %v1392_v16  ;;  %v1492_v41 = vld [vmem:[#allocation2 + $0x658] sm:$0xff] }
 0x45c   :  { %3133 = vmatpush1.bf16.msra.mxu1 %v7775_v63  ;;  %v7847_v63 = vcombine.low %v1524_v15, %v1528_v45  ;;  %v1496_v42 = vld [vmem:[#allocation2 + $0x678] sm:$0xff] }
 0x45d   :  { %3134 = vmatprep.subr.bf16.mxu1 %v7768_v39  ;;  %v7840_v39 = vcombine.high %v1516_v4, %v1520_v49  ;;  %v1356_v37 = vld [vmem:[#allocation2 + $0x218] sm:$0xff] }
 0x45e   :  { %3092 = vmatpush1.bf16.msra.mxu0 %v7639_v21  ;;  %v7711_v21 = vcombine.low %v1388_v59, %v1392_v16  ;;  %v1360_v46 = vld [vmem:[#allocation2 + $0x238] sm:$0xff] }
 0x45f   :  { %3093 = vmatprep.subr.bf16.mxu0 %v7632_v23  ;;  %v7704_v23 = vcombine.high %v1380_v57, %v1384_v61  ;;  %v1484_v48 = vld [vmem:[#allocation2 + $0x618] sm:$0xff]  ;;  %v7679_v56 = vcombine.low %v1356_v37, %v1360_v46 }
 0x460   :  { %3135 = vmatpush1.bf16.msra.mxu1 %v7767_v22  ;;  %v7839_v22 = vcombine.low %v1516_v4, %v1520_v49  ;;  %v1488_v50 = vld [vmem:[#allocation2 + $0x638] sm:$0xff] }
 0x461   :  { %3136 = vmatprep.subr.bf16.mxu1 %v7760_v24  ;;  %v7832_v24 = vcombine.high %v1508_v18, %v1512_v20  ;;  %v7807_v58 = vcombine.low %v1484_v48, %v1488_v50 }
 0x462   :  { %3094 = vmatpush1.bf16.msra.mxu0 %v7631_v32  ;;  %v7703_v32 = vcombine.low %v1380_v57, %v1384_v61 }
 0x463   :  { %3095 = vmatprep.subr.bf16.mxu0 %v7624_v17  ;;  %v7696_v17 = vcombine.high %v1372_v26, %v1376_v28 }
 0x464   :  { %3137 = vmatpush1.bf16.msra.mxu1 %v7759_v40  ;;  %v7831_v40 = vcombine.low %v1508_v18, %v1512_v20 }
 0x465   :  { %3138 = vmatprep.subr.bf16.mxu1 %v7752_v19  ;;  %v7824_v19 = vcombine.high %v1500_v29, %v1504_v30 }
 0x466   :  { %3096 = vmatpush1.bf16.msra.mxu0 %v7623_v43  ;;  %v7695_v43 = vcombine.low %v1372_v26, %v1376_v28 }
 0x467   :  { %3097 = vmatprep.subr.bf16.mxu0 %v7616_v35  ;;  %v7688_v35 = vcombine.high %v1364_v31, %v1368_v38 }
 0x468   :  { %3139 = vmatpush1.bf16.msra.mxu1 %v7751_v44  ;;  %v7823_v44 = vcombine.low %v1500_v29, %v1504_v30 }
 0x469   :  { %3140 = vmatprep.subr.bf16.mxu1 %v7744_v3  ;;  %v7816_v3 = vcombine.high %v1492_v41, %v1496_v42 }
 0x46a   :  { %3098 = vmatpush1.bf16.msra.mxu0 %v7615_v11  ;;  %v7687_v11 = vcombine.low %v1364_v31, %v1368_v38 }
 0x46b   :  { %3099 = vmatprep.subr.bf16.mxu0 %v7736_v52  ;;  %v7680_v52 = vcombine.high %v1356_v37, %v1360_v46 }
 0x46c   :  { %3141 = vmatpush1.bf16.msra.mxu1 %v7743_v12  ;;  %v7815_v12 = vcombine.low %v1492_v41, %v1496_v42 }
 0x46d   :  { %3142 = vmatprep.subr.bf16.mxu1 %v7864_v54  ;;  %v7808_v54 = vcombine.high %v1484_v48, %v1488_v50 }
 0x46e   :  { %3100 = vmatpush2.bf16.msra.mxu0 %v7735_v0 }
 0x46f   :  { %3101 = vmatprep.subr.bf16.mxu0 %v7728_v1 }
 0x470   :  { %3143 = vmatpush2.bf16.msra.mxu1 %v7863_v36 }
 0x471   :  { %3144 = vmatprep.subr.bf16.mxu1 %v7856_v8 }
 0x472   :  { %3102 = vmatpush2.bf16.msra.mxu0 %v7727_v5 }
 0x473   :  { %3103 = vmatprep.subr.bf16.mxu0 %v7720_v51 }
 0x474   :  { %3145 = vmatpush2.bf16.msra.mxu1 %v7855_v47 }
 0x475   :  { %3146 = vmatprep.subr.bf16.mxu1 %v7848_v55 }
 0x476   :  { %3104 = vmatpush2.bf16.msra.mxu0 %v7719_v6 }
 0x477   :  { %3105 = vmatprep.subr.bf16.mxu0 %v7712_v53 }
 0x478   :  { %3147 = vmatpush2.bf16.msra.mxu1 %v7847_v63 }
 0x479   :  { %3148 = vmatprep.subr.bf16.mxu1 %v7840_v39 }
 0x47a   :  { %3106 = vmatpush2.bf16.msra.mxu0 %v7711_v21 }
 0x47b   :  { %3107 = vmatprep.subr.bf16.mxu0 %v7704_v23 }
 0x47c   :  { %3149 = vmatpush2.bf16.msra.mxu1 %v7839_v22 }
 0x47d   :  { %3150 = vmatprep.subr.bf16.mxu1 %v7832_v24 }
 0x47e   :  { %3108 = vmatpush2.bf16.msra.mxu0 %v7703_v32 }
 0x47f   :  { %3109 = vmatprep.subr.bf16.mxu0 %v7696_v17 }
 0x480   :  { %3151 = vmatpush2.bf16.msra.mxu1 %v7831_v40 }
 0x481   :  { %3152 = vmatprep.subr.bf16.mxu1 %v7824_v19 }
 0x482   :  { %3110 = vmatpush2.bf16.msra.mxu0 %v7695_v43 }
 0x483   :  { %3111 = vmatprep.subr.bf16.mxu0 %v7688_v35 }
 0x484   :  { %3153 = vmatpush2.bf16.msra.mxu1 %v7823_v44 }
 0x485   :  { %3154 = vmatprep.subr.bf16.mxu1 %v7816_v3 }
 0x486   :  { %3112 = vmatpush2.bf16.msra.mxu0 %v7687_v11 }
 0x487   :  { %3113 = vmatprep.subr.bf16.mxu0 %v7680_v52 }
 0x488   :  { %3155 = vmatpush2.bf16.msra.mxu1 %v7815_v12 }
 0x489   :  { %3156 = vmatprep.subr.bf16.mxu1 %v7808_v54 }
 0x48a   :  { %3114 = vmatpush2.bf16.msra.mxu0 %v7679_v56 }
 0x48c   :  { %3157 = vmatpush2.bf16.msra.mxu1 %v7807_v58 }
 0x48d   :  { %3116 = vmatmul.mubr.bf16.vlgmr.msra.gmra.mxu0 %v9215_v9  ;;  %v2859_v60 = vpop.f32.mrf.mxu0 }
 0x48f   :  { %3159 = vmatmul.mubr.bf16.vlgmr.msra.gmra.mxu1 %v9223_v14  ;;  %v2902_v62 = vpop.f32.mrf.mxu1  ;;  %v2861_v0 = vpop.f32.mrf.mxu0 }
 0x490   :  { %v9247_v20 = vadd.f32 %v2902_v62, %v2859_v60 }
 0x491   :  { %v2904_v36 = vpop.f32.mrf.mxu1  ;;  %v2863_v1 = vpop.f32.mrf.mxu0 }
 0x492   :  { %v9249_v21 = vadd.f32 %v2904_v36, %v2861_v0  ;;  %v3251_v30 = vmul.f32 %v9247_v20, %v9247_v20 }
 0x493   :  { %v2906_v8 = vpop.f32.mrf.mxu1  ;;  %v2865_v10 = vpop.f32.mrf.mxu0 }
 0x494   :  { %v9239_v6 = vadd.f32 %v2906_v8, %v2863_v1  ;;  %v3252_v17 = vmul.f32 %v9249_v21, %v9249_v21 }
 0x495   :  { %v2908_v13 = vpop.f32.mrf.mxu1 }
 0x496   :  { %v9241_v63 = vadd.f32 %v2908_v13, %v2865_v10  ;;  %v3179_v61 = vmul.f32 0.0, %v9239_v6 }
 0x498   :  { %v3180_v18 = vmul.f32 0.0, %v9241_v63  ;;  %v3259_v28 = vmul.f32 %v3179_v61, %v9239_v6  ;;  %v3187_v19 = vadd.f32 %v3179_v61, %v9247_v20 }
 0x49a   :  { %v3260_v29 = vmul.f32 %v3180_v18, %v9241_v63  ;;  %v3194_v31 = vadd.f32 %v3180_v18, %v9249_v21  ;;  %v3267_v43 = vadd.f32 %v3259_v28, %v3251_v30  ;;  %v3188_v48 = vrot.slane %v3187_v19, 4 }
 0x49c   :  { %v3274_v44 = vadd.f32 %v3260_v29, %v3252_v17  ;;  %v3195_v50 = vrot.slane %v3194_v31, 4  ;;  %v3268_v58 = vrot.slane %v3267_v43, 4  ;;  %v3189_v10 = vadd.f32 %v3188_v48, %v3187_v19 }
 0x49e   :  { %v3275_v60 = vrot.slane %v3274_v44, 4  ;;  %v3196_v13 = vadd.f32 %v3195_v50, %v3194_v31 }
 0x4cd   :  { %v2945_v15 = vpop.f32.mrf.mxu0 }
 0x4cf   :  { %v2988_v45 = vpop.f32.mrf.mxu1  ;;  %v2947_v5 = vpop.f32.mrf.mxu0 }
 0x4d0   :  { %v9270_v35 = vadd.f32 %v2988_v45, %v2945_v15 }
 0x4d1   :  { %v2990_v47 = vpop.f32.mrf.mxu1  ;;  %v2949_v51 = vpop.f32.mrf.mxu0 }
 0x4d2   :  { %v9258_v32 = vadd.f32 %v2990_v47, %v2947_v5  ;;  %v3253_v62 = vmul.f32 %v9270_v35, %v9270_v35 }
 0x4d3   :  { %v2992_v55 = vpop.f32.mrf.mxu1  ;;  %v2951_v59 = vpop.f32.mrf.mxu0 }
 0x4d4   :  { %v9251_v22 = vadd.f32 %v2992_v55, %v2949_v51  ;;  %v3254_v3 = vmul.f32 %v9258_v32, %v9258_v32 }
 0x4d5   :  { %v2994_v16 = vpop.f32.mrf.mxu1 }
 0x4d6   :  { %v9243_v57 = vadd.f32 %v2994_v16, %v2951_v59  ;;  %v3181_v38 = vmul.f32 0.0, %v9251_v22  ;;  %v3269_v59 = vadd.f32 %v3268_v58, %v3267_v43  ;;  %v3276_v16 = vadd.f32 %v3275_v60, %v3274_v44 }
 0x4d8   :  { %v3182_v26 = vmul.f32 0.0, %v9243_v57  ;;  %v3201_v11 = vadd.f32 %v3181_v38, %v9270_v35  ;;  %v3261_v12 = vmul.f32 %v3181_v38, %v9251_v22  ;;  %v3270_v28 = vrot.slane %v3269_v59, 2 }
 0x4d9   :  { %v3277_v29 = vrot.slane %v3276_v16, 2 }
 0x4da   :  { %v3262_v41 = vmul.f32 %v3182_v26, %v9243_v57  ;;  %v3208_v37 = vadd.f32 %v3182_v26, %v9258_v32  ;;  %v3202_v15 = vrot.slane %v3201_v11, 4  ;;  %v3281_v45 = vadd.f32 %v3261_v12, %v3253_v62 }
 0x4db   :  { %v3278_v48 = vadd.f32 %v3277_v29, %v3276_v16 }
 0x4dc   :  { %v3288_v52 = vadd.f32 %v3262_v41, %v3254_v3  ;;  %v3209_v0 = vrot.slane %v3208_v37, 4  ;;  %v3203_v61 = vadd.f32 %v3202_v15, %v3201_v11  ;;  %v3282_v18 = vrot.slane %v3281_v45, 4 }
 0x4de   :  { %v3289_v5 = vrot.slane %v3288_v52, 4  ;;  %v3204_v41 = vrot.slane %v3203_v61, 2  ;;  %v3283_v43 = vadd.f32 %v3282_v18, %v3281_v45 }
 0x4e0   :  { %v3205_v58 = vadd.f32 %v3204_v41, %v3203_v61  ;;  %v3284_v60 = vrot.slane %v3283_v43, 2 }
 0x50d   :  { %v3031_v4 = vpop.f32.mrf.mxu0 }
 0x50f   :  { %v3074_v9 = vpop.f32.mrf.mxu1  ;;  %v3033_v49 = vpop.f32.mrf.mxu0 }
 0x510   :  { %v9283_v36 = vadd.f32 %v3074_v9, %v3031_v4  ;;  %v3210_v4 = vadd.f32 %v3209_v0, %v3208_v37 }
 0x511   :  { %v3076_v14 = vpop.f32.mrf.mxu1  ;;  %v3035_v53 = vpop.f32.mrf.mxu0 }
 0x512   :  { %v9278_v54 = vadd.f32 %v3076_v14, %v3033_v49  ;;  %v3255_v9 = vmul.f32 %v9283_v36, %v9283_v36  ;;  %v3211_v30 = vrot.slane %v3210_v4, 2 }
 0x513   :  { %v3078_v39 = vpop.f32.mrf.mxu1  ;;  %v3037_v23 = vpop.f32.mrf.mxu0 }
 0x514   :  { %v9268_v42 = vadd.f32 %v3078_v39, %v3035_v53  ;;  %v3256_v47 = vmul.f32 %v9278_v54, %v9278_v54  ;;  %v3190_v53 = vrot.slane %v3189_v10, 2  ;;  %v3197_v39 = vrot.slane %v3196_v13, 2 }
 0x515   :  { %v3080_v24 = vpop.f32.mrf.mxu1  ;;  %v3212_v50 = vadd.f32 %v3211_v30, %v3210_v4 }
 0x516   :  { %v9260_v40 = vadd.f32 %v3080_v24, %v3037_v23  ;;  %v3183_v56 = vmul.f32 0.0, %v9268_v42  ;;  %v3290_v23 = vadd.f32 %v3289_v5, %v3288_v52  ;;  %v3191_v31 = vadd.f32 %v3190_v53, %v3189_v10 }
 0x517   :  { %v3198_v38 = vadd.f32 %v3197_v39, %v3196_v13  ;;  %v3279_v10 = vrot.slane %v3278_v48, 1  ;;  %v3213_v13 = vrot.slane %v3212_v50, 1 }
 0x518   :  { %v3184_v46 = vmul.f32 0.0, %v9260_v40  ;;  %v3215_v51 = vadd.f32 %v3183_v56, %v9283_v36  ;;  %v3263_v55 = vmul.f32 %v3183_v56, %v9268_v42  ;;  %v3291_v44 = vrot.slane %v3290_v23, 2 }
 0x519   :  { %v3192_v52 = vrot.slane %v3191_v31, 1  ;;  %v3199_v56 = vrot.slane %v3198_v38, 1  ;;  %v3280_v53 = vadd.f32 %v3279_v10, %v3278_v48  ;;  %v3214_v61 = vadd.f32 %v3213_v13, %v3212_v50 }
 0x51a   :  { %v3222_v1 = vadd.f32 %v3184_v46, %v9278_v54  ;;  %v3264_v8 = vmul.f32 %v3184_v46, %v9260_v40  ;;  %v3216_v24 = vrot.slane %v3215_v51, 4  ;;  %v3295_v26 = vadd.f32 %v3263_v55, %v3255_v9 }
 0x51b   :  { %v3271_v46 = vadd.f32 %v3270_v28, %v3269_v59  ;;  %v3292_v62 = vadd.f32 %v3291_v44, %v3290_v23  ;;  %v3193_v5 = vadd.f32 %v3192_v52, %v3191_v31  ;;  %v3285_v59 = vadd.f32 %v3284_v60, %v3283_v43 }
 0x51c   :  { %v3223_v49 = vrot.slane %v3222_v1, 4  ;;  %v3302_v14 = vadd.f32 %v3264_v8, %v3256_v47  ;;  %v3217_v3 = vadd.f32 %v3216_v24, %v3215_v51  ;;  %v3296_v37 = vrot.slane %v3295_v26, 4 }
 0x51d   :  { %v3272_v8 = vrot.slane %v3271_v46, 1  ;;  %v3200_v47 = vadd.f32 %v3199_v56, %v3198_v38  ;;  %v3206_v51 = vrot.slane %v3205_v58, 1  ;;  %v3293_v16 = vrot.slane %v3292_v62, 1 }
 0x51e   :  { %v3224_v17 = vadd.f32 %v3223_v49, %v3222_v1  ;;  %v3303_v19 = vrot.slane %v3302_v14, 4  ;;  %v3218_v0 = vrot.slane %v3217_v3, 2  ;;  %v3297_v1 = vadd.f32 %v3296_v37, %v3295_v26 }
 0x51f   :  { %v9293_v26 = vmul.f32 0.125, %v3193_v5  ;;  %v9295_v28 = vmul.f32 0.125, %v3200_v47  ;;  %v3207_v29 = vadd.f32 %v3206_v51, %v3205_v58  ;;  %v3324_v44 = vmul.f32 0.125, %v3280_v53 }
 0x520   :  { %v3225_v11 = vrot.slane %v3224_v17, 2  ;;  %v3304_v12 = vadd.f32 %v3303_v19, %v3302_v14  ;;  %v3219_v4 = vadd.f32 %v3218_v0, %v3217_v3  ;;  %v3298_v9 = vrot.slane %v3297_v1, 2 }
 0x521   :  { %v3273_v14 = vadd.f32 %v3272_v8, %v3271_v46  ;;  %v3294_v19 = vadd.f32 %v3293_v16, %v3292_v62  ;;  %v9303_v48 = vmul.f32 0.125, %v3214_v61  ;;  %v3332_v56 = vmul.f32 %v9295_v28, %v9295_v28 }
 0x522   :  { %v3226_v15 = vadd.f32 %v3225_v11, %v3224_v17  ;;  %v3305_v45 = vrot.slane %v3304_v12, 2  ;;  %v3286_v17 = vrot.slane %v3285_v59, 1  ;;  %v3220_v31 = vrot.slane %v3219_v4, 1 }
 0x523   :  { %v3299_v38 = vadd.f32 %v3298_v9, %v3297_v1  ;;  %v9297_v43 = vmul.f32 0.125, %v3273_v14  ;;  %v9309_v58 = vmul.f32 0.125, %v3207_v29  ;;  %v3326_v1 = vmul.f32 0.125, %v3294_v19 }
 0x524   :  { %v3227_v18 = vrot.slane %v3226_v15, 1  ;;  %v3306_v23 = vadd.f32 %v3305_v45, %v3304_v12  ;;  %v3287_v0 = vadd.f32 %v3286_v17, %v3285_v59  ;;  %v3221_v8 = vadd.f32 %v3220_v31, %v3219_v4 }
 0x525   :  { %v3300_v10 = vrot.slane %v3299_v38, 1  ;;  %v3334_v47 = vmul.f32 %v9303_v48, %v9303_v48  ;;  %v3333_v53 = vmul.f32 %v9309_v58, %v9309_v58 }
 0x526   :  { %v3228_v50 = vadd.f32 %v3227_v18, %v3226_v15  ;;  %v3307_v11 = vrot.slane %v3306_v23, 1  ;;  %v3325_v14 = vmul.f32 0.125, %v3287_v0 }
 0x527   :  { %v3301_v61 = vadd.f32 %v3300_v10, %v3299_v38  ;;  %v3342_v17 = vsub.f32 %v3326_v1, %v3334_v47 }
 0x528   :  { %v9321_v51 = vmul.f32 0.125, %v3228_v50 }
 0x529   :  { %v3327_v0 = vmul.f32 0.125, %v3301_v61 }
 0x52a   :  { %v3336_v31 = vmul.f32 %v9321_v51, %v9321_v51 }
 0x54d   :  { %v3117_v55 = vpop.f32.mrf.mxu0 }
 0x54f   :  { %v3160_v49 = vpop.f32.mrf.mxu1  ;;  %v3119_v39 = vpop.f32.mrf.mxu0 }
 0x550   :  { %v9299_v3 = vadd.f32 %v3160_v49, %v3117_v55  ;;  %v3308_v55 = vadd.f32 %v3307_v11, %v3306_v23 }
 0x551   :  { %v3162_v24 = vpop.f32.mrf.mxu1  ;;  %v3121_v30 = vpop.f32.mrf.mxu0 }
 0x552   :  { %v9305_v12 = vadd.f32 %v3162_v24, %v3119_v39  ;;  %v3257_v13 = vmul.f32 %v9299_v3, %v9299_v3  ;;  %v9329_v39 = vmul.f32 0.125, %v3221_v8  ;;  %v3328_v19 = vmul.f32 0.125, %v3308_v55 }
 0x553   :  { %v3164_v41 = vpop.f32.mrf.mxu1  ;;  %v3123_v46 = vpop.f32.mrf.mxu0 }
 0x554   :  { %v9301_v37 = vadd.f32 %v3164_v41, %v3121_v30  ;;  %v3258_v59 = vmul.f32 %v9305_v12, %v9305_v12  ;;  %v3331_v30 = vmul.f32 %v9293_v26, %v9293_v26  ;;  %v3335_v38 = vmul.f32 %v9329_v39, %v9329_v39 }
 0x555   :  { %v3166_v52 = vpop.f32.mrf.mxu1 }
 0x556   :  { %v3185_v60 = vmul.f32 0.0, %v9301_v37  ;;  %v9312_v62 = vadd.f32 %v3166_v52, %v3123_v46  ;;  %v3340_v52 = vsub.f32 %v3324_v44, %v3332_v56  ;;  %v3339_v1 = vsub.f32 %v9297_v43, %v3331_v30 }
 0x557   :  { %v3343_v44 = vsub.f32 %v3327_v0, %v3335_v38 }
 0x558   :  { %v3229_v15 = vadd.f32 %v3185_v60, %v9299_v3  ;;  %v3265_v45 = vmul.f32 %v3185_v60, %v9301_v37  ;;  %v3186_v5 = vmul.f32 0.0, %v9312_v62  ;;  %v3341_v60 = vsub.f32 %v3325_v14, %v3333_v53 }
 0x559   :  { %v3347_v61 = vmax.f32 %v3339_v1, 0.0 }
 0x55a   :  { %v3230_v16 = vrot.slane %v3229_v15, 4  ;;  %v3309_v4 = vadd.f32 %v3265_v45, %v3257_v13  ;;  %v3236_v9 = vadd.f32 %v3186_v5, %v9305_v12  ;;  %v3266_v49 = vmul.f32 %v3186_v5, %v9312_v62 }
 0x55b   :  { %v3350_v45 = vmax.f32 %v3342_v17, 0.0  ;;  %v3344_v5 = vsub.f32 %v3328_v19, %v3336_v31  ;;  %v3351_v31 = vmax.f32 %v3343_v44, 0.0 }
 0x55c   :  { %v3231_v18 = vadd.f32 %v3230_v16, %v3229_v15  ;;  %v3310_v24 = vrot.slane %v3309_v4, 4  ;;  %v3237_v29 = vrot.slane %v3236_v9, 4  ;;  %v3316_v23 = vadd.f32 %v3266_v49, %v3258_v59 }
 0x55e   :  { %v3232_v41 = vrot.slane %v3231_v18, 2  ;;  %v3311_v46 = vadd.f32 %v3310_v24, %v3309_v4  ;;  %v3238_v50 = vadd.f32 %v3237_v29, %v3236_v9  ;;  %v3317_v11 = vrot.slane %v3316_v23, 4 }
 0x55f   :  { %v3348_v4 = vmax.f32 %v3340_v52, 0.0  ;;  %v3349_v9 = vmax.f32 %v3341_v60, 0.0  ;;  %v3352_v24 = vmax.f32 %v3344_v5, 0.0  ;;  %v3355_v52 = vadd.f32 0.8, %v3347_v61 }
 0x560   :  { %v3233_v8 = vadd.f32 %v3232_v41, %v3231_v18  ;;  %v3312_v10 = vrot.slane %v3311_v46, 2  ;;  %v3239_v13 = vrot.slane %v3238_v50, 2  ;;  %v3318_v15 = vadd.f32 %v3317_v11, %v3316_v23 }
 0x561   :  { %v3358_v18 = vadd.f32 0.8, %v3350_v45  ;;  %v3356_v17 = vadd.f32 0.8, %v3348_v4  ;;  %v3357_v19 = vadd.f32 0.8, %v3349_v9 }
 0x562   :  { %v3234_v47 = vrot.slane %v3233_v8, 1  ;;  %v3313_v55 = vadd.f32 %v3312_v10, %v3311_v46  ;;  %v3240_v59 = vadd.f32 %v3239_v13, %v3238_v50  ;;  %v3319_v16 = vrot.slane %v3318_v15, 2 }
 0x563   :  { %8550 = vrsqrt.f32 %v3358_v18  ;;  %v3360_v60 = vadd.f32 0.8, %v3352_v24  ;;  %v3359_v10 = vadd.f32 0.8, %v3351_v31 }
 0x564   :  { %v3235_v56 = vadd.f32 %v3234_v47, %v3233_v8  ;;  %v3314_v49 = vrot.slane %v3313_v55, 1  ;;  %v3241_v14 = vrot.slane %v3240_v59, 1  ;;  %v3320_v53 = vadd.f32 %v3319_v16, %v3318_v15 }
 0x565   :  { %8552 = vrsqrt.f32 %v3356_v17 }
 0x566   :  { %v9338_v29 = vmul.f32 0.125, %v3235_v56  ;;  %v3315_v23 = vadd.f32 %v3314_v49, %v3313_v55  ;;  %v3242_v43 = vadd.f32 %v3241_v14, %v3240_v59  ;;  %v3321_v30 = vrot.slane %v3320_v53, 1 }
 0x567   :  { %8554 = vrsqrt.f32 %v3357_v19 }
 0x568   :  { %v3329_v41 = vmul.f32 0.125, %v3315_v23  ;;  %v3337_v46 = vmul.f32 %v9338_v29, %v9338_v29  ;;  %v9342_v50 = vmul.f32 0.125, %v3242_v43  ;;  %v3322_v11 = vadd.f32 %v3321_v30, %v3320_v53 }
 0x569   :  { %8556 = vrsqrt.f32 %v3355_v52  ;;  %v9356_v52 = vsub.s32 5, %v9082_v25 }
 0x56a   :  { %v3345_v0 = vsub.f32 %v3329_v41, %v3337_v46  ;;  %v3330_v38 = vmul.f32 0.125, %v3322_v11  ;;  %v3338_v8 = vmul.f32 %v9342_v50, %v9342_v50  ;;  %8558 = vrsqrt.f32 %v3360_v60  ;;  %v3169_v41 = vld [vmem:[#allocation20] sm:$0xff] }
 0x56b   :  { %8560 = vrsqrt.f32 %v3359_v10  ;;  %v9353_v11 = vsub.s32 4, %v9082_v25  ;;  %v9359_v60 = vsub.s32 6, %v9082_v25 }
 0x56c   :  { %v3353_v13 = vmax.f32 %v3345_v0, 0.0  ;;  %v3346_v15 = vsub.f32 %v3330_v38, %v3338_v8  ;;  %v9362_v0 = vsub.s32 7, %v9082_v25 }
 0x56e   :  { %v3361_v1 = vadd.f32 0.8, %v3353_v13  ;;  %v3354_v45 = vmax.f32 %v3346_v15, 0.0 }
 0x570   :  { %v3362_v5 = vadd.f32 0.8, %v3354_v45  ;;  %8562 = vrsqrt.f32 %v3361_v1  ;;  %v8551_v47 = vpop.eup %8550 }
 0x572   :  { %8564 = vrsqrt.f32 %v3362_v5  ;;  %v8553_v55 = vpop.eup %8552 }
 0x574   :  { %v8555_v59 = vpop.eup %8554 }
 0x575   :  { %v3380_v4 = vcombine.low %v8555_v59, %v8551_v47 }
 0x576   :  { %v8557_v16 = vpop.eup %8556 }
 0x577   :  { %v8559_v9 = vpop.eup %8558  ;;  %v3379_v44 = vcombine.low %v8557_v16, %v8553_v55  ;;  %v3396_v14 = vrot.slane %v3380_v4, %v9085_v27 }
 0x578   :  { %v8561_v56 = vpop.eup %8560 }
 0x579   :  { %v3381_v53 = vcombine.low %v8561_v56, %v8559_v9  ;;  %v3389_v18 = vrot.slane %v3379_v44, %v9085_v27 }
 0x57b   :  { %v3411_v23 = vcombine.low %v3389_v18, %v3396_v14  ;;  %v3403_v43 = vrot.slane %v3381_v53, %v9085_v27 }
 0x57d   :  { %v8563_v49 = vpop.eup %8562  ;;  %v3419_v19 = vrot.slane %v3411_v23, %v9085_v27 }
 0x57f   :  { %v8565_v61 = vpop.eup %8564 }
 0x580   :  { %v3382_v24 = vcombine.low %v8563_v49, %v8565_v61 }
 0x582   :  { %v3410_v30 = vrot.slane %v3382_v24, %v9085_v27  ;;  %v3170_v24 = vld [vmem:[#allocation22] sm:$0xff] }
 0x584   :  { %v3412_v17 = vcombine.low %v3403_v43, %v3410_v30 }
 0x586   :  { %v3426_v31 = vrot.slane %v3412_v17, %v9085_v27 }
 0x588   :  { %v3427_v46 = vcombine.low %v3419_v19, %v3426_v31 }
 0x58a   :  { %v3429_v38 = vmul.f32 %v3427_v46, %v3169_v41 }
 0x58c   :  { %v3434_v8 = vrot.slane %v3429_v38, %v9090_v33  ;;  %v3438_v10 = vrot.slane %v3429_v38, %v9093_v34  ;;  %v3442_v13 = vrot.slane %v3429_v38, %v9151_v2  ;;  %v3446_v15 = vrot.slane %v3429_v38, %v9154_v7 }
 0x58d   :  { %v3450_v1 = vrot.slane %v3429_v38, %v9353_v11  ;;  %v3454_v45 = vrot.slane %v3429_v38, %v9356_v52  ;;  %v3458_v5 = vrot.slane %v3429_v38, %v9359_v60  ;;  %v3462_v47 = vrot.slane %v3429_v38, %v9362_v0 }
 0x58e   :  { %v3471_v25 = vmul.f32 %v3434_v8, %v9293_v26  ;;  %v3472_v55 = vmul.f32 %v3438_v10, %v9295_v28  ;;  %v3473_v59 = vmul.f32 %v3442_v13, %v9309_v58  ;;  %v3474_v16 = vmul.f32 %v3446_v15, %v9303_v48 }
 0x58f   :  { %v3475_v4 = vmul.f32 %v3450_v1, %v9329_v39  ;;  %v3476_v9 = vmul.f32 %v3454_v45, %v9321_v51  ;;  %v3477_v44 = vmul.f32 %v3458_v5, %v9338_v29  ;;  %v3478_v56 = vmul.f32 %v3462_v47, %v9342_v50 }
 0x590   :  { %v3487_v49 = vcombine.low %v3471_v25, %v3472_v55  ;;  %v3488_v14 = vcombine.low %v3473_v59, %v3474_v16  ;;  %v3538_v23 = vmul.f32 %v3434_v8, %v9247_v20  ;;  %v3539_v43 = vmul.f32 %v3438_v10, %v9249_v21 }
 0x591   :  { %v3489_v53 = vcombine.low %v3475_v4, %v3476_v9  ;;  %v3490_v61 = vcombine.low %v3477_v44, %v3478_v56  ;;  %v3540_v30 = vmul.f32 %v3442_v13, %v9270_v35  ;;  %v3541_v17 = vmul.f32 %v3446_v15, %v9258_v32 }
 0x592   :  { %v3497_v26 = vrot.slane %v3487_v49, %v9085_v27  ;;  %v3504_v28 = vrot.slane %v3488_v14, %v9085_v27  ;;  %v3542_v19 = vmul.f32 %v3450_v1, %v9283_v36  ;;  %v3543_v31 = vmul.f32 %v3454_v45, %v9278_v54 }
 0x593   :  { %v3511_v58 = vrot.slane %v3489_v53, %v9085_v27  ;;  %v3518_v48 = vrot.slane %v3490_v61, %v9085_v27  ;;  %v3544_v41 = vmul.f32 %v3458_v5, %v9299_v3  ;;  %v3545_v38 = vmul.f32 %v3462_v47, %v9305_v12 }
 0x594   :  { %v3519_v18 = vcombine.low %v3497_v26, %v3504_v28  ;;  %v3547_v25 = vmul.f32 %v3438_v10, %v9241_v63  ;;  %v3548_v20 = vmul.f32 %v3442_v13, %v9251_v22  ;;  %v3549_v21 = vmul.f32 %v3446_v15, %v9243_v57 }
 0x595   :  { %v3520_v39 = vcombine.low %v3511_v58, %v3518_v48  ;;  %v3550_v35 = vmul.f32 %v3450_v1, %v9268_v42  ;;  %v3551_v32 = vmul.f32 %v3454_v45, %v9260_v40  ;;  %v3552_v42 = vmul.f32 %v3458_v5, %v9301_v37 }
 0x596   :  { %v3527_v51 = vrot.slane %v3519_v18, %v9085_v27  ;;  %v3553_v13 = vmul.f32 %v3462_v47, %v9312_v62 }
 0x597   :  { %v3534_v29 = vrot.slane %v3520_v39, %v9085_v27  ;;  %v3546_v27 = vmul.f32 %v3434_v8, %v9239_v6 }
 0x599   :  { %v3535_v50 = vcombine.low %v3527_v51, %v3534_v29 }
 0x59b   :  { %v3537_v46 = vsub.f32 %v3170_v24, %v3535_v50 }
 0x59d   :  { %v3558_v36 = vrot.slane %v3537_v46, %v9090_v33  ;;  %v3562_v54 = vrot.slane %v3537_v46, %v9093_v34  ;;  %v3566_v3 = vrot.slane %v3537_v46, %v9151_v2  ;;  %v3570_v12 = vrot.slane %v3537_v46, %v9154_v7 }
 0x59e   :  { %v3574_v6 = vrot.slane %v3537_v46, %v9353_v11  ;;  %v3578_v63 = vrot.slane %v3537_v46, %v9356_v52  ;;  %v3582_v22 = vrot.slane %v3537_v46, %v9359_v60  ;;  %v3586_v57 = vrot.slane %v3537_v46, %v9362_v0 }
 0x59f   :  { %v9409_v8 = vadd.f32 %v3558_v36, %v3538_v23  ;;  %v3596_v40 = vadd.f32 %v3562_v54, %v3539_v43  ;;  %v9411_v10 = vadd.f32 %v3566_v3, %v3540_v30  ;;  %v3598_v15 = vadd.f32 %v3570_v12, %v3541_v17 }
 0x5a0   :  { %v9414_v1 = vadd.f32 %v3574_v6, %v3542_v19  ;;  %v9416_v45 = vadd.f32 %v3578_v63, %v3543_v31  ;;  %v9418_v55 = vadd.f32 %v3582_v22, %v3544_v41  ;;  %v9420_v59 = vadd.f32 %v3586_v57, %v3545_v38 }
 0x5a1   :  { %v9422_v16 = vadd.f32 %v3558_v36, %v3546_v27  ;;  %v3604_v4 = vadd.f32 %v3562_v54, %v3547_v25  ;;  %v9424_v37 = vadd.f32 %v3566_v3, %v3548_v20  ;;  %v3606_v5 = vadd.f32 %v3570_v12, %v3549_v21 }
 0x5a2   :  { %v9426_v9 = vadd.f32 %v3574_v6, %v3550_v35  ;;  %v9428_v44 = vadd.f32 %v3578_v63, %v3551_v32  ;;  %v9430_v62 = vadd.f32 %v3582_v22, %v3552_v42  ;;  %v9433_v47 = vmul.f32 0.2, %v9409_v8 }
 0x5a3   :  { %v3612_v56 = vmul.f32 0.2, %v3596_v40  ;;  %v9436_v49 = vmul.f32 0.2, %v9411_v10  ;;  %v9438_v14 = vadd.f32 %v3586_v57, %v3553_v13  ;;  %v3614_v53 = vmul.f32 0.2, %v3598_v15 }
 0x5a4   :  { %v9441_v61 = vmul.f32 0.2, %v9414_v1  ;;  %v9444_v26 = vmul.f32 0.2, %v9416_v45  ;;  %v9447_v28 = vmul.f32 0.2, %v9418_v55  ;;  %v3627_v18 = vmax.f32 %v9409_v8, %v9433_v47 }
 0x5a5   :  { %v9450_v58 = vmul.f32 0.2, %v9420_v59  ;;  %v9453_v48 = vmul.f32 0.2, %v9422_v16  ;;  %v3620_v39 = vmul.f32 0.2, %v3604_v4  ;;  %v3628_v24 = vmax.f32 %v3596_v40, %v3612_v56 }
 0x5a6   :  { %v9458_v51 = vmul.f32 0.2, %v9424_v37  ;;  %v3622_v29 = vmul.f32 0.2, %v3606_v5  ;;  %v9461_v50 = vmul.f32 0.2, %v9426_v9  ;;  %v3629_v30 = vmax.f32 %v9411_v10, %v9436_v49 }
 0x5a7   :  { %v9464_v23 = vmul.f32 0.2, %v9428_v44  ;;  %v9467_v43 = vmul.f32 0.2, %v9430_v62  ;;  %v9472_v17 = vmul.f32 0.2, %v9438_v14  ;;  %v3630_v19 = vmax.f32 %v3598_v15, %v3614_v53 }
 0x5a8   :  { %v3632_v41 = vmax.f32 %v9416_v45, %v9444_v26  ;;  %v3635_v27 = vmax.f32 %v9422_v16, %v9453_v48  ;;  %v3636_v25 = vmax.f32 %v3604_v4, %v3620_v39  ;;  %v3637_v20 = vmax.f32 %v9424_v37, %v9458_v51 }
 0x5a9   :  { %v3638_v21 = vmax.f32 %v3606_v5, %v3622_v29  ;;  %v3640_v32 = vmax.f32 %v9428_v44, %v9464_v23 }
 0x5aa   :  { %8915 = dma.done.wait [#allocation4 + $0x1], 65536 }
 0x5ab   :  { %8916 = vsyncadd [#allocation4 + $0x1], 4294901760  ;;  %v9494_v3 = vpack.c.bf16 %v3636_v25, %v3628_v24  ;;  %v9496_v12 = vpack.c.bf16 %v3638_v21, %v3630_v19  ;;  %v3711_v6 = vld [vmem:[#allocation3 + $0x1c0] sm:$0xff]  ;;  %v9522_v10 = vpack.c.bf16 %v3640_v32, %v3632_v41  ;;  %v9611_v51 = vmax.f32 %v9420_v59, %v9450_v58  ;;  %s8943_s9 = smov [#allocation25]  }
 0x5ac   :  { %v3715_v63 = vld [vmem:[#allocation3 + $0x1e0] sm:$0xff]  ;;  %s7494_s12 = sshll.u32 %s8943_s9, 4  ;;  %s7495_s12 = int_to_ptr.vmem [resolvable:$true] %s7494_s12 }
 0x5ad   :  { %6801 = vmatprep.mubr.bf16.mxu0 %v9494_v3  ;;  %6844 = vmatprep.mubr.bf16.mxu1 %v9496_v12  ;;  %v3839_v22 = vld [vmem:[#allocation3 + $0x5c0] sm:$0xff]  ;;  %v7922_v57 = vcombine.high %v3711_v6, %v3715_v63  ;;  %v7921_v40 = vcombine.low %v3711_v6, %v3715_v63  ;;  %s8879_s23 = scalar_lea.vmem %s7495_s12, 2048  ;;  %p8884_p1 = scmp.lt.s32.totalorder %s7495_s12, %s7495_s12 }
 0x5ae   :  { %v3843_v42 = vld [vmem:[#allocation3 + $0x5e0] sm:$0xff]  ;;  %p8880_p0 = scmp.ne.s32.totalorder %s7495_s12, %s8879_s23  ;;  %p8885_p2 = scmp.lt.s32.totalorder %s8879_s23, %s8879_s23 }
 0x5af   :  { %v3703_v13 = vld [vmem:[#allocation3 + $0x180] sm:$0xff]  ;;  %v8050_v4 = vcombine.high %v3839_v22, %v3843_v42  ;;  %v8049_v5 = vcombine.low %v3839_v22, %v3843_v42  ;;  %6769 = vmatprep.subr.bf16.mxu0 %v7922_v57 }
 0x5b0   :  { %v3707_v15 = vld [vmem:[#allocation3 + $0x1a0] sm:$0xff]  ;;  %6770 = vmatpush1.bf16.msra.mxu0 %v7921_v40  ;;  %p8886_p3 = por %p8885_p2, %p8884_p1 }
 0x5b1   :  { %v7914_v56 = vcombine.high %v3703_v13, %v3707_v15  ;;  %v3831_v53 = vld [vmem:[#allocation3 + $0x580] sm:$0xff]  ;;  %6812 = vmatprep.subr.bf16.mxu1 %v8050_v4  ;;  %v7913_v36 = vcombine.low %v3703_v13, %v3707_v15 }
 0x5b2   :  { %v3835_v39 = vld [vmem:[#allocation3 + $0x5a0] sm:$0xff]  ;;  %6813 = vmatpush1.bf16.msra.mxu1 %v8049_v5  ;;  %p8887_p4 = pnand %p8886_p3, %p8880_p0 }
 0x5b3   :  { %v3695_v29 = vld [vmem:[#allocation3 + $0x140] sm:$0xff]  ;;  %v8042_v24 = vcombine.high %v3831_v53, %v3835_v39  ;;  %6771 = vmatprep.subr.bf16.mxu0 %v7914_v56  ;;  %v8041_v46 = vcombine.low %v3831_v53, %v3835_v39 }
 0x5b4   :  { %v3699_v19 = vld [vmem:[#allocation3 + $0x160] sm:$0xff]  ;;  %6772 = vmatpush1.bf16.msra.mxu0 %v7913_v36 }
 0x5b5   :  { %v3823_v25 = vld [vmem:[#allocation3 + $0x540] sm:$0xff]  ;;  %v7906_v6 = vcombine.high %v3695_v29, %v3699_v19  ;;  %6814 = vmatprep.subr.bf16.mxu1 %v8042_v24  ;;  %v7905_v54 = vcombine.low %v3695_v29, %v3699_v19 }
 0x5b6   :  { %v3827_v21 = vld [vmem:[#allocation3 + $0x560] sm:$0xff]  ;;  %6815 = vmatpush1.bf16.msra.mxu1 %v8041_v46 }
 0x5b7   :  { %v8034_v63 = vcombine.high %v3823_v25, %v3827_v21  ;;  %v3687_v35 = vld [vmem:[#allocation3 + $0x100] sm:$0xff]  ;;  %6773 = vmatprep.subr.bf16.mxu0 %v7906_v6  ;;  %v8033_v57 = vcombine.low %v3823_v25, %v3827_v21 }
 0x5b8   :  { %v3691_v22 = vld [vmem:[#allocation3 + $0x120] sm:$0xff]  ;;  %6774 = vmatpush1.bf16.msra.mxu0 %v7905_v54 }
 0x5b9   :  { %v3815_v42 = vld [vmem:[#allocation3 + $0x500] sm:$0xff]  ;;  %v7898_v38 = vcombine.high %v3687_v35, %v3691_v22  ;;  %6816 = vmatprep.subr.bf16.mxu1 %v8034_v63  ;;  %v7897_v56 = vcombine.low %v3687_v35, %v3691_v22 }
 0x5ba   :  { %v3819_v31 = vld [vmem:[#allocation3 + $0x520] sm:$0xff]  ;;  %6817 = vmatpush1.bf16.msra.mxu1 %v8033_v57 }
 0x5bb   :  { %v8026_v4 = vcombine.high %v3815_v42, %v3819_v31  ;;  %v3679_v40 = vld [vmem:[#allocation3 + $0xc0] sm:$0xff]  ;;  %6775 = vmatprep.subr.bf16.mxu0 %v7898_v38  ;;  %v8025_v53 = vcombine.low %v3815_v42, %v3819_v31 }
 0x5bc   :  { %v3683_v13 = vld [vmem:[#allocation3 + $0xe0] sm:$0xff]  ;;  %6776 = vmatpush1.bf16.msra.mxu0 %v7897_v56 }
 0x5bd   :  { %v3807_v15 = vld [vmem:[#allocation3 + $0x4c0] sm:$0xff]  ;;  %v7890_v39 = vcombine.high %v3679_v40, %v3683_v13  ;;  %6818 = vmatprep.subr.bf16.mxu1 %v8026_v4  ;;  %v7889_v25 = vcombine.low %v3679_v40, %v3683_v13 }
 0x5be   :  { %v3811_v5 = vld [vmem:[#allocation3 + $0x4e0] sm:$0xff]  ;;  %6819 = vmatpush1.bf16.msra.mxu1 %v8025_v53 }
 0x5bf   :  { %v8018_v24 = vcombine.high %v3807_v15, %v3811_v5  ;;  %v3671_v36 = vld [vmem:[#allocation3 + $0x80] sm:$0xff]  ;;  %6777 = vmatprep.subr.bf16.mxu0 %v7890_v39  ;;  %v8017_v21 = vcombine.low %v3807_v15, %v3811_v5 }
 0x5c0   :  { %v3675_v29 = vld [vmem:[#allocation3 + $0xa0] sm:$0xff]  ;;  %6778 = vmatpush1.bf16.msra.mxu0 %v7889_v25 }
 0x5c1   :  { %v3799_v46 = vld [vmem:[#allocation3 + $0x480] sm:$0xff]  ;;  %v7882_v6 = vcombine.high %v3671_v36, %v3675_v29  ;;  %6820 = vmatprep.subr.bf16.mxu1 %v8018_v24  ;;  %v7881_v31 = vcombine.low %v3671_v36, %v3675_v29 }
 0x5c2   :  { %v3803_v19 = vld [vmem:[#allocation3 + $0x4a0] sm:$0xff]  ;;  %6821 = vmatpush1.bf16.msra.mxu1 %v8017_v21 }
 0x5c3   :  { %v8010_v63 = vcombine.high %v3799_v46, %v3803_v19  ;;  %v3663_v54 = vld [vmem:[#allocation3 + $0x40] sm:$0xff]  ;;  %6779 = vmatprep.subr.bf16.mxu0 %v7882_v6  ;;  %v8009_v42 = vcombine.low %v3799_v46, %v3803_v19 }
 0x5c4   :  { %v3667_v35 = vld [vmem:[#allocation3 + $0x60] sm:$0xff]  ;;  %6780 = vmatpush1.bf16.msra.mxu0 %v7881_v31 }
 0x5c5   :  { %v3791_v22 = vld [vmem:[#allocation3 + $0x440] sm:$0xff]  ;;  %v7874_v57 = vcombine.high %v3663_v54, %v3667_v35  ;;  %6822 = vmatprep.subr.bf16.mxu1 %v8010_v63  ;;  %v7873_v15 = vcombine.low %v3663_v54, %v3667_v35 }
 0x5c6   :  { %v3795_v38 = vld [vmem:[#allocation3 + $0x460] sm:$0xff]  ;;  %6823 = vmatpush1.bf16.msra.mxu1 %v8009_v42 }
 0x5c7   :  { %v8002_v4 = vcombine.high %v3791_v22, %v3795_v38  ;;  %v3655_v56 = vld [vmem:[#allocation3] sm:$0xff]  ;;  %6781 = vmatprep.subr.bf16.mxu0 %v7874_v57  ;;  %v8001_v5 = vcombine.low %v3791_v22, %v3795_v38 }
 0x5c8   :  { %v3659_v40 = vld [vmem:[#allocation3 + $0x20] sm:$0xff]  ;;  %6782 = vmatpush1.bf16.msra.mxu0 %v7873_v15 }
 0x5c9   :  { %v3783_v13 = vld [vmem:[#allocation3 + $0x400] sm:$0xff]  ;;  %v7866_v39 = vcombine.high %v3655_v56, %v3659_v40  ;;  %6824 = vmatprep.subr.bf16.mxu1 %v8002_v4  ;;  %v7865_v46 = vcombine.low %v3655_v56, %v3659_v40 }
 0x5ca   :  { %v3787_v53 = vld [vmem:[#allocation3 + $0x420] sm:$0xff]  ;;  %6825 = vmatpush1.bf16.msra.mxu1 %v8001_v5 }
 0x5cb   :  { %v7994_v24 = vcombine.high %v3783_v13, %v3787_v53  ;;  %v3775_v25 = vld [vmem:[#allocation3 + $0x3c0] sm:$0xff]  ;;  %6783 = vmatprep.subr.bf16.mxu0 %v7866_v39  ;;  %v7993_v19 = vcombine.low %v3783_v13, %v3787_v53 }
 0x5cc   :  { %v3779_v36 = vld [vmem:[#allocation3 + $0x3e0] sm:$0xff]  ;;  %6784 = vmatpush1.bf16.msra.mxu0 %v7865_v46 }
 0x5cd   :  { %v3903_v29 = vld [vmem:[#allocation3 + $0x7c0] sm:$0xff]  ;;  %v7986_v6 = vcombine.high %v3775_v25, %v3779_v36  ;;  %6826 = vmatprep.subr.bf16.mxu1 %v7994_v24  ;;  %v7985_v22 = vcombine.low %v3775_v25, %v3779_v36 }
 0x5ce   :  { %v3907_v21 = vld [vmem:[#allocation3 + $0x7e0] sm:$0xff]  ;;  %6827 = vmatpush1.bf16.msra.mxu1 %v7993_v19 }
 0x5cf   :  { %v8114_v63 = vcombine.high %v3903_v29, %v3907_v21  ;;  %v3767_v31 = vld [vmem:[#allocation3 + $0x380] sm:$0xff]  ;;  %6785 = vmatprep.subr.bf16.mxu0 %v7986_v6  ;;  %v8113_v38 = vcombine.low %v3903_v29, %v3907_v21 }
 0x5d0   :  { %v3771_v54 = vld [vmem:[#allocation3 + $0x3a0] sm:$0xff]  ;;  %6786 = vmatpush2.bf16.msra.mxu0 %v7985_v22 }
 0x5d1   :  { %v3895_v35 = vld [vmem:[#allocation3 + $0x780] sm:$0xff]  ;;  %v7978_v57 = vcombine.high %v3767_v31, %v3771_v54  ;;  %6828 = vmatprep.subr.bf16.mxu1 %v8114_v63  ;;  %v7977_v13 = vcombine.low %v3767_v31, %v3771_v54 }
 0x5d2   :  { %v3899_v42 = vld [vmem:[#allocation3 + $0x7a0] sm:$0xff]  ;;  %6829 = vmatpush2.bf16.msra.mxu1 %v8113_v38 }
 0x5d3   :  { %v8106_v4 = vcombine.high %v3895_v35, %v3899_v42  ;;  %v3759_v15 = vld [vmem:[#allocation3 + $0x340] sm:$0xff]  ;;  %6787 = vmatprep.subr.bf16.mxu0 %v7978_v57  ;;  %v8105_v53 = vcombine.low %v3895_v35, %v3899_v42 }
 0x5d4   :  { %v3763_v56 = vld [vmem:[#allocation3 + $0x360] sm:$0xff]  ;;  %6788 = vmatpush2.bf16.msra.mxu0 %v7977_v13 }
 0x5d5   :  { %v3887_v40 = vld [vmem:[#allocation3 + $0x740] sm:$0xff]  ;;  %v7970_v39 = vcombine.high %v3759_v15, %v3763_v56  ;;  %6830 = vmatprep.subr.bf16.mxu1 %v8106_v4  ;;  %v7969_v29 = vcombine.low %v3759_v15, %v3763_v56 }
 0x5d6   :  { %v3891_v5 = vld [vmem:[#allocation3 + $0x760] sm:$0xff]  ;;  %6831 = vmatpush2.bf16.msra.mxu1 %v8105_v53 }
 0x5d7   :  { %v8098_v24 = vcombine.high %v3887_v40, %v3891_v5  ;;  %v3751_v46 = vld [vmem:[#allocation3 + $0x300] sm:$0xff]  ;;  %6789 = vmatprep.subr.bf16.mxu0 %v7970_v39  ;;  %v8097_v21 = vcombine.low %v3887_v40, %v3891_v5 }
 0x5d8   :  { %v3755_v25 = vld [vmem:[#allocation3 + $0x320] sm:$0xff]  ;;  %6790 = vmatpush2.bf16.msra.mxu0 %v7969_v29 }
 0x5d9   :  { %v3879_v36 = vld [vmem:[#allocation3 + $0x700] sm:$0xff]  ;;  %v7962_v6 = vcombine.high %v3751_v46, %v3755_v25  ;;  %6832 = vmatprep.subr.bf16.mxu1 %v8098_v24  ;;  %v7961_v35 = vcombine.low %v3751_v46, %v3755_v25 }
 0x5da   :  { %v3883_v19 = vld [vmem:[#allocation3 + $0x720] sm:$0xff]  ;;  %6833 = vmatpush2.bf16.msra.mxu1 %v8097_v21 }
 0x5db   :  { %v8090_v63 = vcombine.high %v3879_v36, %v3883_v19  ;;  %v3743_v22 = vld [vmem:[#allocation3 + $0x2c0] sm:$0xff]  ;;  %6791 = vmatprep.subr.bf16.mxu0 %v7962_v6  ;;  %v8089_v42 = vcombine.low %v3879_v36, %v3883_v19 }
 0x5dc   :  { %v3747_v31 = vld [vmem:[#allocation3 + $0x2e0] sm:$0xff]  ;;  %6792 = vmatpush2.bf16.msra.mxu0 %v7961_v35 }
 0x5dd   :  { %v3871_v54 = vld [vmem:[#allocation3 + $0x6c0] sm:$0xff]  ;;  %v7954_v57 = vcombine.high %v3743_v22, %v3747_v31  ;;  %6834 = vmatprep.subr.bf16.mxu1 %v8090_v63  ;;  %v7953_v40 = vcombine.low %v3743_v22, %v3747_v31 }
 0x5de   :  { %v3875_v38 = vld [vmem:[#allocation3 + $0x6e0] sm:$0xff]  ;;  %6835 = vmatpush2.bf16.msra.mxu1 %v8089_v42 }
 0x5df   :  { %v8082_v4 = vcombine.high %v3871_v54, %v3875_v38  ;;  %v3735_v13 = vld [vmem:[#allocation3 + $0x280] sm:$0xff]  ;;  %6793 = vmatprep.subr.bf16.mxu0 %v7954_v57  ;;  %v8081_v5 = vcombine.low %v3871_v54, %v3875_v38 }
 0x5e0   :  { %v3739_v15 = vld [vmem:[#allocation3 + $0x2a0] sm:$0xff]  ;;  %6794 = vmatpush2.bf16.msra.mxu0 %v7953_v40 }
 0x5e1   :  { %v3863_v56 = vld [vmem:[#allocation3 + $0x680] sm:$0xff]  ;;  %v7946_v39 = vcombine.high %v3735_v13, %v3739_v15  ;;  %6836 = vmatprep.subr.bf16.mxu1 %v8082_v4  ;;  %v7945_v36 = vcombine.low %v3735_v13, %v3739_v15 }
 0x5e2   :  { %v3867_v53 = vld [vmem:[#allocation3 + $0x6a0] sm:$0xff]  ;;  %6837 = vmatpush2.bf16.msra.mxu1 %v8081_v5 }
 0x5e3   :  { %v8074_v24 = vcombine.high %v3863_v56, %v3867_v53  ;;  %v3727_v29 = vld [vmem:[#allocation3 + $0x240] sm:$0xff]  ;;  %6795 = vmatprep.subr.bf16.mxu0 %v7946_v39  ;;  %v8073_v19 = vcombine.low %v3863_v56, %v3867_v53 }
 0x5e4   :  { %v3731_v46 = vld [vmem:[#allocation3 + $0x260] sm:$0xff]  ;;  %6796 = vmatpush2.bf16.msra.mxu0 %v7945_v36 }
 0x5e5   :  { %v3855_v25 = vld [vmem:[#allocation3 + $0x640] sm:$0xff]  ;;  %v7938_v6 = vcombine.high %v3727_v29, %v3731_v46  ;;  %6838 = vmatprep.subr.bf16.mxu1 %v8074_v24  ;;  %v7937_v54 = vcombine.low %v3727_v29, %v3731_v46  ;;  %v9506_v46 = vpack.c.bf16 %v3635_v27, %v3627_v18 }
 0x5e6   :  { %v3859_v21 = vld [vmem:[#allocation3 + $0x660] sm:$0xff]  ;;  %6839 = vmatpush2.bf16.msra.mxu1 %v8073_v19  ;;  %v9514_v19 = vpack.c.bf16 %v3637_v20, %v3629_v30  ;;  %v9612_v30 = vmax.f32 %v9438_v14, %v9472_v17 }
 0x5e7   :  { %v8066_v63 = vcombine.high %v3855_v25, %v3859_v21  ;;  %v3719_v35 = vld [vmem:[#allocation3 + $0x200] sm:$0xff]  ;;  %6797 = vmatprep.subr.bf16.mxu0 %v7938_v6  ;;  %v8065_v38 = vcombine.low %v3855_v25, %v3859_v21 }
 0x5e8   :  { %v3723_v22 = vld [vmem:[#allocation3 + $0x220] sm:$0xff]  ;;  %6798 = vmatpush2.bf16.msra.mxu0 %v7937_v54  ;;  %v9531_v27 = vpack.c.bf16 %v9612_v30, %v9611_v51 }
 0x5e9   :  { %v3847_v31 = vld [vmem:[#allocation3 + $0x600] sm:$0xff]  ;;  %v7930_v57 = vcombine.high %v3719_v35, %v3723_v22  ;;  %6840 = vmatprep.subr.bf16.mxu1 %v8066_v63  ;;  %v7929_v56 = vcombine.low %v3719_v35, %v3723_v22 }
 0x5ea   :  { %v3851_v42 = vld [vmem:[#allocation3 + $0x620] sm:$0xff]  ;;  %6841 = vmatpush2.bf16.msra.mxu1 %v8065_v38 }
 0x5eb   :  { %v8058_v4 = vcombine.high %v3847_v31, %v3851_v42  ;;  %v3967_v40 = vld [vmem:[#allocation3 + $0x9c0] sm:$0xff]  ;;  %6799 = vmatprep.subr.bf16.mxu0 %v7930_v57  ;;  %v8057_v53 = vcombine.low %v3847_v31, %v3851_v42 }
 0x5ec   :  { %v3971_v13 = vld [vmem:[#allocation3 + $0x9e0] sm:$0xff]  ;;  %6800 = vmatpush2.bf16.msra.mxu0 %v7929_v56 }
 0x5ed   :  { %v4095_v15 = vld [vmem:[#allocation3 + $0xdc0] sm:$0xff]  ;;  %v8178_v39 = vcombine.high %v3967_v40, %v3971_v13  ;;  %6842 = vmatprep.subr.bf16.mxu1 %v8058_v4  ;;  %v8177_v6 = vcombine.low %v3967_v40, %v3971_v13 }
 0x5ee   :  { %v4099_v5 = vld [vmem:[#allocation3 + $0xde0] sm:$0xff]  ;;  %6843 = vmatpush2.bf16.msra.mxu1 %v8057_v53 }
 0x5ef   :  { %v8306_v24 = vcombine.high %v4095_v15, %v4099_v5  ;;  %v3959_v36 = vld [vmem:[#allocation3 + $0x980] sm:$0xff]  ;;  %6855 = vmatprep.subr.bf16.mxu0 %v8178_v39  ;;  %v8305_v8 = vcombine.low %v4095_v15, %v4099_v5  ;;  %6802 = vmatmul.mubr.bf16.vlgmr.msra.gmra.mxu0 %v9506_v46 }
 0x5f0   :  { %v3963_v29 = vld [vmem:[#allocation3 + $0x9a0] sm:$0xff]  ;;  %6856 = vmatpush1.bf16.msra.mxu0 %v8177_v6  ;;  %6887 = vmatprep.mubr.bf16.mxu0 %v9522_v10 }
 0x5f1   :  { %v4087_v25 = vld [vmem:[#allocation3 + $0xd80] sm:$0xff]  ;;  %v8170_v47 = vcombine.high %v3959_v36, %v3963_v29  ;;  %6898 = vmatprep.subr.bf16.mxu1 %v8306_v24  ;;  %6845 = vmatmul.mubr.bf16.vlgmr.msra.gmra.mxu1 %v9514_v19  ;;  %v8169_v45 = vcombine.low %v3959_v36, %v3963_v29 }
 0x5f2   :  { %v4091_v21 = vld [vmem:[#allocation3 + $0xda0] sm:$0xff]  ;;  %6899 = vmatpush1.bf16.msra.mxu1 %v8305_v8  ;;  %6930 = vmatprep.mubr.bf16.mxu1 %v9531_v27 }
 0x5f3   :  { %v8298_v16 = vcombine.high %v4087_v25, %v4091_v21  ;;  %v3951_v48 = vld [vmem:[#allocation3 + $0x940] sm:$0xff]  ;;  %6857 = vmatprep.subr.bf16.mxu0 %v8170_v47  ;;  %v8297_v44 = vcombine.low %v4087_v25, %v4091_v21 }
 0x5f4   :  { %v3955_v18 = vld [vmem:[#allocation3 + $0x960] sm:$0xff]  ;;  %6858 = vmatpush1.bf16.msra.mxu0 %v8169_v45 }
 0x5f5   :  { %v4079_v37 = vld [vmem:[#allocation3 + $0xd40] sm:$0xff]  ;;  %v8162_v26 = vcombine.high %v3951_v48, %v3955_v18  ;;  %6900 = vmatprep.subr.bf16.mxu1 %v8298_v16  ;;  %v8161_v14 = vcombine.low %v3951_v48, %v3955_v18 }
 0x5f6   :  { %v4083_v49 = vld [vmem:[#allocation3 + $0xd60] sm:$0xff]  ;;  %6901 = vmatpush1.bf16.msra.mxu1 %v8297_v44 }
 0x5f7   :  { %v8290_v23 = vcombine.high %v4079_v37, %v4083_v49  ;;  %v3943_v41 = vld [vmem:[#allocation3 + $0x900] sm:$0xff]  ;;  %6859 = vmatprep.subr.bf16.mxu0 %v8162_v26  ;;  %v8289_v17 = vcombine.low %v4079_v37, %v4083_v49 }
 0x5f8   :  { %v3947_v20 = vld [vmem:[#allocation3 + $0x920] sm:$0xff]  ;;  %6860 = vmatpush1.bf16.msra.mxu0 %v8161_v14 }
 0x5f9   :  { %v4071_v59 = vld [vmem:[#allocation3 + $0xd00] sm:$0xff]  ;;  %v8154_v32 = vcombine.high %v3943_v41, %v3947_v20  ;;  %6902 = vmatprep.subr.bf16.mxu1 %v8290_v23  ;;  %v8153_v54 = vcombine.low %v3943_v41, %v3947_v20 }
 0x5fa   :  { %v4075_v58 = vld [vmem:[#allocation3 + $0xd20] sm:$0xff]  ;;  %6903 = vmatpush1.bf16.msra.mxu1 %v8289_v17 }
 0x5fb   :  { %v8282_v63 = vcombine.high %v4071_v59, %v4075_v58  ;;  %v3935_v35 = vld [vmem:[#allocation3 + $0x8c0] sm:$0xff]  ;;  %6861 = vmatprep.subr.bf16.mxu0 %v8154_v32  ;;  %v8281_v38 = vcombine.low %v4071_v59, %v4075_v58 }
 0x5fc   :  { %v3939_v22 = vld [vmem:[#allocation3 + $0x8e0] sm:$0xff]  ;;  %6862 = vmatpush1.bf16.msra.mxu0 %v8153_v54 }
 0x5fd   :  { %v4063_v31 = vld [vmem:[#allocation3 + $0xcc0] sm:$0xff]  ;;  %v8146_v57 = vcombine.high %v3935_v35, %v3939_v22  ;;  %6904 = vmatprep.subr.bf16.mxu1 %v8282_v63  ;;  %v8145_v56 = vcombine.low %v3935_v35, %v3939_v22 }
 0x5fe   :  { %v4067_v42 = vld [vmem:[#allocation3 + $0xce0] sm:$0xff]  ;;  %6905 = vmatpush1.bf16.msra.mxu1 %v8281_v38 }
 0x5ff   :  { %v8274_v4 = vcombine.high %v4063_v31, %v4067_v42  ;;  %v3927_v40 = vld [vmem:[#allocation3 + $0x880] sm:$0xff]  ;;  %6863 = vmatprep.subr.bf16.mxu0 %v8146_v57  ;;  %v8273_v53 = vcombine.low %v4063_v31, %v4067_v42 }
 0x600   :  { %v3931_v13 = vld [vmem:[#allocation3 + $0x8a0] sm:$0xff]  ;;  %6864 = vmatpush1.bf16.msra.mxu0 %v8145_v56 }
 0x601   :  { %v4055_v15 = vld [vmem:[#allocation3 + $0xc80] sm:$0xff]  ;;  %v8138_v39 = vcombine.high %v3927_v40, %v3931_v13  ;;  %6906 = vmatprep.subr.bf16.mxu1 %v8274_v4  ;;  %v8137_v6 = vcombine.low %v3927_v40, %v3931_v13 }
 0x602   :  { %v4059_v5 = vld [vmem:[#allocation3 + $0xca0] sm:$0xff]  ;;  %6907 = vmatpush1.bf16.msra.mxu1 %v8273_v53 }
 0x603   :  { %v8266_v24 = vcombine.high %v4055_v15, %v4059_v5  ;;  %v3919_v36 = vld [vmem:[#allocation3 + $0x840] sm:$0xff]  ;;  %6865 = vmatprep.subr.bf16.mxu0 %v8138_v39  ;;  %v8265_v8 = vcombine.low %v4055_v15, %v4059_v5 }
 0x604   :  { %v3923_v29 = vld [vmem:[#allocation3 + $0x860] sm:$0xff]  ;;  %6866 = vmatpush1.bf16.msra.mxu0 %v8137_v6 }
 0x605   :  { %v4047_v25 = vld [vmem:[#allocation3 + $0xc40] sm:$0xff]  ;;  %v8130_v47 = vcombine.high %v3919_v36, %v3923_v29  ;;  %6908 = vmatprep.subr.bf16.mxu1 %v8266_v24  ;;  %v8129_v51 = vcombine.low %v3919_v36, %v3923_v29 }
 0x606   :  { %v4051_v21 = vld [vmem:[#allocation3 + $0xc60] sm:$0xff]  ;;  %6909 = vmatpush1.bf16.msra.mxu1 %v8265_v8 }
 0x607   :  { %v8258_v16 = vcombine.high %v4047_v25, %v4051_v21  ;;  %v3911_v48 = vld [vmem:[#allocation3 + $0x800] sm:$0xff]  ;;  %6867 = vmatprep.subr.bf16.mxu0 %v8130_v47  ;;  %v8257_v30 = vcombine.low %v4047_v25, %v4051_v21 }
 0x608   :  { %v3915_v18 = vld [vmem:[#allocation3 + $0x820] sm:$0xff]  ;;  %6868 = vmatpush1.bf16.msra.mxu0 %v8129_v51 }
 0x609   :  { %v4039_v37 = vld [vmem:[#allocation3 + $0xc00] sm:$0xff]  ;;  %v8122_v45 = vcombine.high %v3911_v48, %v3915_v18  ;;  %6910 = vmatprep.subr.bf16.mxu1 %v8258_v16  ;;  %v8121_v59 = vcombine.low %v3911_v48, %v3915_v18 }
 0x60a   :  { %v4043_v49 = vld [vmem:[#allocation3 + $0xc20] sm:$0xff]  ;;  %6911 = vmatpush1.bf16.msra.mxu1 %v8257_v30 }
 0x60b   :  { %v8250_v44 = vcombine.high %v4039_v37, %v4043_v49  ;;  %v4031_v26 = vld [vmem:[#allocation3 + $0xbc0] sm:$0xff]  ;;  %6869 = vmatprep.subr.bf16.mxu0 %v8122_v45  ;;  %v8249_v58 = vcombine.low %v4039_v37, %v4043_v49 }
 0x60c   :  { %v4035_v23 = vld [vmem:[#allocation3 + $0xbe0] sm:$0xff]  ;;  %6870 = vmatpush1.bf16.msra.mxu0 %v8121_v59 }
 0x60d   :  { %v4159_v41 = vld [vmem:[#allocation3 + $0xfc0] sm:$0xff]  ;;  %v8242_v14 = vcombine.high %v4031_v26, %v4035_v23  ;;  %6912 = vmatprep.subr.bf16.mxu1 %v8250_v44  ;;  %v8241_v31 = vcombine.low %v4031_v26, %v4035_v23 }
 0x60e   :  { %v4163_v20 = vld [vmem:[#allocation3 + $0xfe0] sm:$0xff]  ;;  %6913 = vmatpush1.bf16.msra.mxu1 %v8249_v58 }
 0x60f   :  { %v8370_v17 = vcombine.high %v4159_v41, %v4163_v20  ;;  %v4023_v32 = vld [vmem:[#allocation3 + $0xb80] sm:$0xff]  ;;  %6871 = vmatprep.subr.bf16.mxu0 %v8242_v14  ;;  %v8369_v42 = vcombine.low %v4159_v41, %v4163_v20 }
 0x610   :  { %v4027_v63 = vld [vmem:[#allocation3 + $0xba0] sm:$0xff]  ;;  %6872 = vmatpush2.bf16.msra.mxu0 %v8241_v31 }
 0x611   :  { %v4151_v35 = vld [vmem:[#allocation3 + $0xf80] sm:$0xff]  ;;  %v8234_v54 = vcombine.high %v4023_v32, %v4027_v63  ;;  %6914 = vmatprep.subr.bf16.mxu1 %v8370_v17  ;;  %v8233_v15 = vcombine.low %v4023_v32, %v4027_v63 }
 0x612   :  { %v4155_v22 = vld [vmem:[#allocation3 + $0xfa0] sm:$0xff]  ;;  %6915 = vmatpush2.bf16.msra.mxu1 %v8369_v42 }
 0x613   :  { %v8362_v38 = vcombine.high %v4151_v35, %v4155_v22  ;;  %v4015_v57 = vld [vmem:[#allocation3 + $0xb40] sm:$0xff]  ;;  %6873 = vmatprep.subr.bf16.mxu0 %v8234_v54  ;;  %v8361_v5 = vcombine.low %v4151_v35, %v4155_v22 }
 0x614   :  { %v4019_v4 = vld [vmem:[#allocation3 + $0xb60] sm:$0xff]  ;;  %6874 = vmatpush2.bf16.msra.mxu0 %v8233_v15 }
 0x615   :  { %v4143_v40 = vld [vmem:[#allocation3 + $0xf40] sm:$0xff]  ;;  %v8226_v56 = vcombine.high %v4015_v57, %v4019_v4  ;;  %6916 = vmatprep.subr.bf16.mxu1 %v8362_v38  ;;  %v8225_v25 = vcombine.low %v4015_v57, %v4019_v4 }
 0x616   :  { %v4147_v13 = vld [vmem:[#allocation3 + $0xf60] sm:$0xff]  ;;  %6917 = vmatpush2.bf16.msra.mxu1 %v8361_v5 }
 0x617   :  { %v8354_v53 = vcombine.high %v4143_v40, %v4147_v13  ;;  %v4007_v39 = vld [vmem:[#allocation3 + $0xb00] sm:$0xff]  ;;  %6875 = vmatprep.subr.bf16.mxu0 %v8226_v56  ;;  %v8353_v21 = vcombine.low %v4143_v40, %v4147_v13  ;;  %v3712_v56 = vld [vmem:[#allocation3 + $0x1c8] sm:$0xff] }
 0x618   :  { %v4011_v24 = vld [vmem:[#allocation3 + $0xb20] sm:$0xff]  ;;  %6876 = vmatpush2.bf16.msra.mxu0 %v8225_v25 }
 0x619   :  { %v4135_v36 = vld [vmem:[#allocation3 + $0xf00] sm:$0xff]  ;;  %v8218_v6 = vcombine.high %v4007_v39, %v4011_v24  ;;  %6918 = vmatprep.subr.bf16.mxu1 %v8354_v53  ;;  %v8217_v37 = vcombine.low %v4007_v39, %v4011_v24  ;;  %v3716_v53 = vld [vmem:[#allocation3 + $0x1e8] sm:$0xff] }
 0x61a   :  { %v4139_v29 = vld [vmem:[#allocation3 + $0xf20] sm:$0xff]  ;;  %6919 = vmatpush2.bf16.msra.mxu1 %v8353_v21  ;;  %v3840_v39 = vld [vmem:[#allocation3 + $0x5c8] sm:$0xff]  ;;  %v7924_v25 = vcombine.high %v3712_v56, %v3716_v53 }
 0x61b   :  { %v8346_v8 = vcombine.high %v4135_v36, %v4139_v29  ;;  %v3999_v47 = vld [vmem:[#allocation3 + $0xac0] sm:$0xff]  ;;  %6877 = vmatprep.subr.bf16.mxu0 %v8218_v6  ;;  %v8345_v49 = vcombine.low %v4135_v36, %v4139_v29  ;;  %v3844_v24 = vld [vmem:[#allocation3 + $0x5e8] sm:$0xff] }
 0x61c   :  { %v4003_v16 = vld [vmem:[#allocation3 + $0xae0] sm:$0xff]  ;;  %6878 = vmatpush2.bf16.msra.mxu0 %v8217_v37  ;;  %v8052_v21 = vcombine.high %v3840_v39, %v3844_v24  ;;  %v3704_v6 = vld [vmem:[#allocation3 + $0x188] sm:$0xff] }
 0x61d   :  { %v4127_v48 = vld [vmem:[#allocation3 + $0xec0] sm:$0xff]  ;;  %v8210_v51 = vcombine.high %v3999_v47, %v4003_v16  ;;  %6920 = vmatprep.subr.bf16.mxu1 %v8346_v8  ;;  %v8209_v41 = vcombine.low %v3999_v47, %v4003_v16  ;;  %v3708_v8 = vld [vmem:[#allocation3 + $0x1a8] sm:$0xff]  ;;  %v9613_v47 = vmax.f32 %v9414_v1, %v9441_v61  ;;  %v9614_v16 = vmax.f32 %v9426_v9, %v9461_v50 }
 0x61e   :  { %v4131_v18 = vld [vmem:[#allocation3 + $0xee0] sm:$0xff]  ;;  %6921 = vmatpush2.bf16.msra.mxu1 %v8345_v49  ;;  %v3836_v37 = vld [vmem:[#allocation3 + $0x5a8] sm:$0xff]  ;;  %v9615_v49 = vmax.f32 %v9418_v55, %v9447_v28  ;;  %v8051_v1 = vcombine.low %v3840_v39, %v3844_v24  ;;  %v7916_v61 = vcombine.high %v3704_v6, %v3708_v8  ;;  %v7915_v55 = vcombine.low %v3704_v6, %v3708_v8 }
 0x61f   :  { %v8338_v30 = vcombine.high %v4127_v48, %v4131_v18  ;;  %v3991_v45 = vld [vmem:[#allocation3 + $0xa80] sm:$0xff]  ;;  %6879 = vmatprep.subr.bf16.mxu0 %v8210_v51  ;;  %v8337_v20 = vcombine.low %v4127_v48, %v4131_v18  ;;  %v9542_v48 = vpack.c.bf16 %v9614_v16, %v9613_v47  ;;  %v3832_v18 = vld [vmem:[#allocation3 + $0x588] sm:$0xff]  ;;  %v9616_v51 = vmax.f32 %v9430_v62, %v9467_v43 }
 0x620   :  { %v3995_v44 = vld [vmem:[#allocation3 + $0xaa0] sm:$0xff]  ;;  %6880 = vmatpush2.bf16.msra.mxu0 %v8209_v41  ;;  %v8044_v9 = vcombine.high %v3832_v18, %v3836_v37  ;;  %v3696_v50 = vld [vmem:[#allocation3 + $0x148] sm:$0xff]  ;;  %v8043_v62 = vcombine.low %v3832_v18, %v3836_v37 }
 0x621   :  { %v4119_v26 = vld [vmem:[#allocation3 + $0xe80] sm:$0xff]  ;;  %v8202_v59 = vcombine.high %v3991_v45, %v3995_v44  ;;  %6922 = vmatprep.subr.bf16.mxu1 %v8338_v30  ;;  %v8201_v35 = vcombine.low %v3991_v45, %v3995_v44  ;;  %v9550_v30 = vpack.c.bf16 %v9616_v51, %v9615_v49  ;;  %v7923_v45 = vcombine.low %v3712_v56, %v3716_v53  ;;  %v3700_v44 = vld [vmem:[#allocation3 + $0x168] sm:$0xff] }
 0x622   :  { %v4123_v23 = vld [vmem:[#allocation3 + $0xea0] sm:$0xff]  ;;  %6923 = vmatpush2.bf16.msra.mxu1 %v8337_v20  ;;  %v7908_v28 = vcombine.high %v3696_v50, %v3700_v44  ;;  %v3688_v41 = vld [vmem:[#allocation3 + $0x108] sm:$0xff] }
 0x623   :  { %v8330_v58 = vcombine.high %v4119_v26, %v4123_v23  ;;  %v3983_v14 = vld [vmem:[#allocation3 + $0xa40] sm:$0xff]  ;;  %6881 = vmatprep.subr.bf16.mxu0 %v8202_v59  ;;  %v8329_v22 = vcombine.low %v4119_v26, %v4123_v23  ;;  %v3824_v26 = vld [vmem:[#allocation3 + $0x548] sm:$0xff] }
 0x624   :  { %v3987_v17 = vld [vmem:[#allocation3 + $0xa60] sm:$0xff]  ;;  %6882 = vmatpush2.bf16.msra.mxu0 %v8201_v35  ;;  %v3828_v23 = vld [vmem:[#allocation3 + $0x568] sm:$0xff] }
 0x625   :  { %v4111_v32 = vld [vmem:[#allocation3 + $0xe40] sm:$0xff]  ;;  %v8194_v31 = vcombine.high %v3983_v14, %v3987_v17  ;;  %6924 = vmatprep.subr.bf16.mxu1 %v8330_v58  ;;  %v8193_v40 = vcombine.low %v3983_v14, %v3987_v17  ;;  %v8036_v43 = vcombine.high %v3824_v26, %v3828_v23  ;;  %v3692_v20 = vld [vmem:[#allocation3 + $0x128] sm:$0xff]  ;;  %v7907_v14 = vcombine.low %v3696_v50, %v3700_v44 }
 0x626   :  { %v4115_v63 = vld [vmem:[#allocation3 + $0xe60] sm:$0xff]  ;;  %6925 = vmatpush2.bf16.msra.mxu1 %v8329_v22  ;;  %v3816_v59 = vld [vmem:[#allocation3 + $0x508] sm:$0xff]  ;;  %v8035_v17 = vcombine.low %v3824_v26, %v3828_v23 }
 0x627   :  { %v8322_v42 = vcombine.high %v4111_v32, %v4115_v63  ;;  %v3975_v54 = vld [vmem:[#allocation3 + $0xa00] sm:$0xff]  ;;  %6883 = vmatprep.subr.bf16.mxu0 %v8194_v31  ;;  %v8321_v13 = vcombine.low %v4111_v32, %v4115_v63  ;;  %v3820_v58 = vld [vmem:[#allocation3 + $0x528] sm:$0xff]  ;;  %v7900_v32 = vcombine.high %v3688_v41, %v3692_v20 }
 0x628   :  { %v3979_v38 = vld [vmem:[#allocation3 + $0xa20] sm:$0xff]  ;;  %6884 = vmatpush2.bf16.msra.mxu0 %v8193_v40  ;;  %v8028_v63 = vcombine.high %v3816_v59, %v3820_v58  ;;  %v3680_v35 = vld [vmem:[#allocation3 + $0xc8] sm:$0xff] }
 0x629   :  { %v4103_v57 = vld [vmem:[#allocation3 + $0xe00] sm:$0xff]  ;;  %v8186_v15 = vcombine.high %v3975_v54, %v3979_v38  ;;  %6926 = vmatprep.subr.bf16.mxu1 %v8322_v42  ;;  %v8185_v36 = vcombine.low %v3975_v54, %v3979_v38  ;;  %v3684_v22 = vld [vmem:[#allocation3 + $0xe8] sm:$0xff]  ;;  %v7899_v54 = vcombine.low %v3688_v41, %v3692_v20  ;;  %v8027_v38 = vcombine.low %v3816_v59, %v3820_v58 }
 0x62a   :  { %v4107_v4 = vld [vmem:[#allocation3 + $0xe20] sm:$0xff]  ;;  %6927 = vmatpush2.bf16.msra.mxu1 %v8321_v13  ;;  %v3808_v31 = vld [vmem:[#allocation3 + $0x4c8] sm:$0xff]  ;;  %v7891_v56 = vcombine.low %v3680_v35, %v3684_v22 }
 0x62b   :  { %v8314_v5 = vcombine.high %v4103_v57, %v4107_v4  ;;  %6885 = vmatprep.subr.bf16.mxu0 %v8186_v15  ;;  %v8313_v29 = vcombine.low %v4103_v57, %v4107_v4  ;;  %v3812_v42 = vld [vmem:[#allocation3 + $0x4e8] sm:$0xff]  ;;  %v7892_v57 = vcombine.high %v3680_v35, %v3684_v22 }
 0x62c   :  { %6886 = vmatpush2.bf16.msra.mxu0 %v8185_v36  ;;  %v8020_v4 = vcombine.high %v3808_v31, %v3812_v42  ;;  %v3672_v40 = vld [vmem:[#allocation3 + $0x88] sm:$0xff]  ;;  %v8019_v53 = vcombine.low %v3808_v31, %v3812_v42 }
 0x62d   :  { %6928 = vmatprep.subr.bf16.mxu1 %v8314_v5  ;;  %6941 = vmatprep.subr.bf16.mxu0 %v7924_v25  ;;  %v3676_v13 = vld [vmem:[#allocation3 + $0xa8] sm:$0xff] }
 0x62e   :  { %6929 = vmatpush2.bf16.msra.mxu1 %v8313_v29  ;;  %v3800_v15 = vld [vmem:[#allocation3 + $0x488] sm:$0xff]  ;;  %v7884_v39 = vcombine.high %v3672_v40, %v3676_v13  ;;  %v7883_v6 = vcombine.low %v3672_v40, %v3676_v13 }
 0x62f   :  { %6984 = vmatprep.subr.bf16.mxu1 %v8052_v21  ;;  %6888 = vmatmul.mubr.bf16.vlgmr.msra.gmra.mxu0 %v9542_v48  ;;  %v3804_v5 = vld [vmem:[#allocation3 + $0x4a8] sm:$0xff] }
 0x630   :  { %6942 = vmatpush1.bf16.msra.mxu0 %v7923_v45  ;;  %6973 = vmatprep.mubr.bf16.mxu0 %v9494_v3  ;;  %v8012_v24 = vcombine.high %v3800_v15, %v3804_v5  ;;  %v3664_v36 = vld [vmem:[#allocation3 + $0x48] sm:$0xff]  ;;  %v8011_v8 = vcombine.low %v3800_v15, %v3804_v5 }
 0x631   :  { %6931 = vmatmul.mubr.bf16.vlgmr.msra.gmra.mxu1 %v9550_v30  ;;  %6943 = vmatprep.subr.bf16.mxu0 %v7916_v61  ;;  %v3668_v29 = vld [vmem:[#allocation3 + $0x68] sm:$0xff] }
 0x632   :  { %6985 = vmatpush1.bf16.msra.mxu1 %v8051_v1  ;;  %7016 = vmatprep.mubr.bf16.mxu1 %v9496_v12  ;;  %v3792_v25 = vld [vmem:[#allocation3 + $0x448] sm:$0xff]  ;;  %v7876_v47 = vcombine.high %v3664_v36, %v3668_v29  ;;  %v7875_v45 = vcombine.low %v3664_v36, %v3668_v29 }
 0x633   :  { %6986 = vmatprep.subr.bf16.mxu1 %v8044_v9  ;;  %v3796_v21 = vld [vmem:[#allocation3 + $0x468] sm:$0xff] }
 0x634   :  { %6944 = vmatpush1.bf16.msra.mxu0 %v7915_v55  ;;  %v8004_v16 = vcombine.high %v3792_v25, %v3796_v21  ;;  %v3656_v18 = vld [vmem:[#allocation3 + $0x8] sm:$0xff]  ;;  %v8003_v1 = vcombine.low %v3792_v25, %v3796_v21 }
 0x635   :  { %6945 = vmatprep.subr.bf16.mxu0 %v7908_v28  ;;  %v3660_v37 = vld [vmem:[#allocation3 + $0x28] sm:$0xff] }
 0x636   :  { %6987 = vmatpush1.bf16.msra.mxu1 %v8043_v62  ;;  %v3784_v49 = vld [vmem:[#allocation3 + $0x408] sm:$0xff]  ;;  %v7868_v61 = vcombine.high %v3656_v18, %v3660_v37  ;;  %v7867_v55 = vcombine.low %v3656_v18, %v3660_v37 }
 0x637   :  { %6988 = vmatprep.subr.bf16.mxu1 %v8036_v43  ;;  %v3788_v51 = vld [vmem:[#allocation3 + $0x428] sm:$0xff] }
 0x638   :  { %6946 = vmatpush1.bf16.msra.mxu0 %v7907_v14  ;;  %v7996_v9 = vcombine.high %v3784_v49, %v3788_v51  ;;  %v3776_v50 = vld [vmem:[#allocation3 + $0x3c8] sm:$0xff]  ;;  %v7995_v62 = vcombine.low %v3784_v49, %v3788_v51 }
 0x639   :  { %6947 = vmatprep.subr.bf16.mxu0 %v7900_v32  ;;  %v3780_v44 = vld [vmem:[#allocation3 + $0x3e8] sm:$0xff] }
 0x63a   :  { %6989 = vmatpush1.bf16.msra.mxu1 %v8035_v17  ;;  %v3904_v26 = vld [vmem:[#allocation3 + $0x7c8] sm:$0xff]  ;;  %v7988_v28 = vcombine.high %v3776_v50, %v3780_v44  ;;  %v7987_v14 = vcombine.low %v3776_v50, %v3780_v44 }
 0x63b   :  { %6990 = vmatprep.subr.bf16.mxu1 %v8028_v63  ;;  %v3908_v23 = vld [vmem:[#allocation3 + $0x7e8] sm:$0xff] }
 0x63c   :  { %6948 = vmatpush1.bf16.msra.mxu0 %v7899_v54  ;;  %v8116_v43 = vcombine.high %v3904_v26, %v3908_v23  ;;  %v3768_v41 = vld [vmem:[#allocation3 + $0x388] sm:$0xff]  ;;  %v8115_v17 = vcombine.low %v3904_v26, %v3908_v23 }
 0x63d   :  { %6949 = vmatprep.subr.bf16.mxu0 %v7892_v57  ;;  %v3772_v20 = vld [vmem:[#allocation3 + $0x3a8] sm:$0xff] }
 0x63e   :  { %6991 = vmatpush1.bf16.msra.mxu1 %v8027_v38  ;;  %v3896_v59 = vld [vmem:[#allocation3 + $0x788] sm:$0xff]  ;;  %v7980_v32 = vcombine.high %v3768_v41, %v3772_v20  ;;  %v7979_v54 = vcombine.low %v3768_v41, %v3772_v20 }
 0x63f   :  { %6992 = vmatprep.subr.bf16.mxu1 %v8020_v4  ;;  %v3900_v58 = vld [vmem:[#allocation3 + $0x7a8] sm:$0xff] }
 0x640   :  { %6950 = vmatpush1.bf16.msra.mxu0 %v7891_v56  ;;  %v8108_v63 = vcombine.high %v3896_v59, %v3900_v58  ;;  %v3760_v35 = vld [vmem:[#allocation3 + $0x348] sm:$0xff]  ;;  %v8107_v38 = vcombine.low %v3896_v59, %v3900_v58 }
 0x641   :  { %6951 = vmatprep.subr.bf16.mxu0 %v7884_v39  ;;  %v3764_v22 = vld [vmem:[#allocation3 + $0x368] sm:$0xff] }
 0x642   :  { %6993 = vmatpush1.bf16.msra.mxu1 %v8019_v53  ;;  %v3888_v31 = vld [vmem:[#allocation3 + $0x748] sm:$0xff]  ;;  %v7972_v57 = vcombine.high %v3760_v35, %v3764_v22  ;;  %v7971_v56 = vcombine.low %v3760_v35, %v3764_v22 }
 0x643   :  { %6994 = vmatprep.subr.bf16.mxu1 %v8012_v24  ;;  %v3892_v42 = vld [vmem:[#allocation3 + $0x768] sm:$0xff] }
 0x644   :  { %6952 = vmatpush1.bf16.msra.mxu0 %v7883_v6  ;;  %v8100_v4 = vcombine.high %v3888_v31, %v3892_v42  ;;  %v3752_v40 = vld [vmem:[#allocation3 + $0x308] sm:$0xff]  ;;  %v8099_v53 = vcombine.low %v3888_v31, %v3892_v42 }
 0x645   :  { %6953 = vmatprep.subr.bf16.mxu0 %v7876_v47  ;;  %v3756_v13 = vld [vmem:[#allocation3 + $0x328] sm:$0xff] }
 0x646   :  { %6995 = vmatpush1.bf16.msra.mxu1 %v8011_v8  ;;  %v3880_v15 = vld [vmem:[#allocation3 + $0x708] sm:$0xff]  ;;  %v7964_v39 = vcombine.high %v3752_v40, %v3756_v13  ;;  %v7963_v6 = vcombine.low %v3752_v40, %v3756_v13 }
 0x647   :  { %6996 = vmatprep.subr.bf16.mxu1 %v8004_v16  ;;  %v3884_v5 = vld [vmem:[#allocation3 + $0x728] sm:$0xff] }
 0x648   :  { %6954 = vmatpush1.bf16.msra.mxu0 %v7875_v45  ;;  %v8092_v24 = vcombine.high %v3880_v15, %v3884_v5  ;;  %v3744_v36 = vld [vmem:[#allocation3 + $0x2c8] sm:$0xff]  ;;  %v8091_v8 = vcombine.low %v3880_v15, %v3884_v5 }
 0x649   :  { %6955 = vmatprep.subr.bf16.mxu0 %v7868_v61  ;;  %v3748_v29 = vld [vmem:[#allocation3 + $0x2e8] sm:$0xff] }
 0x64a   :  { %6997 = vmatpush1.bf16.msra.mxu1 %v8003_v1  ;;  %v3872_v25 = vld [vmem:[#allocation3 + $0x6c8] sm:$0xff]  ;;  %v7956_v47 = vcombine.high %v3744_v36, %v3748_v29  ;;  %v7955_v45 = vcombine.low %v3744_v36, %v3748_v29 }
 0x64b   :  { %6998 = vmatprep.subr.bf16.mxu1 %v7996_v9  ;;  %v3876_v21 = vld [vmem:[#allocation3 + $0x6e8] sm:$0xff] }
 0x64c   :  { %6956 = vmatpush1.bf16.msra.mxu0 %v7867_v55  ;;  %v8084_v16 = vcombine.high %v3872_v25, %v3876_v21  ;;  %v3736_v18 = vld [vmem:[#allocation3 + $0x288] sm:$0xff]  ;;  %v8083_v1 = vcombine.low %v3872_v25, %v3876_v21 }
 0x64d   :  { %6957 = vmatprep.subr.bf16.mxu0 %v7988_v28  ;;  %v3740_v37 = vld [vmem:[#allocation3 + $0x2a8] sm:$0xff] }
 0x64e   :  { %6999 = vmatpush1.bf16.msra.mxu1 %v7995_v62  ;;  %v3864_v49 = vld [vmem:[#allocation3 + $0x688] sm:$0xff]  ;;  %v7948_v61 = vcombine.high %v3736_v18, %v3740_v37  ;;  %v7947_v55 = vcombine.low %v3736_v18, %v3740_v37 }
 0x64f   :  { %7000 = vmatprep.subr.bf16.mxu1 %v8116_v43  ;;  %v3868_v51 = vld [vmem:[#allocation3 + $0x6a8] sm:$0xff] }
 0x650   :  { %6958 = vmatpush2.bf16.msra.mxu0 %v7987_v14  ;;  %v8076_v9 = vcombine.high %v3864_v49, %v3868_v51  ;;  %v3728_v50 = vld [vmem:[#allocation3 + $0x248] sm:$0xff]  ;;  %v8075_v62 = vcombine.low %v3864_v49, %v3868_v51 }
 0x651   :  { %6959 = vmatprep.subr.bf16.mxu0 %v7980_v32  ;;  %v3732_v44 = vld [vmem:[#allocation3 + $0x268] sm:$0xff] }
 0x652   :  { %7001 = vmatpush2.bf16.msra.mxu1 %v8115_v17  ;;  %v3856_v26 = vld [vmem:[#allocation3 + $0x648] sm:$0xff]  ;;  %v7940_v28 = vcombine.high %v3728_v50, %v3732_v44  ;;  %v7939_v14 = vcombine.low %v3728_v50, %v3732_v44 }
 0x653   :  { %7002 = vmatprep.subr.bf16.mxu1 %v8108_v63  ;;  %v3860_v23 = vld [vmem:[#allocation3 + $0x668] sm:$0xff] }
 0x654   :  { %6960 = vmatpush2.bf16.msra.mxu0 %v7979_v54  ;;  %v8068_v43 = vcombine.high %v3856_v26, %v3860_v23  ;;  %v3720_v41 = vld [vmem:[#allocation3 + $0x208] sm:$0xff]  ;;  %v8067_v17 = vcombine.low %v3856_v26, %v3860_v23 }
 0x655   :  { %6961 = vmatprep.subr.bf16.mxu0 %v7972_v57  ;;  %v3724_v20 = vld [vmem:[#allocation3 + $0x228] sm:$0xff] }
 0x656   :  { %7003 = vmatpush2.bf16.msra.mxu1 %v8107_v38  ;;  %v3848_v59 = vld [vmem:[#allocation3 + $0x608] sm:$0xff]  ;;  %v7932_v32 = vcombine.high %v3720_v41, %v3724_v20  ;;  %v7931_v54 = vcombine.low %v3720_v41, %v3724_v20 }
 0x657   :  { %7004 = vmatprep.subr.bf16.mxu1 %v8100_v4  ;;  %v3852_v58 = vld [vmem:[#allocation3 + $0x628] sm:$0xff] }
 0x658   :  { %6962 = vmatpush2.bf16.msra.mxu0 %v7971_v56  ;;  %v8060_v63 = vcombine.high %v3848_v59, %v3852_v58  ;;  %v3968_v35 = vld [vmem:[#allocation3 + $0x9c8] sm:$0xff]  ;;  %v8059_v38 = vcombine.low %v3848_v59, %v3852_v58 }
 0x659   :  { %6963 = vmatprep.subr.bf16.mxu0 %v7964_v39  ;;  %v3972_v22 = vld [vmem:[#allocation3 + $0x9e8] sm:$0xff] }
 0x65a   :  { %7005 = vmatpush2.bf16.msra.mxu1 %v8099_v53  ;;  %v4096_v31 = vld [vmem:[#allocation3 + $0xdc8] sm:$0xff]  ;;  %v8180_v57 = vcombine.high %v3968_v35, %v3972_v22  ;;  %v8179_v56 = vcombine.low %v3968_v35, %v3972_v22 }
 0x65b   :  { %7006 = vmatprep.subr.bf16.mxu1 %v8092_v24  ;;  %v4100_v42 = vld [vmem:[#allocation3 + $0xde8] sm:$0xff] }
 0x65c   :  { %6964 = vmatpush2.bf16.msra.mxu0 %v7963_v6  ;;  %v8308_v4 = vcombine.high %v4096_v31, %v4100_v42  ;;  %v3960_v40 = vld [vmem:[#allocation3 + $0x988] sm:$0xff]  ;;  %v8307_v53 = vcombine.low %v4096_v31, %v4100_v42 }
 0x65d   :  { %6965 = vmatprep.subr.bf16.mxu0 %v7956_v47  ;;  %v3964_v13 = vld [vmem:[#allocation3 + $0x9a8] sm:$0xff] }
 0x65e   :  { %7007 = vmatpush2.bf16.msra.mxu1 %v8091_v8  ;;  %v4088_v15 = vld [vmem:[#allocation3 + $0xd88] sm:$0xff]  ;;  %v8172_v39 = vcombine.high %v3960_v40, %v3964_v13  ;;  %v8171_v6 = vcombine.low %v3960_v40, %v3964_v13 }
 0x65f   :  { %7008 = vmatprep.subr.bf16.mxu1 %v8084_v16  ;;  %v4092_v5 = vld [vmem:[#allocation3 + $0xda8] sm:$0xff] }
 0x660   :  { %6966 = vmatpush2.bf16.msra.mxu0 %v7955_v45  ;;  %v8300_v24 = vcombine.high %v4088_v15, %v4092_v5  ;;  %v3952_v36 = vld [vmem:[#allocation3 + $0x948] sm:$0xff]  ;;  %v8299_v8 = vcombine.low %v4088_v15, %v4092_v5 }
 0x661   :  { %6967 = vmatprep.subr.bf16.mxu0 %v7948_v61  ;;  %v3956_v29 = vld [vmem:[#allocation3 + $0x968] sm:$0xff] }
 0x662   :  { %7009 = vmatpush2.bf16.msra.mxu1 %v8083_v1  ;;  %v4080_v25 = vld [vmem:[#allocation3 + $0xd48] sm:$0xff]  ;;  %v8164_v47 = vcombine.high %v3952_v36, %v3956_v29  ;;  %v8163_v45 = vcombine.low %v3952_v36, %v3956_v29 }
 0x663   :  { %7010 = vmatprep.subr.bf16.mxu1 %v8076_v9  ;;  %v4084_v21 = vld [vmem:[#allocation3 + $0xd68] sm:$0xff] }
 0x664   :  { %6968 = vmatpush2.bf16.msra.mxu0 %v7947_v55  ;;  %v8292_v16 = vcombine.high %v4080_v25, %v4084_v21  ;;  %v3944_v18 = vld [vmem:[#allocation3 + $0x908] sm:$0xff]  ;;  %v8291_v1 = vcombine.low %v4080_v25, %v4084_v21 }
 0x665   :  { %6969 = vmatprep.subr.bf16.mxu0 %v7940_v28  ;;  %v3948_v37 = vld [vmem:[#allocation3 + $0x928] sm:$0xff] }
 0x666   :  { %7011 = vmatpush2.bf16.msra.mxu1 %v8075_v62  ;;  %v4072_v49 = vld [vmem:[#allocation3 + $0xd08] sm:$0xff]  ;;  %v8156_v61 = vcombine.high %v3944_v18, %v3948_v37  ;;  %v8155_v55 = vcombine.low %v3944_v18, %v3948_v37 }
 0x667   :  { %7012 = vmatprep.subr.bf16.mxu1 %v8068_v43  ;;  %v4076_v51 = vld [vmem:[#allocation3 + $0xd28] sm:$0xff] }
 0x668   :  { %6970 = vmatpush2.bf16.msra.mxu0 %v7939_v14  ;;  %v8284_v9 = vcombine.high %v4072_v49, %v4076_v51  ;;  %v3936_v50 = vld [vmem:[#allocation3 + $0x8c8] sm:$0xff]  ;;  %v8283_v62 = vcombine.low %v4072_v49, %v4076_v51 }
 0x669   :  { %6971 = vmatprep.subr.bf16.mxu0 %v7932_v32  ;;  %v3940_v44 = vld [vmem:[#allocation3 + $0x8e8] sm:$0xff] }
 0x66a   :  { %7013 = vmatpush2.bf16.msra.mxu1 %v8067_v17  ;;  %v4064_v26 = vld [vmem:[#allocation3 + $0xcc8] sm:$0xff]  ;;  %v8148_v28 = vcombine.high %v3936_v50, %v3940_v44  ;;  %v8147_v14 = vcombine.low %v3936_v50, %v3940_v44 }
 0x66b   :  { %7014 = vmatprep.subr.bf16.mxu1 %v8060_v63  ;;  %v4068_v23 = vld [vmem:[#allocation3 + $0xce8] sm:$0xff] }
 0x66c   :  { %6972 = vmatpush2.bf16.msra.mxu0 %v7931_v54  ;;  %v8276_v43 = vcombine.high %v4064_v26, %v4068_v23  ;;  %v3928_v41 = vld [vmem:[#allocation3 + $0x888] sm:$0xff]  ;;  %v8275_v17 = vcombine.low %v4064_v26, %v4068_v23 }
 0x66d   :  { %7027 = vmatprep.subr.bf16.mxu0 %v8180_v57  ;;  %v3932_v20 = vld [vmem:[#allocation3 + $0x8a8] sm:$0xff] }
 0x66e   :  { %7015 = vmatpush2.bf16.msra.mxu1 %v8059_v38  ;;  %v4056_v59 = vld [vmem:[#allocation3 + $0xc88] sm:$0xff]  ;;  %v8140_v32 = vcombine.high %v3928_v41, %v3932_v20  ;;  %v8139_v54 = vcombine.low %v3928_v41, %v3932_v20 }
 0x66f   :  { %7070 = vmatprep.subr.bf16.mxu1 %v8308_v4  ;;  %6974 = vmatmul.mubr.bf16.vlgmr.msra.gmra.mxu0 %v9506_v46  ;;  %v4060_v58 = vld [vmem:[#allocation3 + $0xca8] sm:$0xff] }
 0x670   :  { %7028 = vmatpush1.bf16.msra.mxu0 %v8179_v56  ;;  %7059 = vmatprep.mubr.bf16.mxu0 %v9522_v10  ;;  %v8268_v63 = vcombine.high %v4056_v59, %v4060_v58  ;;  %v3920_v35 = vld [vmem:[#allocation3 + $0x848] sm:$0xff]  ;;  %v8267_v38 = vcombine.low %v4056_v59, %v4060_v58 }
 0x671   :  { %7017 = vmatmul.mubr.bf16.vlgmr.msra.gmra.mxu1 %v9514_v19  ;;  %7029 = vmatprep.subr.bf16.mxu0 %v8172_v39  ;;  %v3924_v22 = vld [vmem:[#allocation3 + $0x868] sm:$0xff] }
 0x672   :  { %7071 = vmatpush1.bf16.msra.mxu1 %v8307_v53  ;;  %7102 = vmatprep.mubr.bf16.mxu1 %v9531_v27  ;;  %v4048_v31 = vld [vmem:[#allocation3 + $0xc48] sm:$0xff]  ;;  %v8132_v57 = vcombine.high %v3920_v35, %v3924_v22  ;;  %v8131_v56 = vcombine.low %v3920_v35, %v3924_v22 }
 0x673   :  { %7072 = vmatprep.subr.bf16.mxu1 %v8300_v24  ;;  %v4052_v42 = vld [vmem:[#allocation3 + $0xc68] sm:$0xff] }
 0x674   :  { %7030 = vmatpush1.bf16.msra.mxu0 %v8171_v6  ;;  %v8260_v4 = vcombine.high %v4048_v31, %v4052_v42  ;;  %v3912_v40 = vld [vmem:[#allocation3 + $0x808] sm:$0xff]  ;;  %v8259_v53 = vcombine.low %v4048_v31, %v4052_v42 }
 0x675   :  { %7031 = vmatprep.subr.bf16.mxu0 %v8164_v47  ;;  %v3916_v13 = vld [vmem:[#allocation3 + $0x828] sm:$0xff] }
 0x676   :  { %7073 = vmatpush1.bf16.msra.mxu1 %v8299_v8  ;;  %v4040_v15 = vld [vmem:[#allocation3 + $0xc08] sm:$0xff]  ;;  %v8124_v39 = vcombine.high %v3912_v40, %v3916_v13  ;;  %v8123_v6 = vcombine.low %v3912_v40, %v3916_v13 }
 0x677   :  { %7074 = vmatprep.subr.bf16.mxu1 %v8292_v16  ;;  %v4044_v5 = vld [vmem:[#allocation3 + $0xc28] sm:$0xff] }
 0x678   :  { %7032 = vmatpush1.bf16.msra.mxu0 %v8163_v45  ;;  %v8252_v24 = vcombine.high %v4040_v15, %v4044_v5  ;;  %v4032_v36 = vld [vmem:[#allocation3 + $0xbc8] sm:$0xff]  ;;  %v8251_v8 = vcombine.low %v4040_v15, %v4044_v5 }
 0x679   :  { %7033 = vmatprep.subr.bf16.mxu0 %v8156_v61  ;;  %v4036_v29 = vld [vmem:[#allocation3 + $0xbe8] sm:$0xff] }
 0x67a   :  { %7075 = vmatpush1.bf16.msra.mxu1 %v8291_v1  ;;  %v4160_v25 = vld [vmem:[#allocation3 + $0xfc8] sm:$0xff]  ;;  %v8244_v47 = vcombine.high %v4032_v36, %v4036_v29  ;;  %v8243_v45 = vcombine.low %v4032_v36, %v4036_v29 }
 0x67b   :  { %7076 = vmatprep.subr.bf16.mxu1 %v8284_v9  ;;  %v4164_v21 = vld [vmem:[#allocation3 + $0xfe8] sm:$0xff] }
 0x67c   :  { %7034 = vmatpush1.bf16.msra.mxu0 %v8155_v55  ;;  %v8372_v16 = vcombine.high %v4160_v25, %v4164_v21  ;;  %v4024_v18 = vld [vmem:[#allocation3 + $0xb88] sm:$0xff]  ;;  %v8371_v1 = vcombine.low %v4160_v25, %v4164_v21 }
 0x67d   :  { %7035 = vmatprep.subr.bf16.mxu0 %v8148_v28  ;;  %v4028_v37 = vld [vmem:[#allocation3 + $0xba8] sm:$0xff] }
 0x67e   :  { %7077 = vmatpush1.bf16.msra.mxu1 %v8283_v62  ;;  %v4152_v49 = vld [vmem:[#allocation3 + $0xf88] sm:$0xff]  ;;  %v8236_v61 = vcombine.high %v4024_v18, %v4028_v37  ;;  %v8235_v55 = vcombine.low %v4024_v18, %v4028_v37 }
 0x67f   :  { %7078 = vmatprep.subr.bf16.mxu1 %v8276_v43  ;;  %v4156_v51 = vld [vmem:[#allocation3 + $0xfa8] sm:$0xff] }
 0x680   :  { %7036 = vmatpush1.bf16.msra.mxu0 %v8147_v14  ;;  %v8364_v9 = vcombine.high %v4152_v49, %v4156_v51  ;;  %v4016_v50 = vld [vmem:[#allocation3 + $0xb48] sm:$0xff]  ;;  %v8363_v62 = vcombine.low %v4152_v49, %v4156_v51 }
 0x681   :  { %7037 = vmatprep.subr.bf16.mxu0 %v8140_v32  ;;  %v4020_v44 = vld [vmem:[#allocation3 + $0xb68] sm:$0xff] }
 0x682   :  { %7079 = vmatpush1.bf16.msra.mxu1 %v8275_v17  ;;  %v4144_v26 = vld [vmem:[#allocation3 + $0xf48] sm:$0xff]  ;;  %v8228_v28 = vcombine.high %v4016_v50, %v4020_v44  ;;  %v8227_v14 = vcombine.low %v4016_v50, %v4020_v44  ;;  %v3713_v50 = vld [vmem:[#allocation3 + $0x1d0] sm:$0xff] }
 0x683   :  { %7080 = vmatprep.subr.bf16.mxu1 %v8268_v63  ;;  %v4148_v23 = vld [vmem:[#allocation3 + $0xf68] sm:$0xff]  ;;  %v3717_v44 = vld [vmem:[#allocation3 + $0x1f0] sm:$0xff] }
 0x684   :  { %7038 = vmatpush1.bf16.msra.mxu0 %v8139_v54  ;;  %v8356_v43 = vcombine.high %v4144_v26, %v4148_v23  ;;  %v4008_v41 = vld [vmem:[#allocation3 + $0xb08] sm:$0xff]  ;;  %v8355_v17 = vcombine.low %v4144_v26, %v4148_v23  ;;  %v3841_v26 = vld [vmem:[#allocation3 + $0x5d0] sm:$0xff] }
 0x685   :  { %7039 = vmatprep.subr.bf16.mxu0 %v8132_v57  ;;  %v4012_v20 = vld [vmem:[#allocation3 + $0xb28] sm:$0xff]  ;;  %v3845_v23 = vld [vmem:[#allocation3 + $0x5f0] sm:$0xff] }
 0x686   :  { %7081 = vmatpush1.bf16.msra.mxu1 %v8267_v38  ;;  %v4136_v59 = vld [vmem:[#allocation3 + $0xf08] sm:$0xff]  ;;  %v8220_v32 = vcombine.high %v4008_v41, %v4012_v20  ;;  %v8219_v54 = vcombine.low %v4008_v41, %v4012_v20  ;;  %v3705_v41 = vld [vmem:[#allocation3 + $0x190] sm:$0xff] }
 0x687   :  { %7082 = vmatprep.subr.bf16.mxu1 %v8260_v4  ;;  %v4140_v58 = vld [vmem:[#allocation3 + $0xf28] sm:$0xff]  ;;  %v3709_v20 = vld [vmem:[#allocation3 + $0x1b0] sm:$0xff] }
 0x688   :  { %7040 = vmatpush1.bf16.msra.mxu0 %v8131_v56  ;;  %v8348_v63 = vcombine.high %v4136_v59, %v4140_v58  ;;  %v4000_v35 = vld [vmem:[#allocation3 + $0xac8] sm:$0xff]  ;;  %v8347_v38 = vcombine.low %v4136_v59, %v4140_v58  ;;  %v3833_v59 = vld [vmem:[#allocation3 + $0x590] sm:$0xff] }
 0x689   :  { %7041 = vmatprep.subr.bf16.mxu0 %v8124_v39  ;;  %v4004_v22 = vld [vmem:[#allocation3 + $0xae8] sm:$0xff]  ;;  %v3837_v58 = vld [vmem:[#allocation3 + $0x5b0] sm:$0xff] }
 0x68a   :  { %7083 = vmatpush1.bf16.msra.mxu1 %v8259_v53  ;;  %v4128_v31 = vld [vmem:[#allocation3 + $0xec8] sm:$0xff]  ;;  %v8212_v57 = vcombine.high %v4000_v35, %v4004_v22  ;;  %v8211_v56 = vcombine.low %v4000_v35, %v4004_v22  ;;  %v3697_v35 = vld [vmem:[#allocation3 + $0x150] sm:$0xff] }
 0x68b   :  { %7084 = vmatprep.subr.bf16.mxu1 %v8252_v24  ;;  %v4132_v42 = vld [vmem:[#allocation3 + $0xee8] sm:$0xff]  ;;  %v3701_v22 = vld [vmem:[#allocation3 + $0x170] sm:$0xff] }
 0x68c   :  { %7042 = vmatpush1.bf16.msra.mxu0 %v8123_v6  ;;  %v8340_v4 = vcombine.high %v4128_v31, %v4132_v42  ;;  %v3992_v40 = vld [vmem:[#allocation3 + $0xa88] sm:$0xff]  ;;  %v8339_v53 = vcombine.low %v4128_v31, %v4132_v42  ;;  %v3825_v31 = vld [vmem:[#allocation3 + $0x550] sm:$0xff] }
 0x68d   :  { %7043 = vmatprep.subr.bf16.mxu0 %v8244_v47  ;;  %v3996_v13 = vld [vmem:[#allocation3 + $0xaa8] sm:$0xff]  ;;  %v3829_v42 = vld [vmem:[#allocation3 + $0x570] sm:$0xff] }
 0x68e   :  { %7085 = vmatpush1.bf16.msra.mxu1 %v8251_v8  ;;  %v4120_v15 = vld [vmem:[#allocation3 + $0xe88] sm:$0xff]  ;;  %v8204_v39 = vcombine.high %v3992_v40, %v3996_v13  ;;  %v8203_v6 = vcombine.low %v3992_v40, %v3996_v13  ;;  %v3689_v40 = vld [vmem:[#allocation3 + $0x110] sm:$0xff] }
 0x68f   :  { %7086 = vmatprep.subr.bf16.mxu1 %v8372_v16  ;;  %v4124_v5 = vld [vmem:[#allocation3 + $0xea8] sm:$0xff]  ;;  %v3693_v13 = vld [vmem:[#allocation3 + $0x130] sm:$0xff] }
 0x690   :  { %7044 = vmatpush2.bf16.msra.mxu0 %v8243_v45  ;;  %v8332_v24 = vcombine.high %v4120_v15, %v4124_v5  ;;  %v3984_v36 = vld [vmem:[#allocation3 + $0xa48] sm:$0xff]  ;;  %v8331_v8 = vcombine.low %v4120_v15, %v4124_v5  ;;  %v3817_v15 = vld [vmem:[#allocation3 + $0x510] sm:$0xff] }
 0x691   :  { %7045 = vmatprep.subr.bf16.mxu0 %v8236_v61  ;;  %v3988_v29 = vld [vmem:[#allocation3 + $0xa68] sm:$0xff]  ;;  %v3821_v5 = vld [vmem:[#allocation3 + $0x530] sm:$0xff] }
 0x692   :  { %7087 = vmatpush2.bf16.msra.mxu1 %v8371_v1  ;;  %v4112_v25 = vld [vmem:[#allocation3 + $0xe48] sm:$0xff]  ;;  %v8196_v47 = vcombine.high %v3984_v36, %v3988_v29  ;;  %v8195_v45 = vcombine.low %v3984_v36, %v3988_v29  ;;  %v3681_v36 = vld [vmem:[#allocation3 + $0xd0] sm:$0xff] }
 0x693   :  { %7088 = vmatprep.subr.bf16.mxu1 %v8364_v9  ;;  %v4116_v21 = vld [vmem:[#allocation3 + $0xe68] sm:$0xff]  ;;  %v3685_v29 = vld [vmem:[#allocation3 + $0xf0] sm:$0xff] }
 0x694   :  { %7046 = vmatpush2.bf16.msra.mxu0 %v8235_v55  ;;  %v8324_v16 = vcombine.high %v4112_v25, %v4116_v21  ;;  %v3976_v18 = vld [vmem:[#allocation3 + $0xa08] sm:$0xff]  ;;  %v8323_v1 = vcombine.low %v4112_v25, %v4116_v21  ;;  %v3809_v25 = vld [vmem:[#allocation3 + $0x4d0] sm:$0xff] }
 0x695   :  { %7047 = vmatprep.subr.bf16.mxu0 %v8228_v28  ;;  %v3980_v37 = vld [vmem:[#allocation3 + $0xa28] sm:$0xff]  ;;  %v7926_v28 = vcombine.high %v3713_v50, %v3717_v44  ;;  %v3813_v21 = vld [vmem:[#allocation3 + $0x4f0] sm:$0xff] }
 0x696   :  { %7089 = vmatpush2.bf16.msra.mxu1 %v8363_v62  ;;  %v4104_v49 = vld [vmem:[#allocation3 + $0xe08] sm:$0xff]  ;;  %v8188_v61 = vcombine.high %v3976_v18, %v3980_v37  ;;  %v8187_v55 = vcombine.low %v3976_v18, %v3980_v37  ;;  %v3673_v18 = vld [vmem:[#allocation3 + $0x90] sm:$0xff] }
 0x697   :  { %7090 = vmatprep.subr.bf16.mxu1 %v8356_v43  ;;  %v4108_v51 = vld [vmem:[#allocation3 + $0xe28] sm:$0xff]  ;;  %v8054_v43 = vcombine.high %v3841_v26, %v3845_v23  ;;  %v3677_v37 = vld [vmem:[#allocation3 + $0xb0] sm:$0xff] }
 0x698   :  { %7048 = vmatpush2.bf16.msra.mxu0 %v8227_v14  ;;  %v8316_v9 = vcombine.high %v4104_v49, %v4108_v51  ;;  %v8315_v62 = vcombine.low %v4104_v49, %v4108_v51  ;;  %v7925_v14 = vcombine.low %v3713_v50, %v3717_v44  ;;  %v3801_v49 = vld [vmem:[#allocation3 + $0x490] sm:$0xff] }
 0x699   :  { %7049 = vmatprep.subr.bf16.mxu0 %v8220_v32  ;;  %v7918_v32 = vcombine.high %v3705_v41, %v3709_v20  ;;  %v3805_v51 = vld [vmem:[#allocation3 + $0x4b0] sm:$0xff] }
 0x69a   :  { %7091 = vmatpush2.bf16.msra.mxu1 %v8355_v17  ;;  %v8053_v17 = vcombine.low %v3841_v26, %v3845_v23  ;;  %v3665_v50 = vld [vmem:[#allocation3 + $0x50] sm:$0xff] }
 0x69b   :  { %7092 = vmatprep.subr.bf16.mxu1 %v8348_v63  ;;  %v8046_v63 = vcombine.high %v3833_v59, %v3837_v58  ;;  %v3669_v44 = vld [vmem:[#allocation3 + $0x70] sm:$0xff] }
 0x69c   :  { %7050 = vmatpush2.bf16.msra.mxu0 %v8219_v54  ;;  %v7917_v54 = vcombine.low %v3705_v41, %v3709_v20  ;;  %v3793_v26 = vld [vmem:[#allocation3 + $0x450] sm:$0xff] }
 0x69d   :  { %7051 = vmatprep.subr.bf16.mxu0 %v8212_v57  ;;  %v7910_v57 = vcombine.high %v3697_v35, %v3701_v22  ;;  %v3797_v23 = vld [vmem:[#allocation3 + $0x470] sm:$0xff] }
 0x69e   :  { %7093 = vmatpush2.bf16.msra.mxu1 %v8347_v38  ;;  %v8045_v38 = vcombine.low %v3833_v59, %v3837_v58  ;;  %v3657_v41 = vld [vmem:[#allocation3 + $0x10] sm:$0xff] }
 0x69f   :  { %7094 = vmatprep.subr.bf16.mxu1 %v8340_v4  ;;  %v8038_v4 = vcombine.high %v3825_v31, %v3829_v42  ;;  %v3661_v20 = vld [vmem:[#allocation3 + $0x30] sm:$0xff] }
 0x6a0   :  { %7052 = vmatpush2.bf16.msra.mxu0 %v8211_v56  ;;  %v7909_v56 = vcombine.low %v3697_v35, %v3701_v22  ;;  %v3785_v59 = vld [vmem:[#allocation3 + $0x410] sm:$0xff] }
 0x6a1   :  { %7053 = vmatprep.subr.bf16.mxu0 %v8204_v39  ;;  %v7902_v39 = vcombine.high %v3689_v40, %v3693_v13  ;;  %v3789_v58 = vld [vmem:[#allocation3 + $0x430] sm:$0xff] }
 0x6a2   :  { %7095 = vmatpush2.bf16.msra.mxu1 %v8339_v53  ;;  %v8037_v53 = vcombine.low %v3825_v31, %v3829_v42  ;;  %v3777_v35 = vld [vmem:[#allocation3 + $0x3d0] sm:$0xff] }
 0x6a3   :  { %7096 = vmatprep.subr.bf16.mxu1 %v8332_v24  ;;  %v8030_v24 = vcombine.high %v3817_v15, %v3821_v5  ;;  %v3781_v22 = vld [vmem:[#allocation3 + $0x3f0] sm:$0xff] }
 0x6a4   :  { %7054 = vmatpush2.bf16.msra.mxu0 %v8203_v6  ;;  %v7901_v6 = vcombine.low %v3689_v40, %v3693_v13  ;;  %v3905_v31 = vld [vmem:[#allocation3 + $0x7d0] sm:$0xff] }
 0x6a5   :  { %7055 = vmatprep.subr.bf16.mxu0 %v8196_v47  ;;  %v7894_v47 = vcombine.high %v3681_v36, %v3685_v29  ;;  %v3909_v42 = vld [vmem:[#allocation3 + $0x7f0] sm:$0xff] }
 0x6a6   :  { %7097 = vmatpush2.bf16.msra.mxu1 %v8331_v8  ;;  %v8029_v8 = vcombine.low %v3817_v15, %v3821_v5  ;;  %v3769_v40 = vld [vmem:[#allocation3 + $0x390] sm:$0xff] }
 0x6a7   :  { %7098 = vmatprep.subr.bf16.mxu1 %v8324_v16  ;;  %v8022_v16 = vcombine.high %v3809_v25, %v3813_v21  ;;  %v3773_v13 = vld [vmem:[#allocation3 + $0x3b0] sm:$0xff] }
 0x6a8   :  { %7056 = vmatpush2.bf16.msra.mxu0 %v8195_v45  ;;  %v7893_v45 = vcombine.low %v3681_v36, %v3685_v29  ;;  %v3897_v15 = vld [vmem:[#allocation3 + $0x790] sm:$0xff] }
 0x6a9   :  { %7057 = vmatprep.subr.bf16.mxu0 %v8188_v61  ;;  %v7886_v61 = vcombine.high %v3673_v18, %v3677_v37  ;;  %v3901_v5 = vld [vmem:[#allocation3 + $0x7b0] sm:$0xff] }
 0x6aa   :  { %7099 = vmatpush2.bf16.msra.mxu1 %v8323_v1  ;;  %v8021_v1 = vcombine.low %v3809_v25, %v3813_v21  ;;  %v3761_v36 = vld [vmem:[#allocation3 + $0x350] sm:$0xff] }
 0x6ab   :  { %7100 = vmatprep.subr.bf16.mxu1 %v8316_v9  ;;  %v8014_v9 = vcombine.high %v3801_v49, %v3805_v51  ;;  %v3765_v29 = vld [vmem:[#allocation3 + $0x370] sm:$0xff] }
 0x6ac   :  { %7058 = vmatpush2.bf16.msra.mxu0 %v8187_v55  ;;  %v7885_v55 = vcombine.low %v3673_v18, %v3677_v37  ;;  %v3889_v25 = vld [vmem:[#allocation3 + $0x750] sm:$0xff] }
 0x6ad   :  { %7113 = vmatprep.subr.bf16.mxu0 %v7926_v28  ;;  %v7878_v28 = vcombine.high %v3665_v50, %v3669_v44  ;;  %v3893_v21 = vld [vmem:[#allocation3 + $0x770] sm:$0xff] }
 0x6ae   :  { %7101 = vmatpush2.bf16.msra.mxu1 %v8315_v62  ;;  %v8013_v62 = vcombine.low %v3801_v49, %v3805_v51  ;;  %v3753_v18 = vld [vmem:[#allocation3 + $0x310] sm:$0xff] }
 0x6af   :  { %7156 = vmatprep.subr.bf16.mxu1 %v8054_v43  ;;  %7060 = vmatmul.mubr.bf16.vlgmr.msra.gmra.mxu0 %v9542_v48  ;;  %v8006_v43 = vcombine.high %v3793_v26, %v3797_v23  ;;  %v3757_v37 = vld [vmem:[#allocation3 + $0x330] sm:$0xff] }
 0x6b0   :  { %7114 = vmatpush1.bf16.msra.mxu0 %v7925_v14  ;;  %7145 = vmatprep.mubr.bf16.mxu0 %v9494_v3  ;;  %v7877_v14 = vcombine.low %v3665_v50, %v3669_v44  ;;  %v3881_v49 = vld [vmem:[#allocation3 + $0x710] sm:$0xff] }
 0x6b1   :  { %7103 = vmatmul.mubr.bf16.vlgmr.msra.gmra.mxu1 %v9550_v30  ;;  %7115 = vmatprep.subr.bf16.mxu0 %v7918_v32  ;;  %v7870_v32 = vcombine.high %v3657_v41, %v3661_v20  ;;  %v3885_v51 = vld [vmem:[#allocation3 + $0x730] sm:$0xff] }
 0x6b2   :  { %7157 = vmatpush1.bf16.msra.mxu1 %v8053_v17  ;;  %7188 = vmatprep.mubr.bf16.mxu1 %v9496_v12  ;;  %v8005_v17 = vcombine.low %v3793_v26, %v3797_v23  ;;  %v3745_v50 = vld [vmem:[#allocation3 + $0x2d0] sm:$0xff] }
 0x6b3   :  { %7158 = vmatprep.subr.bf16.mxu1 %v8046_v63  ;;  %v7998_v63 = vcombine.high %v3785_v59, %v3789_v58  ;;  %v3749_v44 = vld [vmem:[#allocation3 + $0x2f0] sm:$0xff] }
 0x6b4   :  { %7116 = vmatpush1.bf16.msra.mxu0 %v7917_v54  ;;  %v7869_v54 = vcombine.low %v3657_v41, %v3661_v20  ;;  %v3873_v26 = vld [vmem:[#allocation3 + $0x6d0] sm:$0xff] }
 0x6b5   :  { %7117 = vmatprep.subr.bf16.mxu0 %v7910_v57  ;;  %v7990_v57 = vcombine.high %v3777_v35, %v3781_v22  ;;  %v3877_v23 = vld [vmem:[#allocation3 + $0x6f0] sm:$0xff] }
 0x6b6   :  { %7159 = vmatpush1.bf16.msra.mxu1 %v8045_v38  ;;  %v7997_v38 = vcombine.low %v3785_v59, %v3789_v58  ;;  %v3737_v41 = vld [vmem:[#allocation3 + $0x290] sm:$0xff] }
 0x6b7   :  { %7160 = vmatprep.subr.bf16.mxu1 %v8038_v4  ;;  %v8118_v4 = vcombine.high %v3905_v31, %v3909_v42  ;;  %v3741_v20 = vld [vmem:[#allocation3 + $0x2b0] sm:$0xff] }
 0x6b8   :  { %7118 = vmatpush1.bf16.msra.mxu0 %v7909_v56  ;;  %v7989_v56 = vcombine.low %v3777_v35, %v3781_v22  ;;  %v3865_v59 = vld [vmem:[#allocation3 + $0x690] sm:$0xff] }
 0x6b9   :  { %7119 = vmatprep.subr.bf16.mxu0 %v7902_v39  ;;  %v7982_v39 = vcombine.high %v3769_v40, %v3773_v13  ;;  %v3869_v58 = vld [vmem:[#allocation3 + $0x6b0] sm:$0xff] }
 0x6ba   :  { %7161 = vmatpush1.bf16.msra.mxu1 %v8037_v53  ;;  %v8117_v53 = vcombine.low %v3905_v31, %v3909_v42  ;;  %v3729_v35 = vld [vmem:[#allocation3 + $0x250] sm:$0xff] }
 0x6bb   :  { %7162 = vmatprep.subr.bf16.mxu1 %v8030_v24  ;;  %v8110_v24 = vcombine.high %v3897_v15, %v3901_v5  ;;  %v3733_v22 = vld [vmem:[#allocation3 + $0x270] sm:$0xff] }
 0x6bc   :  { %7120 = vmatpush1.bf16.msra.mxu0 %v7901_v6  ;;  %v7981_v6 = vcombine.low %v3769_v40, %v3773_v13  ;;  %v3857_v31 = vld [vmem:[#allocation3 + $0x650] sm:$0xff]  ;;  %v6846_v40 = vpop.f32.mrf.mxu1 }
 0x6bd   :  { %7121 = vmatprep.subr.bf16.mxu0 %v7894_v47  ;;  %v7974_v47 = vcombine.high %v3761_v36, %v3765_v29  ;;  %v3861_v42 = vld [vmem:[#allocation3 + $0x670] sm:$0xff] }
 0x6be   :  { %7163 = vmatpush1.bf16.msra.mxu1 %v8029_v8  ;;  %v8109_v8 = vcombine.low %v3897_v15, %v3901_v5  ;;  %v8070_v13 = vcombine.high %v3857_v31, %v3861_v42  ;;  %v3721_v15 = vld [vmem:[#allocation3 + $0x210] sm:$0xff] }
 0x6bf   :  { %7164 = vmatprep.subr.bf16.mxu1 %v8022_v16  ;;  %v8102_v16 = vcombine.high %v3889_v25, %v3893_v21  ;;  %v3725_v5 = vld [vmem:[#allocation3 + $0x230] sm:$0xff] }
 0x6c0   :  { %7122 = vmatpush1.bf16.msra.mxu0 %v7893_v45  ;;  %v7973_v45 = vcombine.low %v3761_v36, %v3765_v29  ;;  %v8069_v29 = vcombine.low %v3857_v31, %v3861_v42 }
 0x6c1   :  { %7123 = vmatprep.subr.bf16.mxu0 %v7886_v61  ;;  %v7966_v61 = vcombine.high %v3753_v18, %v3757_v37 }
 0x6c2   :  { %7165 = vmatpush1.bf16.msra.mxu1 %v8021_v1  ;;  %v8101_v1 = vcombine.low %v3889_v25, %v3893_v21  ;;  %v7934_v25 = vcombine.high %v3721_v15, %v3725_v5 }
 0x6c3   :  { %7166 = vmatprep.subr.bf16.mxu1 %v8014_v9  ;;  %v8094_v9 = vcombine.high %v3881_v49, %v3885_v51 }
 0x6c4   :  { %7124 = vmatpush1.bf16.msra.mxu0 %v7885_v55  ;;  %v7965_v55 = vcombine.low %v3753_v18, %v3757_v37  ;;  %v4097_v18 = vld [vmem:[#allocation3 + $0xdd0] sm:$0xff] }
 0x6c5   :  { %7125 = vmatprep.subr.bf16.mxu0 %v7878_v28  ;;  %v7958_v28 = vcombine.high %v3745_v50, %v3749_v44  ;;  %v4101_v37 = vld [vmem:[#allocation3 + $0xdf0] sm:$0xff] }
 0x6c6   :  { %7167 = vmatpush1.bf16.msra.mxu1 %v8013_v62  ;;  %v8093_v62 = vcombine.low %v3881_v49, %v3885_v51  ;;  %v7933_v51 = vcombine.low %v3721_v15, %v3725_v5 }
 0x6c7   :  { %7168 = vmatprep.subr.bf16.mxu1 %v8006_v43  ;;  %v8086_v43 = vcombine.high %v3873_v26, %v3877_v23 }
 0x6c8   :  { %7126 = vmatpush1.bf16.msra.mxu0 %v7877_v14  ;;  %v7957_v14 = vcombine.low %v3745_v50, %v3749_v44  ;;  %v3961_v44 = vld [vmem:[#allocation3 + $0x990] sm:$0xff] }
 0x6c9   :  { %7127 = vmatprep.subr.bf16.mxu0 %v7870_v32  ;;  %v7950_v32 = vcombine.high %v3737_v41, %v3741_v20 }
 0x6ca   :  { %7169 = vmatpush1.bf16.msra.mxu1 %v8005_v17  ;;  %v8085_v17 = vcombine.low %v3873_v26, %v3877_v23  ;;  %v3965_v26 = vld [vmem:[#allocation3 + $0x9b0] sm:$0xff] }
 0x6cb   :  { %7170 = vmatprep.subr.bf16.mxu1 %v7998_v63  ;;  %v8078_v63 = vcombine.high %v3865_v59, %v3869_v58  ;;  %v4089_v23 = vld [vmem:[#allocation3 + $0xd90] sm:$0xff]  ;;  %v8173_v31 = vcombine.low %v3961_v44, %v3965_v26 }
 0x6cc   :  { %7128 = vmatpush1.bf16.msra.mxu0 %v7869_v54  ;;  %v7949_v54 = vcombine.low %v3737_v41, %v3741_v20  ;;  %v8174_v41 = vcombine.high %v3961_v44, %v3965_v26  ;;  %v3953_v20 = vld [vmem:[#allocation3 + $0x950] sm:$0xff] }
 0x6cd   :  { %7129 = vmatprep.subr.bf16.mxu0 %v7990_v57  ;;  %v8077_v57 = vcombine.low %v3865_v59, %v3869_v58  ;;  %v4065_v26 = vld [vmem:[#allocation3 + $0xcd0] sm:$0xff] }
 0x6ce   :  { %7171 = vmatpush1.bf16.msra.mxu1 %v7997_v38  ;;  %v6803_v38 = vpop.f32.mrf.mxu0 }
 0x6cf   :  { %7172 = vmatprep.subr.bf16.mxu1 %v8118_v4  ;;  %v7942_v4 = vcombine.high %v3729_v35, %v3733_v22 }
 0x6d0   :  { %7130 = vmatpush2.bf16.msra.mxu0 %v7989_v56  ;;  %v9564_v56 = vld [vmem:[#allocation23] sm:$0xff]  ;;  %v6805_v36 = vpop.f32.mrf.mxu0 }
 0x6d1   :  { %7131 = vmatprep.subr.bf16.mxu0 %v7982_v39  ;;  %v3853_v39 = vld [vmem:[#allocation3 + $0x630] sm:$0xff]  ;;  %v4172_v21 = vrot.slane %v9564_v56, %v9090_v33  ;;  %v4176_v49 = vrot.slane %v9564_v56, %v9093_v34  ;;  %v8310_v33 = vcombine.high %v4097_v18, %v4101_v37  ;;  %v8309_v34 = vcombine.low %v4097_v18, %v4101_v37 }
 0x6d2   :  { %7173 = vmatpush2.bf16.msra.mxu1 %v8117_v53  ;;  %v3849_v53 = vld [vmem:[#allocation3 + $0x610] sm:$0xff] }
 0x6d3   :  { %7174 = vmatprep.subr.bf16.mxu1 %v8110_v24  ;;  %v7941_v24 = vcombine.low %v3729_v35, %v3733_v22  ;;  %v4085_v35 = vld [vmem:[#allocation3 + $0xd70] sm:$0xff] }
 0x6d4   :  { %7132 = vmatpush2.bf16.msra.mxu0 %v7981_v6  ;;  %v6848_v6 = vpop.f32.mrf.mxu1 }
 0x6d5   :  { %7133 = vmatprep.subr.bf16.mxu0 %v7974_v47  ;;  %v3969_v47 = vld [vmem:[#allocation3 + $0x9d0] sm:$0xff] }
 0x6d6   :  { %7175 = vmatpush2.bf16.msra.mxu1 %v8109_v8  ;;  %v8062_v8 = vcombine.high %v3849_v53, %v3853_v39  ;;  %v6850_v50 = vpop.f32.mrf.mxu1 }
 0x6d7   :  { %7176 = vmatprep.subr.bf16.mxu1 %v8102_v16  ;;  %v3973_v16 = vld [vmem:[#allocation3 + $0x9f0] sm:$0xff] }
 0x6d8   :  { %7134 = vmatpush2.bf16.msra.mxu0 %v7973_v45  ;;  %v6807_v45 = vpop.f32.mrf.mxu0 }
 0x6d9   :  { %7135 = vmatprep.subr.bf16.mxu0 %v7966_v61  ;;  %v8182_v61 = vcombine.high %v3969_v47, %v3973_v16  ;;  %v6808_v58 = vadd.f32 %v6807_v45, %v4172_v21 }
 0x6da   :  { %7177 = vmatpush2.bf16.msra.mxu1 %v8101_v1  ;;  %v8061_v1 = vcombine.low %v3849_v53, %v3853_v39 }
 0x6db   :  { %7178 = vmatprep.subr.bf16.mxu1 %v8094_v9  ;;  %v6804_v9 = vadd.f32 %v6803_v38, %v4172_v21  ;;  %v6851_v5 = vadd.f32 %v6850_v50, %v6808_v58  ;;  %v3937_v50 = vld [vmem:[#allocation3 + $0x8d0] sm:$0xff] }
 0x6dc   :  { %7136 = vmatpush2.bf16.msra.mxu0 %v7965_v55  ;;  %v4093_v55 = vld [vmem:[#allocation3 + $0xdb0] sm:$0xff] }
 0x6dd   :  { %7137 = vmatprep.subr.bf16.mxu0 %v7958_v28  ;;  %v8181_v28 = vcombine.low %v3969_v47, %v3973_v16  ;;  %v6847_v59 = vadd.f32 %v6846_v40, %v6804_v9  ;;  %v8301_v40 = vcombine.low %v4089_v23, %v4093_v55  ;;  %v4061_v58 = vld [vmem:[#allocation3 + $0xcb0] sm:$0xff] }
 0x6de   :  { %7179 = vmatpush2.bf16.msra.mxu1 %v8093_v62  ;;  %v6806_v62 = vadd.f32 %v6805_v36, %v4176_v49  ;;  %v3945_v36 = vld [vmem:[#allocation3 + $0x910] sm:$0xff] }
 0x6df   :  { %7180 = vmatprep.subr.bf16.mxu1 %v8086_v43  ;;  %v6809_v43 = vpop.f32.mrf.mxu0 }
 0x6e0   :  { %7138 = vmatpush2.bf16.msra.mxu0 %v7957_v14  ;;  %v6852_v14 = vpop.f32.mrf.mxu1  ;;  %v6849_v42 = vadd.f32 %v6848_v6, %v6806_v62  ;;  %v4073_v6 = vld [vmem:[#allocation3 + $0xd10] sm:$0xff] }
 0x6e1   :  { %7139 = vmatprep.subr.bf16.mxu0 %v7950_v32  ;;  %v3957_v32 = vld [vmem:[#allocation3 + $0x970] sm:$0xff] }
 0x6e2   :  { %7181 = vmatpush2.bf16.msra.mxu1 %v8085_v17  ;;  %v8302_v17 = vcombine.high %v4089_v23, %v4093_v55  ;;  %v8165_v21 = vcombine.low %v3953_v20, %v3957_v32  ;;  %v4069_v23 = vld [vmem:[#allocation3 + $0xcf0] sm:$0xff] }
 0x6e3   :  { %7182 = vmatprep.subr.bf16.mxu1 %v8078_v63  ;;  %v4081_v63 = vld [vmem:[#allocation3 + $0xd50] sm:$0xff] }
 0x6e4   :  { %7140 = vmatpush2.bf16.msra.mxu0 %v7949_v54  ;;  %v6810_v54 = vadd.f32 %v6809_v43, %v4176_v49  ;;  %v8294_v15 = vcombine.high %v4081_v63, %v4085_v35 }
 0x6e5   :  { %7141 = vmatprep.subr.bf16.mxu0 %v7942_v4 }
 0x6e6   :  { %7183 = vmatpush2.bf16.msra.mxu1 %v8077_v57  ;;  %v6853_v47 = vadd.f32 %v6852_v14, %v6810_v54 }
 0x6e7   :  { %7184 = vmatprep.subr.bf16.mxu1 %v8070_v13  ;;  %v8166_v13 = vcombine.high %v3953_v20, %v3957_v32  ;;  %v3933_v20 = vld [vmem:[#allocation3 + $0x8b0] sm:$0xff] }
 0x6e8   :  { %7142 = vmatpush2.bf16.msra.mxu0 %v7941_v24 }
 0x6e9   :  { %7143 = vmatprep.subr.bf16.mxu0 %v7934_v25 }
 0x6ea   :  { %7185 = vmatpush2.bf16.msra.mxu1 %v8069_v29  ;;  %v3949_v29 = vld [vmem:[#allocation3 + $0x930] sm:$0xff] }
 0x6eb   :  { %7186 = vmatprep.subr.bf16.mxu1 %v8062_v8  ;;  %v4077_v8 = vld [vmem:[#allocation3 + $0xd30] sm:$0xff]  ;;  %v8158_v45 = vcombine.high %v3945_v36, %v3949_v29  ;;  %v8157_v62 = vcombine.low %v3945_v36, %v3949_v29 }
 0x6ec   :  { %7144 = vmatpush2.bf16.msra.mxu0 %v7933_v51  ;;  %v8293_v51 = vcombine.low %v4081_v63, %v4085_v35  ;;  %v8286_v9 = vcombine.high %v4073_v6, %v4077_v8  ;;  %v3921_v35 = vld [vmem:[#allocation3 + $0x850] sm:$0xff] }
 0x6ed   :  { %7199 = vmatprep.subr.bf16.mxu0 %v8182_v61 }
 0x6ee   :  { %7187 = vmatpush2.bf16.msra.mxu1 %v8061_v1 }
 0x6ef   :  { %7242 = vmatprep.subr.bf16.mxu1 %v8310_v33  ;;  %v6889_v22 = vpop.f32.mrf.mxu0  ;;  %7146 = vmatmul.mubr.bf16.vlgmr.msra.gmra.mxu0 %v9506_v46  ;;  %v3941_v33 = vld [vmem:[#allocation3 + $0x8f0] sm:$0xff] }
 0x6f0   :  { %v6890_v38 = vadd.f32 %v6889_v22, %v6847_v59  ;;  %7200 = vmatpush1.bf16.msra.mxu0 %v8181_v28  ;;  %7231 = vmatprep.mubr.bf16.mxu0 %v9522_v10  ;;  %v8285_v28 = vcombine.low %v4073_v6, %v4077_v8  ;;  %v8150_v43 = vcombine.high %v3937_v50, %v3941_v33  ;;  %v4057_v59 = vld [vmem:[#allocation3 + $0xc90] sm:$0xff] }
 0x6f1   :  { %v6932_v57 = vpop.f32.mrf.mxu1  ;;  %7189 = vmatmul.mubr.bf16.vlgmr.msra.gmra.mxu1 %v9514_v19  ;;  %v6891_v4 = vpop.f32.mrf.mxu0  ;;  %7201 = vmatprep.subr.bf16.mxu0 %v8174_v41  ;;  %v3929_v41 = vld [vmem:[#allocation3 + $0x890] sm:$0xff]  ;;  %v8149_v14 = vcombine.low %v3937_v50, %v3941_v33  ;;  %v8270_v63 = vcombine.high %v4057_v59, %v4061_v58 }
 0x6f2   :  { %7243 = vmatpush1.bf16.msra.mxu1 %v8309_v34  ;;  %v6933_v53 = vadd.f32 %v6932_v57, %v6890_v38  ;;  %v6892_v39 = vadd.f32 %v6891_v4, %v6849_v42  ;;  %7274 = vmatprep.mubr.bf16.mxu1 %v9531_v27  ;;  %v8278_v34 = vcombine.high %v4065_v26, %v4069_v23  ;;  %v3925_v22 = vld [vmem:[#allocation3 + $0x870] sm:$0xff] }
 0x6f3   :  { %v6934_v24 = vpop.f32.mrf.mxu1  ;;  %7244 = vmatprep.subr.bf16.mxu1 %v8302_v17  ;;  %v6893_v25 = vpop.f32.mrf.mxu0  ;;  %v8277_v17 = vcombine.low %v4065_v26, %v4069_v23  ;;  %v8142_v32 = vcombine.high %v3929_v41, %v3933_v20  ;;  %v4053_v42 = vld [vmem:[#allocation3 + $0xc70] sm:$0xff]  ;;  %v8141_v54 = vcombine.low %v3929_v41, %v3933_v20  ;;  %v8269_v57 = vcombine.low %v4057_v59, %v4061_v58 }
 0x6f4   :  { %8566 = vtanh.f32 %v6933_v53  ;;  %v6935_v16 = vadd.f32 %v6934_v24, %v6892_v39  ;;  %v6894_v18 = vadd.f32 %v6893_v25, %v6851_v5  ;;  %7202 = vmatpush1.bf16.msra.mxu0 %v8173_v31  ;;  %v4049_v31 = vld [vmem:[#allocation3 + $0xc50] sm:$0xff]  ;;  %v8134_v4 = vcombine.high %v3921_v35, %v3925_v22 }
 0x6f5   :  { %v6936_v37 = vpop.f32.mrf.mxu1  ;;  %v6895_v49 = vpop.f32.mrf.mxu0  ;;  %7203 = vmatprep.subr.bf16.mxu0 %v8166_v13  ;;  %v3913_v13 = vld [vmem:[#allocation3 + $0x810] sm:$0xff]  ;;  %v8133_v24 = vcombine.low %v3921_v35, %v3925_v22  ;;  %v8261_v29 = vcombine.low %v4049_v31, %v4053_v42 }
 0x6f6   :  { %7245 = vmatpush1.bf16.msra.mxu1 %v8301_v40  ;;  %8568 = vtanh.f32 %v6935_v16  ;;  %v6937_v1 = vadd.f32 %v6936_v37, %v6894_v18  ;;  %v6896_v61 = vadd.f32 %v6895_v49, %v6853_v47  ;;  %v8262_v40 = vcombine.high %v4049_v31, %v4053_v42  ;;  %v4041_v53 = vld [vmem:[#allocation3 + $0xc10] sm:$0xff] }
 0x6f7   :  { %7246 = vmatprep.subr.bf16.mxu1 %v8294_v15  ;;  %v6938_v44 = vpop.f32.mrf.mxu1  ;;  %v3917_v15 = vld [vmem:[#allocation3 + $0x830] sm:$0xff] }
 0x6f8   :  { %8570 = vtanh.f32 %v6937_v1  ;;  %v6939_v55 = vadd.f32 %v6938_v44, %v6896_v61  ;;  %7204 = vmatpush1.bf16.msra.mxu0 %v8165_v21  ;;  %v4045_v39 = vld [vmem:[#allocation3 + $0xc30] sm:$0xff]  ;;  %v8126_v25 = vcombine.high %v3913_v13, %v3917_v15  ;;  %v8125_v37 = vcombine.low %v3913_v13, %v3917_v15 }
 0x6f9   :  { %7205 = vmatprep.subr.bf16.mxu0 %v8158_v45  ;;  %v8254_v21 = vcombine.high %v4041_v53, %v4045_v39  ;;  %v4033_v6 = vld [vmem:[#allocation3 + $0xbd0] sm:$0xff]  ;;  %v8253_v49 = vcombine.low %v4041_v53, %v4045_v39 }
 0x6fa   :  { %7247 = vmatpush1.bf16.msra.mxu1 %v8293_v51  ;;  %8572 = vtanh.f32 %v6939_v55  ;;  %v4037_v8 = vld [vmem:[#allocation3 + $0xbf0] sm:$0xff] }
 0x6fb   :  { %7248 = vmatprep.subr.bf16.mxu1 %v8286_v9  ;;  %v4161_v16 = vld [vmem:[#allocation3 + $0xfd0] sm:$0xff]  ;;  %v8246_v51 = vcombine.high %v4033_v6, %v4037_v8  ;;  %v8245_v33 = vcombine.low %v4033_v6, %v4037_v8 }
 0x6fc   :  { %7206 = vmatpush1.bf16.msra.mxu0 %v8157_v62  ;;  %v4165_v18 = vld [vmem:[#allocation3 + $0xff0] sm:$0xff] }
 0x6fd   :  { %7207 = vmatprep.subr.bf16.mxu0 %v8150_v43  ;;  %v8374_v45 = vcombine.high %v4161_v16, %v4165_v18  ;;  %v4025_v1 = vld [vmem:[#allocation3 + $0xb90] sm:$0xff]  ;;  %v8373_v44 = vcombine.low %v4161_v16, %v4165_v18 }
 0x6fe   :  { %7249 = vmatpush1.bf16.msra.mxu1 %v8285_v28  ;;  %v4029_v61 = vld [vmem:[#allocation3 + $0xbb0] sm:$0xff] }
 0x6ff   :  { %7250 = vmatprep.subr.bf16.mxu1 %v8278_v34  ;;  %v4153_v9 = vld [vmem:[#allocation3 + $0xf90] sm:$0xff]  ;;  %v8238_v26 = vcombine.high %v4025_v1, %v4029_v61  ;;  %v8237_v34 = vcombine.low %v4025_v1, %v4029_v61 }
 0x700   :  { %7208 = vmatpush1.bf16.msra.mxu0 %v8149_v14  ;;  %v4157_v50 = vld [vmem:[#allocation3 + $0xfb0] sm:$0xff] }
 0x701   :  { %v8567_v38 = vpop.eup %8566  ;;  %7209 = vmatprep.subr.bf16.mxu0 %v8142_v32  ;;  %v8366_v23 = vcombine.high %v4153_v9, %v4157_v50  ;;  %v4017_v55 = vld [vmem:[#allocation3 + $0xb50] sm:$0xff]  ;;  %v8365_v41 = vcombine.low %v4153_v9, %v4157_v50 }
 0x702   :  { %7251 = vmatpush1.bf16.msra.mxu1 %v8277_v17  ;;  %7473 = vst [vmem:[#allocation25] sm:$0xff] %v8567_v38  ;;  %v4021_v62 = vld [vmem:[#allocation3 + $0xb70] sm:$0xff] }
 0x703   :  { %7252 = vmatprep.subr.bf16.mxu1 %v8270_v63  ;;  %v8569_v5 = vpop.eup %8568  ;;  %v4145_v28 = vld [vmem:[#allocation3 + $0xf50] sm:$0xff]  ;;  %v8230_v20 = vcombine.high %v4017_v55, %v4021_v62  ;;  %v8229_v63 = vcombine.low %v4017_v55, %v4021_v62  ;;  %v3718_v55 = vld [vmem:[#allocation3 + $0x1f8] sm:$0xff] }
 0x704   :  { %7474 = vst [vmem:[#allocation25 + $0x8] sm:$0xff] %v8569_v5  ;;  %7210 = vmatpush1.bf16.msra.mxu0 %v8141_v54  ;;  %v4149_v43 = vld [vmem:[#allocation3 + $0xf70] sm:$0xff]  ;;  %v3842_v62 = vld [vmem:[#allocation3 + $0x5d8] sm:$0xff] }
 0x705   :  { %v8571_v36 = vpop.eup %8570  ;;  %7211 = vmatprep.subr.bf16.mxu0 %v8134_v4  ;;  %v8358_v59 = vcombine.high %v4145_v28, %v4149_v43  ;;  %v4009_v58 = vld [vmem:[#allocation3 + $0xb10] sm:$0xff]  ;;  %v8357_v35 = vcombine.low %v4145_v28, %v4149_v43  ;;  %v3846_v28 = vld [vmem:[#allocation3 + $0x5f8] sm:$0xff] }
 0x706   :  { %7253 = vmatpush1.bf16.msra.mxu1 %v8269_v57  ;;  %7481 = vst [vmem:[#allocation25 + $0x40] sm:$0xff] %v8571_v36  ;;  %v4013_v14 = vld [vmem:[#allocation3 + $0xb30] sm:$0xff] }
 0x707   :  { %7254 = vmatprep.subr.bf16.mxu1 %v8262_v40  ;;  %v8573_v47 = vpop.eup %8572  ;;  %v4137_v17 = vld [vmem:[#allocation3 + $0xf10] sm:$0xff]  ;;  %v8222_v22 = vcombine.high %v4009_v58, %v4013_v14  ;;  %v8221_v4 = vcombine.low %v4009_v58, %v4013_v14  ;;  %v3710_v58 = vld [vmem:[#allocation3 + $0x1b8] sm:$0xff] }
 0x708   :  { %7482 = vst [vmem:[#allocation25 + $0x48] sm:$0xff] %v8573_v47  ;;  %7212 = vmatpush1.bf16.msra.mxu0 %v8133_v24  ;;  %v4141_v32 = vld [vmem:[#allocation3 + $0xf30] sm:$0xff]  ;;  %v3834_v14 = vld [vmem:[#allocation3 + $0x598] sm:$0xff] }
 0x709   :  { %7213 = vmatprep.subr.bf16.mxu0 %v8126_v25  ;;  %v8350_v31 = vcombine.high %v4137_v17, %v4141_v32  ;;  %v4001_v42 = vld [vmem:[#allocation3 + $0xad0] sm:$0xff]  ;;  %v8349_v40 = vcombine.low %v4137_v17, %v4141_v32  ;;  %v3838_v17 = vld [vmem:[#allocation3 + $0x5b8] sm:$0xff] }
 0x70a   :  { %7255 = vmatpush1.bf16.msra.mxu1 %v8261_v29  ;;  %v4005_v54 = vld [vmem:[#allocation3 + $0xaf0] sm:$0xff] }
 0x70b   :  { %7256 = vmatprep.subr.bf16.mxu1 %v8254_v21  ;;  %v4129_v38 = vld [vmem:[#allocation3 + $0xed0] sm:$0xff]  ;;  %v8214_v13 = vcombine.high %v4001_v42, %v4005_v54  ;;  %v8213_v36 = vcombine.low %v4001_v42, %v4005_v54  ;;  %v3702_v42 = vld [vmem:[#allocation3 + $0x178] sm:$0xff] }
 0x70c   :  { %7214 = vmatpush1.bf16.msra.mxu0 %v8125_v37  ;;  %v4133_v57 = vld [vmem:[#allocation3 + $0xef0] sm:$0xff]  ;;  %v3826_v54 = vld [vmem:[#allocation3 + $0x558] sm:$0xff] }
 0x70d   :  { %7215 = vmatprep.subr.bf16.mxu0 %v8246_v51  ;;  %v8342_v15 = vcombine.high %v4129_v38, %v4133_v57  ;;  %v3993_v5 = vld [vmem:[#allocation3 + $0xa90] sm:$0xff]  ;;  %v8341_v29 = vcombine.low %v4129_v38, %v4133_v57  ;;  %v3830_v38 = vld [vmem:[#allocation3 + $0x578] sm:$0xff] }
 0x70e   :  { %7257 = vmatpush1.bf16.msra.mxu1 %v8253_v49  ;;  %v3997_v53 = vld [vmem:[#allocation3 + $0xab0] sm:$0xff] }
 0x70f   :  { %7258 = vmatprep.subr.bf16.mxu1 %v8374_v45  ;;  %v4121_v39 = vld [vmem:[#allocation3 + $0xe90] sm:$0xff]  ;;  %v8206_v25 = vcombine.high %v3993_v5, %v3997_v53  ;;  %v8205_v18 = vcombine.low %v3993_v5, %v3997_v53  ;;  %v3694_v5 = vld [vmem:[#allocation3 + $0x138] sm:$0xff] }
 0x710   :  { %7216 = vmatpush2.bf16.msra.mxu0 %v8245_v33  ;;  %v4125_v24 = vld [vmem:[#allocation3 + $0xeb0] sm:$0xff]  ;;  %v3818_v53 = vld [vmem:[#allocation3 + $0x518] sm:$0xff] }
 0x711   :  { %7217 = vmatprep.subr.bf16.mxu0 %v8238_v26  ;;  %v8334_v21 = vcombine.high %v4121_v39, %v4125_v24  ;;  %v3985_v6 = vld [vmem:[#allocation3 + $0xa50] sm:$0xff]  ;;  %v8333_v37 = vcombine.low %v4121_v39, %v4125_v24  ;;  %v3822_v39 = vld [vmem:[#allocation3 + $0x538] sm:$0xff] }
 0x712   :  { %7259 = vmatpush2.bf16.msra.mxu1 %v8373_v44  ;;  %v3989_v8 = vld [vmem:[#allocation3 + $0xa70] sm:$0xff] }
 0x713   :  { %7260 = vmatprep.subr.bf16.mxu1 %v8366_v23  ;;  %v4113_v47 = vld [vmem:[#allocation3 + $0xe50] sm:$0xff]  ;;  %v8198_v49 = vcombine.high %v3985_v6, %v3989_v8  ;;  %v8197_v50 = vcombine.low %v3985_v6, %v3989_v8  ;;  %v3714_v23 = vld [vmem:[#allocation3 + $0x1d8] sm:$0xff] }
 0x714   :  { %7218 = vmatpush2.bf16.msra.mxu0 %v8237_v34  ;;  %v4117_v16 = vld [vmem:[#allocation3 + $0xe70] sm:$0xff]  ;;  %v7927_v32 = vcombine.low %v3714_v23, %v3718_v55  ;;  %v3686_v6 = vld [vmem:[#allocation3 + $0xf8] sm:$0xff] }
 0x715   :  { %7219 = vmatprep.subr.bf16.mxu0 %v8230_v20  ;;  %v8326_v51 = vcombine.high %v4113_v47, %v4117_v16  ;;  %v3977_v45 = vld [vmem:[#allocation3 + $0xa10] sm:$0xff]  ;;  %v8325_v33 = vcombine.low %v4113_v47, %v4117_v16  ;;  %v8056_v20 = vcombine.high %v3842_v62, %v3846_v28  ;;  %v3810_v8 = vld [vmem:[#allocation3 + $0x4d8] sm:$0xff] }
 0x716   :  { %7261 = vmatpush2.bf16.msra.mxu1 %v8365_v41  ;;  %v3981_v1 = vld [vmem:[#allocation3 + $0xa30] sm:$0xff]  ;;  %v7928_v41 = vcombine.high %v3714_v23, %v3718_v55  ;;  %v3814_v47 = vld [vmem:[#allocation3 + $0x4f8] sm:$0xff] }
 0x717   :  { %7262 = vmatprep.subr.bf16.mxu1 %v8358_v59  ;;  %v4105_v61 = vld [vmem:[#allocation3 + $0xe10] sm:$0xff]  ;;  %v8190_v44 = vcombine.high %v3977_v45, %v3981_v1  ;;  %v8189_v43 = vcombine.low %v3977_v45, %v3981_v1  ;;  %v3706_v59 = vld [vmem:[#allocation3 + $0x198] sm:$0xff] }
 0x718   :  { %7220 = vmatpush2.bf16.msra.mxu0 %v8229_v63  ;;  %v4109_v9 = vld [vmem:[#allocation3 + $0xe30] sm:$0xff]  ;;  %v8055_v63 = vcombine.low %v3842_v62, %v3846_v28  ;;  %v7919_v57 = vcombine.low %v3706_v59, %v3710_v58  ;;  %v3806_v45 = vld [vmem:[#allocation3 + $0x4b8] sm:$0xff] }
 0x719   :  { %7221 = vmatprep.subr.bf16.mxu0 %v8222_v22  ;;  %v8318_v26 = vcombine.high %v4105_v61, %v4109_v9  ;;  %v8317_v34 = vcombine.low %v4105_v61, %v4109_v9  ;;  %v8048_v22 = vcombine.high %v3834_v14, %v3838_v17  ;;  %v8023_v61 = vcombine.low %v3810_v8, %v3814_v47  ;;  %v3798_v23 = vld [vmem:[#allocation3 + $0x478] sm:$0xff] }
 0x71a   :  { %7263 = vmatpush2.bf16.msra.mxu1 %v8357_v35  ;;  %v7920_v35 = vcombine.high %v3706_v59, %v3710_v58  ;;  %v3790_v59 = vld [vmem:[#allocation3 + $0x438] sm:$0xff] }
 0x71b   :  { %7264 = vmatprep.subr.bf16.mxu1 %v8350_v31  ;;  %v3698_v31 = vld [vmem:[#allocation3 + $0x158] sm:$0xff] }
 0x71c   :  { %7222 = vmatpush2.bf16.msra.mxu0 %v8221_v4  ;;  %v8047_v4 = vcombine.low %v3834_v14, %v3838_v17  ;;  %v7911_v24 = vcombine.low %v3698_v31, %v3702_v42 }
 0x71d   :  { %7223 = vmatprep.subr.bf16.mxu0 %v8214_v13  ;;  %v8040_v13 = vcombine.high %v3826_v54, %v3830_v38 }
 0x71e   :  { %7265 = vmatpush2.bf16.msra.mxu1 %v8349_v40  ;;  %v7912_v40 = vcombine.high %v3698_v31, %v3702_v42  ;;  %v3910_v31 = vld [vmem:[#allocation3 + $0x7f8] sm:$0xff] }
 0x71f   :  { %7266 = vmatprep.subr.bf16.mxu1 %v8342_v15  ;;  %v3690_v15 = vld [vmem:[#allocation3 + $0x118] sm:$0xff] }
 0x720   :  { %7224 = vmatpush2.bf16.msra.mxu0 %v8213_v36  ;;  %v8039_v36 = vcombine.low %v3826_v54, %v3830_v38  ;;  %v7903_v16 = vcombine.low %v3690_v15, %v3694_v5 }
 0x721   :  { %7225 = vmatprep.subr.bf16.mxu0 %v8206_v25  ;;  %v8032_v25 = vcombine.high %v3818_v53, %v3822_v39 }
 0x722   :  { %7267 = vmatpush2.bf16.msra.mxu1 %v8341_v29  ;;  %v7904_v29 = vcombine.high %v3690_v15, %v3694_v5  ;;  %v3902_v15 = vld [vmem:[#allocation3 + $0x7b8] sm:$0xff] }
 0x723   :  { %7268 = vmatprep.subr.bf16.mxu1 %v8334_v21  ;;  %v3682_v21 = vld [vmem:[#allocation3 + $0xd8] sm:$0xff] }
 0x724   :  { %7226 = vmatpush2.bf16.msra.mxu0 %v8205_v18  ;;  %v7896_v18 = vcombine.high %v3682_v21, %v3686_v6  ;;  %v7895_v1 = vcombine.low %v3682_v21, %v3686_v6  ;;  %v3894_v21 = vld [vmem:[#allocation3 + $0x778] sm:$0xff] }
 0x725   :  { %7227 = vmatprep.subr.bf16.mxu0 %v8198_v49  ;;  %v3678_v49 = vld [vmem:[#allocation3 + $0xb8] sm:$0xff] }
 0x726   :  { %7269 = vmatpush2.bf16.msra.mxu1 %v8333_v37  ;;  %v3674_v37 = vld [vmem:[#allocation3 + $0x98] sm:$0xff] }
 0x727   :  { %7270 = vmatprep.subr.bf16.mxu1 %v8326_v51  ;;  %v3802_v51 = vld [vmem:[#allocation3 + $0x498] sm:$0xff]  ;;  %v7888_v9 = vcombine.high %v3674_v37, %v3678_v49  ;;  %v7887_v55 = vcombine.low %v3674_v37, %v3678_v49 }
 0x728   :  { %7228 = vmatpush2.bf16.msra.mxu0 %v8197_v50  ;;  %v8016_v50 = vcombine.high %v3802_v51, %v3806_v45  ;;  %v8015_v62 = vcombine.low %v3802_v51, %v3806_v45  ;;  %v3886_v37 = vld [vmem:[#allocation3 + $0x738] sm:$0xff] }
 0x729   :  { %7229 = vmatprep.subr.bf16.mxu0 %v8190_v44  ;;  %v3670_v44 = vld [vmem:[#allocation3 + $0x78] sm:$0xff] }
 0x72a   :  { %7271 = vmatpush2.bf16.msra.mxu1 %v8325_v33  ;;  %v3666_v33 = vld [vmem:[#allocation3 + $0x58] sm:$0xff] }
 0x72b   :  { %7272 = vmatprep.subr.bf16.mxu1 %v8318_v26  ;;  %v3794_v26 = vld [vmem:[#allocation3 + $0x458] sm:$0xff]  ;;  %v7880_v28 = vcombine.high %v3666_v33, %v3670_v44  ;;  %v7879_v58 = vcombine.low %v3666_v33, %v3670_v44 }
 0x72c   :  { %7230 = vmatpush2.bf16.msra.mxu0 %v8189_v43  ;;  %v8008_v43 = vcombine.high %v3794_v26, %v3798_v23  ;;  %v8007_v14 = vcombine.low %v3794_v26, %v3798_v23  ;;  %v3878_v33 = vld [vmem:[#allocation3 + $0x6f8] sm:$0xff] }
 0x72d   :  { %7285 = vmatprep.subr.bf16.mxu0 %v7928_v41  ;;  %v3662_v41 = vld [vmem:[#allocation3 + $0x38] sm:$0xff] }
 0x72e   :  { %7273 = vmatpush2.bf16.msra.mxu1 %v8317_v34  ;;  %v3658_v34 = vld [vmem:[#allocation3 + $0x18] sm:$0xff] }
 0x72f   :  { %7328 = vmatprep.subr.bf16.mxu1 %v8056_v20  ;;  %7232 = vmatmul.mubr.bf16.vlgmr.msra.gmra.mxu0 %v9542_v48  ;;  %v3786_v20 = vld [vmem:[#allocation3 + $0x418] sm:$0xff]  ;;  %v7872_v17 = vcombine.high %v3658_v34, %v3662_v41  ;;  %v7871_v42 = vcombine.low %v3658_v34, %v3662_v41 }
 0x730   :  { %7286 = vmatpush1.bf16.msra.mxu0 %v7927_v32  ;;  %7317 = vmatprep.mubr.bf16.mxu0 %v9494_v3  ;;  %v8031_v3 = vcombine.low %v3818_v53, %v3822_v39  ;;  %v8000_v32 = vcombine.high %v3786_v20, %v3790_v59  ;;  %v7999_v54 = vcombine.low %v3786_v20, %v3790_v59  ;;  %v3870_v34 = vld [vmem:[#allocation3 + $0x6b8] sm:$0xff] }
 0x731   :  { %7275 = vmatmul.mubr.bf16.vlgmr.msra.gmra.mxu1 %v9550_v30  ;;  %7287 = vmatprep.subr.bf16.mxu0 %v7920_v35  ;;  %v3782_v35 = vld [vmem:[#allocation3 + $0x3f8] sm:$0xff] }
 0x732   :  { %7329 = vmatpush1.bf16.msra.mxu1 %v8055_v63  ;;  %7360 = vmatprep.mubr.bf16.mxu1 %v9496_v12  ;;  %v8024_v12 = vcombine.high %v3810_v8, %v3814_v47  ;;  %v3778_v63 = vld [vmem:[#allocation3 + $0x3d8] sm:$0xff] }
 0x733   :  { %7330 = vmatprep.subr.bf16.mxu1 %v8048_v22  ;;  %v3906_v22 = vld [vmem:[#allocation3 + $0x7d8] sm:$0xff]  ;;  %v7992_v38 = vcombine.high %v3778_v63, %v3782_v35  ;;  %v7991_v5 = vcombine.low %v3778_v63, %v3782_v35 }
 0x734   :  { %7288 = vmatpush1.bf16.msra.mxu0 %v7919_v57  ;;  %v8120_v57 = vcombine.high %v3906_v22, %v3910_v31  ;;  %v8119_v53 = vcombine.low %v3906_v22, %v3910_v31  ;;  %v3862_v63 = vld [vmem:[#allocation3 + $0x678] sm:$0xff]  ;;  %v6975_v22 = vpop.f32.mrf.mxu0 }
 0x735   :  { %7289 = vmatprep.subr.bf16.mxu0 %v7912_v40  ;;  %v3774_v40 = vld [vmem:[#allocation3 + $0x3b8] sm:$0xff] }
 0x736   :  { %7331 = vmatpush1.bf16.msra.mxu1 %v8047_v4  ;;  %v3770_v4 = vld [vmem:[#allocation3 + $0x398] sm:$0xff] }
 0x737   :  { %7332 = vmatprep.subr.bf16.mxu1 %v8040_v13  ;;  %v3898_v13 = vld [vmem:[#allocation3 + $0x798] sm:$0xff]  ;;  %v7984_v39 = vcombine.high %v3770_v4, %v3774_v40  ;;  %v7983_v6 = vcombine.low %v3770_v4, %v3774_v40 }
 0x738   :  { %7290 = vmatpush1.bf16.msra.mxu0 %v7911_v24  ;;  %v8112_v24 = vcombine.high %v3898_v13, %v3902_v15  ;;  %v8111_v8 = vcombine.low %v3898_v13, %v3902_v15  ;;  %v3726_v4 = vld [vmem:[#allocation3 + $0x238] sm:$0xff] }
 0x739   :  { %7291 = vmatprep.subr.bf16.mxu0 %v7904_v29  ;;  %v3766_v29 = vld [vmem:[#allocation3 + $0x378] sm:$0xff] }
 0x73a   :  { %7333 = vmatpush1.bf16.msra.mxu1 %v8039_v36  ;;  %v3762_v36 = vld [vmem:[#allocation3 + $0x358] sm:$0xff] }
 0x73b   :  { %7334 = vmatprep.subr.bf16.mxu1 %v8032_v25  ;;  %v3890_v25 = vld [vmem:[#allocation3 + $0x758] sm:$0xff]  ;;  %v7976_v47 = vcombine.high %v3762_v36, %v3766_v29  ;;  %v7975_v49 = vcombine.low %v3762_v36, %v3766_v29 }
 0x73c   :  { %7292 = vmatpush1.bf16.msra.mxu0 %v7903_v16  ;;  %v8104_v16 = vcombine.high %v3890_v25, %v3894_v21  ;;  %v8103_v51 = vcombine.low %v3890_v25, %v3894_v21  ;;  %v3850_v40 = vld [vmem:[#allocation3 + $0x618] sm:$0xff] }
 0x73d   :  { %7293 = vmatprep.subr.bf16.mxu0 %v7896_v18  ;;  %v3758_v18 = vld [vmem:[#allocation3 + $0x338] sm:$0xff] }
 0x73e   :  { %7335 = vmatpush1.bf16.msra.mxu1 %v8031_v3  ;;  %v3754_v3 = vld [vmem:[#allocation3 + $0x318] sm:$0xff] }
 0x73f   :  { %7336 = vmatprep.subr.bf16.mxu1 %v8024_v12  ;;  %v3882_v12 = vld [vmem:[#allocation3 + $0x718] sm:$0xff]  ;;  %v7968_v45 = vcombine.high %v3754_v3, %v3758_v18  ;;  %v7967_v44 = vcombine.low %v3754_v3, %v3758_v18 }
 0x740   :  { %7294 = vmatpush1.bf16.msra.mxu0 %v7895_v1  ;;  %v8096_v1 = vcombine.high %v3882_v12, %v3886_v37  ;;  %v8095_v26 = vcombine.low %v3882_v12, %v3886_v37  ;;  %v3854_v13 = vld [vmem:[#allocation3 + $0x638] sm:$0xff] }
 0x741   :  { %7295 = vmatprep.subr.bf16.mxu0 %v7888_v9  ;;  %v3750_v9 = vld [vmem:[#allocation3 + $0x2f8] sm:$0xff]  ;;  %v8064_v29 = vcombine.high %v3850_v40, %v3854_v13  ;;  %v8063_v18 = vcombine.low %v3850_v40, %v3854_v13 }
 0x742   :  { %7337 = vmatpush1.bf16.msra.mxu1 %v8023_v61  ;;  %v3746_v61 = vld [vmem:[#allocation3 + $0x2d8] sm:$0xff] }
 0x743   :  { %7338 = vmatprep.subr.bf16.mxu1 %v8016_v50  ;;  %v3874_v50 = vld [vmem:[#allocation3 + $0x6d8] sm:$0xff]  ;;  %v7960_v23 = vcombine.high %v3746_v61, %v3750_v9  ;;  %v7959_v41 = vcombine.low %v3746_v61, %v3750_v9 }
 0x744   :  { %7296 = vmatpush1.bf16.msra.mxu0 %v7887_v55  ;;  %v8088_v55 = vcombine.high %v3874_v50, %v3878_v33  ;;  %v8087_v20 = vcombine.low %v3874_v50, %v3878_v33  ;;  %v3970_v25 = vld [vmem:[#allocation3 + $0x9d8] sm:$0xff] }
 0x745   :  { %7297 = vmatprep.subr.bf16.mxu0 %v7880_v28  ;;  %v3742_v28 = vld [vmem:[#allocation3 + $0x2b8] sm:$0xff] }
 0x746   :  { %7339 = vmatpush1.bf16.msra.mxu1 %v8015_v62  ;;  %v3738_v62 = vld [vmem:[#allocation3 + $0x298] sm:$0xff] }
 0x747   :  { %7340 = vmatprep.subr.bf16.mxu1 %v8008_v43  ;;  %v3866_v43 = vld [vmem:[#allocation3 + $0x698] sm:$0xff]  ;;  %v7952_v59 = vcombine.high %v3738_v62, %v3742_v28  ;;  %v7951_v35 = vcombine.low %v3738_v62, %v3742_v28 }
 0x748   :  { %7298 = vmatpush1.bf16.msra.mxu0 %v7879_v58  ;;  %v8080_v58 = vcombine.high %v3866_v43, %v3870_v34  ;;  %v8079_v31 = vcombine.low %v3866_v43, %v3870_v34  ;;  %v3974_v21 = vld [vmem:[#allocation3 + $0x9f8] sm:$0xff] }
 0x749   :  { %7299 = vmatprep.subr.bf16.mxu0 %v7872_v17  ;;  %v3734_v17 = vld [vmem:[#allocation3 + $0x278] sm:$0xff]  ;;  %v8184_v12 = vcombine.high %v3970_v25, %v3974_v21  ;;  %v8183_v50 = vcombine.low %v3970_v25, %v3974_v21 }
 0x74a   :  { %7341 = vmatpush1.bf16.msra.mxu1 %v8007_v14  ;;  %v3730_v14 = vld [vmem:[#allocation3 + $0x258] sm:$0xff] }
 0x74b   :  { %7342 = vmatprep.subr.bf16.mxu1 %v8000_v32  ;;  %v3858_v32 = vld [vmem:[#allocation3 + $0x658] sm:$0xff]  ;;  %v7943_v15 = vcombine.low %v3730_v14, %v3734_v17 }
 0x74c   :  { %7300 = vmatpush1.bf16.msra.mxu0 %v7871_v42  ;;  %v7944_v42 = vcombine.high %v3730_v14, %v3734_v17  ;;  %v4094_v61 = vld [vmem:[#allocation3 + $0xdb8] sm:$0xff] }
 0x74d   :  { %7301 = vmatprep.subr.bf16.mxu0 %v7992_v38  ;;  %v8072_v38 = vcombine.high %v3858_v32, %v3862_v63  ;;  %v3958_v28 = vld [vmem:[#allocation3 + $0x978] sm:$0xff] }
 0x74e   :  { %7343 = vmatpush1.bf16.msra.mxu1 %v7999_v54  ;;  %v7018_v54 = vpop.f32.mrf.mxu1  ;;  %v4082_v43 = vld [vmem:[#allocation3 + $0xd58] sm:$0xff] }
 0x74f   :  { %7344 = vmatprep.subr.bf16.mxu1 %v8120_v57  ;;  %v3722_v57 = vld [vmem:[#allocation3 + $0x218] sm:$0xff] }
 0x750   :  { %7302 = vmatpush2.bf16.msra.mxu0 %v7991_v5  ;;  %v6977_v5 = vpop.f32.mrf.mxu0  ;;  %v7020_v36 = vpop.f32.mrf.mxu1  ;;  %v4086_v34 = vld [vmem:[#allocation3 + $0xd78] sm:$0xff] }
 0x751   :  { %7303 = vmatprep.subr.bf16.mxu0 %v7984_v39  ;;  %v7936_v39 = vcombine.high %v3722_v57, %v3726_v4  ;;  %v4074_v13 = vld [vmem:[#allocation3 + $0xd18] sm:$0xff] }
 0x752   :  { %7345 = vmatpush2.bf16.msra.mxu1 %v8119_v53  ;;  %v8071_v53 = vcombine.low %v3858_v32, %v3862_v63  ;;  %v6979_v3 = vpop.f32.mrf.mxu0 }
 0x753   :  { %7346 = vmatprep.subr.bf16.mxu1 %v8112_v24  ;;  %v4180_v24 = vrot.slane %v9564_v56, %v9151_v2 }
 0x754   :  { %7304 = vmatpush2.bf16.msra.mxu0 %v7983_v6  ;;  %v4098_v6 = vld [vmem:[#allocation3 + $0xdd8] sm:$0xff]  ;;  %v6981_v33 = vpop.f32.mrf.mxu0 }
 0x755   :  { %7305 = vmatprep.subr.bf16.mxu0 %v7976_v47  ;;  %v4184_v47 = vrot.slane %v9564_v56, %v9154_v7  ;;  %v6976_v37 = vadd.f32 %v6975_v22, %v4180_v24  ;;  %v8296_v22 = vcombine.high %v4082_v43, %v4086_v34 }
 0x756   :  { %7347 = vmatpush2.bf16.msra.mxu1 %v8111_v8  ;;  %v4102_v8 = vld [vmem:[#allocation3 + $0xdf8] sm:$0xff] }
 0x757   :  { %7348 = vmatprep.subr.bf16.mxu1 %v8104_v16  ;;  %v7935_v16 = vcombine.low %v3722_v57, %v3726_v4  ;;  %v8312_v2 = vcombine.high %v4098_v6, %v4102_v8  ;;  %v6978_v9 = vadd.f32 %v6977_v5, %v4184_v47  ;;  %v8311_v7 = vcombine.low %v4098_v6, %v4102_v8  ;;  %v3950_v57 = vld [vmem:[#allocation3 + $0x938] sm:$0xff] }
 0x758   :  { %7306 = vmatpush2.bf16.msra.mxu0 %v7975_v49  ;;  %v7022_v49 = vpop.f32.mrf.mxu1  ;;  %v3938_v6 = vld [vmem:[#allocation3 + $0x8d8] sm:$0xff] }
 0x759   :  { %7307 = vmatprep.subr.bf16.mxu0 %v7968_v45  ;;  %v3966_v45 = vld [vmem:[#allocation3 + $0x9b8] sm:$0xff] }
 0x75a   :  { %7349 = vmatpush2.bf16.msra.mxu1 %v8103_v51  ;;  %v3962_v51 = vld [vmem:[#allocation3 + $0x998] sm:$0xff] }
 0x75b   :  { %7350 = vmatprep.subr.bf16.mxu1 %v8096_v1  ;;  %v4090_v1 = vld [vmem:[#allocation3 + $0xd98] sm:$0xff]  ;;  %v8176_v56 = vcombine.high %v3962_v51, %v3966_v45 }
 0x75c   :  { %7308 = vmatpush2.bf16.msra.mxu0 %v7967_v44  ;;  %v3954_v44 = vld [vmem:[#allocation3 + $0x958] sm:$0xff]  ;;  %v8304_v62 = vcombine.high %v4090_v1, %v4094_v61  ;;  %v8303_v63 = vcombine.low %v4090_v1, %v4094_v61 }
 0x75d   :  { %7309 = vmatprep.subr.bf16.mxu0 %v7960_v23  ;;  %v6980_v23 = vadd.f32 %v6979_v3, %v4180_v24  ;;  %v8167_v40 = vcombine.low %v3954_v44, %v3958_v28  ;;  %v3942_v8 = vld [vmem:[#allocation3 + $0x8f8] sm:$0xff] }
 0x75e   :  { %7351 = vmatpush2.bf16.msra.mxu1 %v8095_v26  ;;  %v7019_v26 = vadd.f32 %v7018_v54, %v6976_v37  ;;  %v8152_v37 = vcombine.high %v3938_v6, %v3942_v8  ;;  %v4062_v1 = vld [vmem:[#allocation3 + $0xcb8] sm:$0xff]  ;;  %v8151_v61 = vcombine.low %v3938_v6, %v3942_v8 }
 0x75f   :  { %7352 = vmatprep.subr.bf16.mxu1 %v8088_v55  ;;  %v7024_v55 = vpop.f32.mrf.mxu1 }
 0x760   :  { %7310 = vmatpush2.bf16.msra.mxu0 %v7959_v41 }
 0x761   :  { %7311 = vmatprep.subr.bf16.mxu0 %v7952_v59  ;;  %v7021_v59 = vadd.f32 %v7020_v36, %v6978_v9  ;;  %v8295_v36 = vcombine.low %v4082_v43, %v4086_v34  ;;  %v3914_v34 = vld [vmem:[#allocation3 + $0x818] sm:$0xff] }
 0x762   :  { %7353 = vmatpush2.bf16.msra.mxu1 %v8087_v20  ;;  %v8175_v20 = vcombine.low %v3962_v51, %v3966_v45  ;;  %v3934_v51 = vld [vmem:[#allocation3 + $0x8b8] sm:$0xff] }
 0x763   :  { %7354 = vmatprep.subr.bf16.mxu1 %v8080_v58  ;;  %v6982_v58 = vadd.f32 %v6981_v33, %v4184_v47  ;;  %v4058_v45 = vld [vmem:[#allocation3 + $0xc98] sm:$0xff] }
 0x764   :  { %7312 = vmatpush2.bf16.msra.mxu0 %v7951_v35  ;;  %v8168_v35 = vcombine.high %v3954_v44, %v3958_v28  ;;  %v8272_v33 = vcombine.high %v4058_v45, %v4062_v1  ;;  %v4050_v44 = vld [vmem:[#allocation3 + $0xc58] sm:$0xff] }
 0x765   :  { %7313 = vmatprep.subr.bf16.mxu0 %v7944_v42 }
 0x766   :  { %7355 = vmatpush2.bf16.msra.mxu1 %v8079_v31  ;;  %v7023_v31 = vadd.f32 %v7022_v49, %v6980_v23 }
 0x767   :  { %7356 = vmatprep.subr.bf16.mxu1 %v8072_v38 }
 0x768   :  { %7314 = vmatpush2.bf16.msra.mxu0 %v7943_v15  ;;  %v7025_v15 = vadd.f32 %v7024_v55, %v6982_v58  ;;  %v4046_v58 = vld [vmem:[#allocation3 + $0xc38] sm:$0xff] }
 0x769   :  { %7315 = vmatprep.subr.bf16.mxu0 %v7936_v39 }
 0x76a   :  { %7357 = vmatpush2.bf16.msra.mxu1 %v8071_v53 }
 0x76b   :  { %7358 = vmatprep.subr.bf16.mxu1 %v8064_v29 }
 0x76c   :  { %7316 = vmatpush2.bf16.msra.mxu0 %v7935_v16  ;;  %v4070_v16 = vld [vmem:[#allocation3 + $0xcf8] sm:$0xff] }
 0x76d   :  { %7371 = vmatprep.subr.bf16.mxu0 %v8184_v12 }
 0x76e   :  { %7359 = vmatpush2.bf16.msra.mxu1 %v8063_v18 }
 0x76f   :  { %7414 = vmatprep.subr.bf16.mxu1 %v8312_v2  ;;  %v7061_v41 = vpop.f32.mrf.mxu0  ;;  %7318 = vmatmul.mubr.bf16.vlgmr.msra.gmra.mxu0 %v9506_v46  ;;  %v3946_v46 = vld [vmem:[#allocation3 + $0x918] sm:$0xff] }
 0x770   :  { %v7062_v14 = vadd.f32 %v7061_v41, %v7019_v26  ;;  %7372 = vmatpush1.bf16.msra.mxu0 %v8183_v50  ;;  %7403 = vmatprep.mubr.bf16.mxu0 %v9522_v10  ;;  %v8160_v29 = vcombine.high %v3946_v46, %v3950_v57  ;;  %v8159_v18 = vcombine.low %v3946_v46, %v3950_v57  ;;  %v3930_v2 = vld [vmem:[#allocation3 + $0x898] sm:$0xff] }
 0x771   :  { %v7104_v17 = vpop.f32.mrf.mxu1  ;;  %7361 = vmatmul.mubr.bf16.vlgmr.msra.gmra.mxu1 %v9514_v19  ;;  %v7063_v32 = vpop.f32.mrf.mxu0  ;;  %7373 = vmatprep.subr.bf16.mxu0 %v8176_v56  ;;  %v4078_v19 = vld [vmem:[#allocation3 + $0xd38] sm:$0xff]  ;;  %v8144_v50 = vcombine.high %v3930_v2, %v3934_v51  ;;  %v8143_v23 = vcombine.low %v3930_v2, %v3934_v51 }
 0x772   :  { %7415 = vmatpush1.bf16.msra.mxu1 %v8311_v7  ;;  %v7105_v42 = vadd.f32 %v7104_v17, %v7062_v14  ;;  %v7064_v54 = vadd.f32 %v7063_v32, %v7021_v59  ;;  %7446 = vmatprep.mubr.bf16.mxu1 %v9531_v27  ;;  %v8288_v21 = vcombine.high %v4074_v13, %v4078_v19  ;;  %v4066_v27 = vld [vmem:[#allocation3 + $0xcd8] sm:$0xff] }
 0x773   :  { %v7106_v38 = vpop.f32.mrf.mxu1  ;;  %7416 = vmatprep.subr.bf16.mxu1 %v8304_v62  ;;  %v7065_v4 = vpop.f32.mrf.mxu0  ;;  %v8287_v12 = vcombine.low %v4074_v13, %v4078_v19  ;;  %v8280_v49 = vcombine.high %v4066_v27, %v4070_v16  ;;  %v8279_v9 = vcombine.low %v4066_v27, %v4070_v16  ;;  %v3922_v7 = vld [vmem:[#allocation3 + $0x858] sm:$0xff]  ;;  %v8271_v62 = vcombine.low %v4058_v45, %v4062_v1 }
 0x774   :  { %8574 = vtanh.f32 %v7105_v42  ;;  %v7107_v5 = vadd.f32 %v7106_v38, %v7064_v54  ;;  %v7066_v53 = vadd.f32 %v7065_v4, %v7023_v31  ;;  %7374 = vmatpush1.bf16.msra.mxu0 %v8175_v20  ;;  %v3926_v56 = vld [vmem:[#allocation3 + $0x878] sm:$0xff] }
 0x775   :  { %v7108_v39 = vpop.f32.mrf.mxu1  ;;  %v7067_v24 = vpop.f32.mrf.mxu0  ;;  %7375 = vmatprep.subr.bf16.mxu0 %v8168_v35  ;;  %v4054_v26 = vld [vmem:[#allocation3 + $0xc78] sm:$0xff]  ;;  %v8136_v28 = vcombine.high %v3922_v7, %v3926_v56  ;;  %v8135_v14 = vcombine.low %v3922_v7, %v3926_v56 }
 0x776   :  { %7417 = vmatpush1.bf16.msra.mxu1 %v8303_v63  ;;  %8576 = vtanh.f32 %v7107_v5  ;;  %v7109_v25 = vadd.f32 %v7108_v39, %v7066_v53  ;;  %v7068_v10 = vadd.f32 %v7067_v24, %v7025_v15  ;;  %v8264_v43 = vcombine.high %v4050_v44, %v4054_v26  ;;  %v3918_v41 = vld [vmem:[#allocation3 + $0x838] sm:$0xff] }
 0x777   :  { %7418 = vmatprep.subr.bf16.mxu1 %v8296_v22  ;;  %v7110_v47 = vpop.f32.mrf.mxu1  ;;  %v4042_v59 = vld [vmem:[#allocation3 + $0xc18] sm:$0xff]  ;;  %v8263_v32 = vcombine.low %v4050_v44, %v4054_v26  ;;  %v8128_v63 = vcombine.high %v3914_v34, %v3918_v41  ;;  %v8127_v46 = vcombine.low %v3914_v34, %v3918_v41 }
 0x778   :  { %8578 = vtanh.f32 %v7109_v25  ;;  %v7111_v3 = vadd.f32 %v7110_v47, %v7068_v10  ;;  %7376 = vmatpush1.bf16.msra.mxu0 %v8167_v40  ;;  %v8256_v35 = vcombine.high %v4042_v59, %v4046_v58  ;;  %v4034_v22 = vld [vmem:[#allocation3 + $0xbd8] sm:$0xff]  ;;  %v8255_v57 = vcombine.low %v4042_v59, %v4046_v58 }
 0x779   :  { %7377 = vmatprep.subr.bf16.mxu0 %v8160_v29  ;;  %v4038_v31 = vld [vmem:[#allocation3 + $0xbf8] sm:$0xff] }
 0x77a   :  { %7419 = vmatpush1.bf16.msra.mxu1 %v8295_v36  ;;  %8580 = vtanh.f32 %v7111_v3  ;;  %v4162_v54 = vld [vmem:[#allocation3 + $0xfd8] sm:$0xff]  ;;  %v8248_v4 = vcombine.high %v4034_v22, %v4038_v31  ;;  %v8247_v53 = vcombine.low %v4034_v22, %v4038_v31 }
 0x77b   :  { %7420 = vmatprep.subr.bf16.mxu1 %v8288_v21  ;;  %v4166_v38 = vld [vmem:[#allocation3 + $0xff8] sm:$0xff] }
 0x77c   :  { %7378 = vmatpush1.bf16.msra.mxu0 %v8159_v18  ;;  %v8376_v40 = vcombine.high %v4162_v54, %v4166_v38  ;;  %v4026_v13 = vld [vmem:[#allocation3 + $0xb98] sm:$0xff]  ;;  %v8375_v39 = vcombine.low %v4162_v54, %v4166_v38 }
 0x77d   :  { %7379 = vmatprep.subr.bf16.mxu0 %v8152_v37  ;;  %v4030_v19 = vld [vmem:[#allocation3 + $0xbb8] sm:$0xff] }
 0x77e   :  { %7421 = vmatpush1.bf16.msra.mxu1 %v8287_v12  ;;  %v4154_v15 = vld [vmem:[#allocation3 + $0xf98] sm:$0xff]  ;;  %v8240_v24 = vcombine.high %v4026_v13, %v4030_v19  ;;  %v8239_v6 = vcombine.low %v4026_v13, %v4030_v19 }
 0x77f   :  { %7422 = vmatprep.subr.bf16.mxu1 %v8280_v49  ;;  %v4158_v5 = vld [vmem:[#allocation3 + $0xfb8] sm:$0xff] }
 0x780   :  { %7380 = vmatpush1.bf16.msra.mxu0 %v8151_v61  ;;  %v8368_v36 = vcombine.high %v4154_v15, %v4158_v5  ;;  %v4018_v29 = vld [vmem:[#allocation3 + $0xb58] sm:$0xff]  ;;  %v8367_v8 = vcombine.low %v4154_v15, %v4158_v5 }
 0x781   :  { %v8575_v55 = vpop.eup %8574  ;;  %7381 = vmatprep.subr.bf16.mxu0 %v8144_v50  ;;  %v4022_v25 = vld [vmem:[#allocation3 + $0xb78] sm:$0xff] }
 0x782   :  { %7423 = vmatpush1.bf16.msra.mxu1 %v8279_v9  ;;  %7475 = vst [vmem:[#allocation25 + $0x10] sm:$0xff] %v8575_v55  ;;  %v4146_v10 = vld [vmem:[#allocation3 + $0xf58] sm:$0xff]  ;;  %v8232_v47 = vcombine.high %v4018_v29, %v4022_v25  ;;  %v8231_v37 = vcombine.low %v4018_v29, %v4022_v25 }
 0x783   :  { %7424 = vmatprep.subr.bf16.mxu1 %v8272_v33  ;;  %v8577_v20 = vpop.eup %8576  ;;  %v4150_v21 = vld [vmem:[#allocation3 + $0xf78] sm:$0xff] }
 0x784   :  { %7476 = vst [vmem:[#allocation25 + $0x18] sm:$0xff] %v8577_v20  ;;  %7382 = vmatpush1.bf16.msra.mxu0 %v8143_v23  ;;  %v8360_v27 = vcombine.high %v4146_v10, %v4150_v21  ;;  %v4010_v16 = vld [vmem:[#allocation3 + $0xb18] sm:$0xff]  ;;  %v8359_v49 = vcombine.low %v4146_v10, %v4150_v21 }
 0x785   :  { %v8579_v17 = vpop.eup %8578  ;;  %7383 = vmatprep.subr.bf16.mxu0 %v8136_v28  ;;  %v4014_v3 = vld [vmem:[#allocation3 + $0xb38] sm:$0xff] }
 0x786   :  { %7425 = vmatpush1.bf16.msra.mxu1 %v8271_v62  ;;  %7483 = vst [vmem:[#allocation25 + $0x50] sm:$0xff] %v8579_v17  ;;  %v4138_v18 = vld [vmem:[#allocation3 + $0xf18] sm:$0xff]  ;;  %v8224_v2 = vcombine.high %v4010_v16, %v4014_v3  ;;  %v8223_v50 = vcombine.low %v4010_v16, %v4014_v3 }
 0x787   :  { %7426 = vmatprep.subr.bf16.mxu1 %v8264_v43  ;;  %v8581_v42 = vpop.eup %8580  ;;  %v4142_v12 = vld [vmem:[#allocation3 + $0xf38] sm:$0xff] }
 0x788   :  { %7484 = vst [vmem:[#allocation25 + $0x58] sm:$0xff] %v8581_v42  ;;  %7384 = vmatpush1.bf16.msra.mxu0 %v8135_v14  ;;  %v8352_v51 = vcombine.high %v4138_v18, %v4142_v12  ;;  %v4002_v45 = vld [vmem:[#allocation3 + $0xad8] sm:$0xff]  ;;  %v8351_v33 = vcombine.low %v4138_v18, %v4142_v12 }
 0x789   :  { %7385 = vmatprep.subr.bf16.mxu0 %v8128_v63  ;;  %v4006_v1 = vld [vmem:[#allocation3 + $0xaf8] sm:$0xff] }
 0x78a   :  { %7427 = vmatpush1.bf16.msra.mxu1 %v8263_v32  ;;  %v4130_v61 = vld [vmem:[#allocation3 + $0xed8] sm:$0xff]  ;;  %v8216_v7 = vcombine.high %v4002_v45, %v4006_v1  ;;  %v8215_v62 = vcombine.low %v4002_v45, %v4006_v1 }
 0x78b   :  { %7428 = vmatprep.subr.bf16.mxu1 %v8256_v35  ;;  %v4134_v9 = vld [vmem:[#allocation3 + $0xef8] sm:$0xff] }
 0x78c   :  { %7386 = vmatpush1.bf16.msra.mxu0 %v8127_v46  ;;  %v8344_v56 = vcombine.high %v4130_v61, %v4134_v9  ;;  %v3994_v44 = vld [vmem:[#allocation3 + $0xa98] sm:$0xff]  ;;  %v8343_v28 = vcombine.low %v4130_v61, %v4134_v9 }
 0x78d   :  { %7387 = vmatprep.subr.bf16.mxu0 %v8248_v4  ;;  %v3998_v26 = vld [vmem:[#allocation3 + $0xab8] sm:$0xff] }
 0x78e   :  { %7429 = vmatpush1.bf16.msra.mxu1 %v8255_v57  ;;  %v4122_v23 = vld [vmem:[#allocation3 + $0xe98] sm:$0xff]  ;;  %v8208_v43 = vcombine.high %v3994_v44, %v3998_v26  ;;  %v8207_v14 = vcombine.low %v3994_v44, %v3998_v26 }
 0x78f   :  { %7430 = vmatprep.subr.bf16.mxu1 %v8376_v40  ;;  %v4126_v55 = vld [vmem:[#allocation3 + $0xeb8] sm:$0xff] }
 0x790   :  { %7388 = vmatpush2.bf16.msra.mxu0 %v8247_v53  ;;  %v8336_v34 = vcombine.high %v4122_v23, %v4126_v55  ;;  %v3986_v41 = vld [vmem:[#allocation3 + $0xa58] sm:$0xff]  ;;  %v8335_v17 = vcombine.low %v4122_v23, %v4126_v55 }
 0x791   :  { %7389 = vmatprep.subr.bf16.mxu0 %v8240_v24  ;;  %v3990_v20 = vld [vmem:[#allocation3 + $0xa78] sm:$0xff] }
 0x792   :  { %7431 = vmatpush2.bf16.msra.mxu1 %v8375_v39  ;;  %v4114_v59 = vld [vmem:[#allocation3 + $0xe58] sm:$0xff]  ;;  %v8200_v32 = vcombine.high %v3986_v41, %v3990_v20  ;;  %v8199_v54 = vcombine.low %v3986_v41, %v3990_v20 }
 0x793   :  { %7432 = vmatprep.subr.bf16.mxu1 %v8368_v36  ;;  %v4118_v58 = vld [vmem:[#allocation3 + $0xe78] sm:$0xff] }
 0x794   :  { %7390 = vmatpush2.bf16.msra.mxu0 %v8239_v6  ;;  %v8328_v63 = vcombine.high %v4114_v59, %v4118_v58  ;;  %v3978_v35 = vld [vmem:[#allocation3 + $0xa18] sm:$0xff]  ;;  %v8327_v38 = vcombine.low %v4114_v59, %v4118_v58 }
 0x795   :  { %7391 = vmatprep.subr.bf16.mxu0 %v8232_v47  ;;  %v3982_v22 = vld [vmem:[#allocation3 + $0xa38] sm:$0xff] }
 0x796   :  { %7433 = vmatpush2.bf16.msra.mxu1 %v8367_v8  ;;  %v4106_v31 = vld [vmem:[#allocation3 + $0xe18] sm:$0xff]  ;;  %v8192_v46 = vcombine.high %v3978_v35, %v3982_v22  ;;  %v8191_v4 = vcombine.low %v3978_v35, %v3982_v22 }
 0x797   :  { %7434 = vmatprep.subr.bf16.mxu1 %v8360_v27  ;;  %v4110_v42 = vld [vmem:[#allocation3 + $0xe38] sm:$0xff] }
 0x798   :  { %7392 = vmatpush2.bf16.msra.mxu0 %v8231_v37  ;;  %v8320_v57 = vcombine.high %v4106_v31, %v4110_v42  ;;  %v8319_v40 = vcombine.low %v4106_v31, %v4110_v42  ;;  %v8598_v5 = vld [vmem:[#allocation23] sm:$0xff] }
 0x799   :  { %7393 = vmatprep.subr.bf16.mxu0 %v8224_v2  ;;  %v4188_v53 = vrot.slane %v8598_v5, %v9353_v11  ;;  %v4192_v24 = vrot.slane %v8598_v5, %v9356_v52  ;;  %v4200_v41 = vrot.slane %v8598_v5, %v9362_v0 }
 0x79a   :  { %7435 = vmatpush2.bf16.msra.mxu1 %v8359_v49 }
 0x79b   :  { %7436 = vmatprep.subr.bf16.mxu1 %v8352_v51 }
 0x79c   :  { %7394 = vmatpush2.bf16.msra.mxu0 %v8223_v50 }
 0x79d   :  { %7395 = vmatprep.subr.bf16.mxu0 %v8216_v7 }
 0x79e   :  { %7437 = vmatpush2.bf16.msra.mxu1 %v8351_v33 }
 0x79f   :  { %7438 = vmatprep.subr.bf16.mxu1 %v8344_v56 }
 0x7a0   :  { %7396 = vmatpush2.bf16.msra.mxu0 %v8215_v62 }
 0x7a1   :  { %7397 = vmatprep.subr.bf16.mxu0 %v8208_v43  ;;  %v4196_v43 = vrot.slane %v8598_v5, %v9359_v60 }
 0x7a2   :  { %7439 = vmatpush2.bf16.msra.mxu1 %v8343_v28 }
 0x7a3   :  { %7440 = vmatprep.subr.bf16.mxu1 %v8336_v34 }
 0x7a4   :  { %7398 = vmatpush2.bf16.msra.mxu0 %v8207_v14 }
 0x7a5   :  { %7399 = vmatprep.subr.bf16.mxu0 %v8200_v32 }
 0x7a6   :  { %7441 = vmatpush2.bf16.msra.mxu1 %v8335_v17 }
 0x7a7   :  { %7442 = vmatprep.subr.bf16.mxu1 %v8328_v63 }
 0x7a8   :  { %7400 = vmatpush2.bf16.msra.mxu0 %v8199_v54 }
 0x7a9   :  { %7401 = vmatprep.subr.bf16.mxu0 %v8192_v46 }
 0x7aa   :  { %7443 = vmatpush2.bf16.msra.mxu1 %v8327_v38 }
 0x7ab   :  { %7444 = vmatprep.subr.bf16.mxu1 %v8320_v57 }
 0x7ac   :  { %7402 = vmatpush2.bf16.msra.mxu0 %v8191_v4 }
 0x7ae   :  { %7445 = vmatpush2.bf16.msra.mxu1 %v8319_v40 }
 0x7af   :  { %7404 = vmatmul.mubr.bf16.vlgmr.msra.gmra.mxu0 %v9542_v48  ;;  %v7147_v13 = vpop.f32.mrf.mxu0 }
 0x7b0   :  { %v7148_v29 = vadd.f32 %v7147_v13, %v4188_v53 }
 0x7b1   :  { %7447 = vmatmul.mubr.bf16.vlgmr.msra.gmra.mxu1 %v9550_v30  ;;  %v7190_v19 = vpop.f32.mrf.mxu1  ;;  %v7149_v15 = vpop.f32.mrf.mxu0 }
 0x7b2   :  { %v7150_v10 = vadd.f32 %v7149_v15, %v4192_v24  ;;  %v7191_v6 = vadd.f32 %v7190_v19, %v7148_v29 }
 0x7b3   :  { %v7192_v39 = vpop.f32.mrf.mxu1  ;;  %v7151_v36 = vpop.f32.mrf.mxu0 }
 0x7b4   :  { %v7152_v8 = vadd.f32 %v7151_v36, %v4188_v53  ;;  %v7193_v27 = vadd.f32 %v7192_v39, %v7150_v10 }
 0x7b5   :  { %v7194_v25 = vpop.f32.mrf.mxu1  ;;  %v7153_v21 = vpop.f32.mrf.mxu0 }
 0x7b6   :  { %v7154_v30 = vadd.f32 %v7153_v21, %v4192_v24  ;;  %v7195_v12 = vadd.f32 %v7194_v25, %v7152_v8 }
 0x7b7   :  { %v7196_v47 = vpop.f32.mrf.mxu1 }
 0x7b8   :  { %v7197_v52 = vadd.f32 %v7196_v47, %v7154_v30 }
 0x7ef   :  { %v7233_v48 = vpop.f32.mrf.mxu0 }
 0x7f0   :  { %v7234_v16 = vadd.f32 %v7233_v48, %v7191_v6 }
 0x7f1   :  { %v7276_v3 = vpop.f32.mrf.mxu1  ;;  %v7235_v18 = vpop.f32.mrf.mxu0 }
 0x7f2   :  { %v7277_v37 = vadd.f32 %v7276_v3, %v7234_v16  ;;  %v7236_v11 = vadd.f32 %v7235_v18, %v7193_v27 }
 0x7f3   :  { %v7278_v49 = vpop.f32.mrf.mxu1  ;;  %v7237_v2 = vpop.f32.mrf.mxu0 }
 0x7f4   :  { %8582 = vtanh.f32 %v7277_v37  ;;  %v7279_v51 = vadd.f32 %v7278_v49, %v7236_v11  ;;  %v7238_v45 = vadd.f32 %v7237_v2, %v7195_v12 }
 0x7f5   :  { %v7280_v1 = vpop.f32.mrf.mxu1  ;;  %v7239_v61 = vpop.f32.mrf.mxu0 }
 0x7f6   :  { %8584 = vtanh.f32 %v7279_v51  ;;  %v7281_v9 = vadd.f32 %v7280_v1, %v7238_v45  ;;  %v7240_v50 = vadd.f32 %v7239_v61, %v7197_v52 }
 0x7f7   :  { %v7282_v33 = vpop.f32.mrf.mxu1 }
 0x7f8   :  { %8586 = vtanh.f32 %v7281_v9  ;;  %v7283_v7 = vadd.f32 %v7282_v33, %v7240_v50 }
 0x7fa   :  { %8588 = vtanh.f32 %v7283_v7 }
 0x801   :  { %v8583_v56 = vpop.eup %8582 }
 0x802   :  { %7477 = vst [vmem:[#allocation25 + $0x20] sm:$0xff] %v8583_v56 }
 0x803   :  { %v8585_v44 = vpop.eup %8584 }
 0x804   :  { %7478 = vst [vmem:[#allocation25 + $0x28] sm:$0xff] %v8585_v44 }
 0x805   :  { %v8587_v26 = vpop.eup %8586 }
 0x806   :  { %7485 = vst [vmem:[#allocation25 + $0x60] sm:$0xff] %v8587_v26 }
 0x807   :  { %v8589_v23 = vpop.eup %8588 }
 0x808   :  { %7486 = vst [vmem:[#allocation25 + $0x68] sm:$0xff] %v8589_v23 }
 0x82f   :  { %v7319_v55 = vpop.f32.mrf.mxu0 }
 0x830   :  { %v7320_v59 = vadd.f32 %v7319_v55, %v4196_v43 }
 0x831   :  { %v7362_v62 = vpop.f32.mrf.mxu1  ;;  %v7321_v28 = vpop.f32.mrf.mxu0 }
 0x832   :  { %v7322_v14 = vadd.f32 %v7321_v28, %v4200_v41  ;;  %v7363_v32 = vadd.f32 %v7362_v62, %v7320_v59 }
 0x833   :  { %v7364_v34 = vpop.f32.mrf.mxu1  ;;  %v7323_v20 = vpop.f32.mrf.mxu0 }
 0x834   :  { %v7324_v63 = vadd.f32 %v7323_v20, %v4196_v43  ;;  %v7365_v31 = vadd.f32 %v7364_v34, %v7322_v14 }
 0x835   :  { %v7366_v58 = vpop.f32.mrf.mxu1  ;;  %v7325_v17 = vpop.f32.mrf.mxu0 }
 0x836   :  { %v7326_v42 = vadd.f32 %v7325_v17, %v4200_v41  ;;  %v7367_v57 = vadd.f32 %v7366_v58, %v7324_v63 }
 0x837   :  { %v7368_v35 = vpop.f32.mrf.mxu1 }
 0x838   :  { %v7369_v0 = vadd.f32 %v7368_v35, %v7326_v42 }
 0x86f   :  { %v7405_v22 = vpop.f32.mrf.mxu0 }
 0x870   :  { %v7406_v54 = vadd.f32 %v7405_v22, %v7363_v32 }
 0x871   :  { %v7448_v38 = vpop.f32.mrf.mxu1  ;;  %v7407_v46 = vpop.f32.mrf.mxu0 }
 0x872   :  { %v7449_v4 = vadd.f32 %v7448_v38, %v7406_v54  ;;  %v7408_v60 = vadd.f32 %v7407_v46, %v7365_v31 }
 0x873   :  { %v7450_v40 = vpop.f32.mrf.mxu1  ;;  %v7409_v13 = vpop.f32.mrf.mxu0 }
 0x874   :  { %8590 = vtanh.f32 %v7449_v4  ;;  %v7451_v19 = vadd.f32 %v7450_v40, %v7408_v60  ;;  %v7410_v15 = vadd.f32 %v7409_v13, %v7367_v57 }
 0x875   :  { %v7452_v5 = vpop.f32.mrf.mxu1  ;;  %v7411_v53 = vpop.f32.mrf.mxu0 }
 0x876   :  { %8592 = vtanh.f32 %v7451_v19  ;;  %v7453_v39 = vadd.f32 %v7452_v5, %v7410_v15  ;;  %v7412_v24 = vadd.f32 %v7411_v53, %v7369_v0 }
 0x877   :  { %v7454_v36 = vpop.f32.mrf.mxu1 }
 0x878   :  { %8594 = vtanh.f32 %v7453_v39  ;;  %v7455_v29 = vadd.f32 %v7454_v36, %v7412_v24 }
 0x87a   :  { %8596 = vtanh.f32 %v7455_v29 }
 0x881   :  { %v8591_v25 = vpop.eup %8590 }
 0x882   :  { %7479 = vst [vmem:[#allocation25 + $0x30] sm:$0xff] %v8591_v25 }
 0x883   :  { %v8593_v10 = vpop.eup %8592 }
 0x884   :  { %7480 = vst [vmem:[#allocation25 + $0x38] sm:$0xff] %v8593_v10 }
 0x885   :  { %v8595_v21 = vpop.eup %8594 }
 0x886   :  { %7487 = vst [vmem:[#allocation25 + $0x70] sm:$0xff] %v8595_v21 }
 0x887   :  { %v8597_v6 = vpop.eup %8596 }
 0x888   :  { %7488 = vst [vmem:[#allocation25 + $0x78] sm:$0xff] %v8597_v6 }
 0x889   :  { %8890 = shalt.err (!%p8887_p4)
}
 0x88a   :  { %s8944_s24 = smov 1024  }
 0x88b   :  { %7500 = dma.vmem_to_hbm [thread:$0]  %s7495_s12, 2048, %s9610_s14, [#allocation7], %s8944_s24, %s8944_s24, %s8920_s16  }
 0x88c   :  { %8917 = dma.done.wait [#allocation7], 2048  }
 0x88d   :  { %8918 = vsyncadd [#allocation7], 4294965248 }
 0x88e   :  { %7504 = vsyncpa [#allocation6], 1 }
 0x88f   :  { %7505 = vsyncpa [#allocation9], 1 }
 0x890   :  { %7506 = vsyncpa [#allocation12], 1 }
 0x891   :  { %7507 = vsyncpa [#allocation15], 1 }
 0x892   :  { %7508 = vsyncpa [#allocation18], 1 }
 0x893   :  { %7509 = vsyncpa [#allocation21], 1 }
 0x894   :  { %7510 = vsyncpa [#allocation24], 1 }
 0x895   :  { %7511 = vsyncpa [#allocation7], 1 }
 0x896   :  { %7512 = vsyncmov [#allocation4] }
 0x899   :  { %s7513_s1 = vpop.sfrf %7512 }
 0x89a   :  { %p8377_p5 = scmp.ne.s32.totalorder %s7513_s1, 0 }
 0x89c   :  { %7517 = shalt.err (%p8377_p5)  }
 0x89d   :  { %7519 = vsyncmov [#allocation4 + $0x1] }
 0x8a0   :  { %s7520_s29 = vpop.sfrf %7519 }
 0x8a1   :  { %p8378_p6 = scmp.ne.s32.totalorder %s7520_s29, 0 }
 0x8a3   :  { %7524 = shalt.err (%p8378_p6)  }

</bundles_post_ra>
